<compile_context>
chip_gen: v5e
topology: v5e:2x2
jax: 0.10.0
libtpu: 0.0.40
codegen_flags: <defaults>
</compile_context>

<pallas_src>
import jax
import jax.numpy as jnp
import numpy as np
from jax.experimental import pallas as pl
from jax.experimental.pallas import tpu as pltpu

EPS = 1e-5


# ----------------------- combined-weight index tables -----------------------
# Layer 1 patch feature  k = (di*3+dj)*16 + qy*4+qx  reads input pixel
#   (y, x) = (4*(i+di)+qy-4, 4*(j+dj)+qx-4) for output cell (i, j).
# Layer 1 output column  c = ((dy*2+dx)*4 + (py*2+px))*16 + co  is the conv
#   value at fine position (4i+2py+dy, 4j+2px+dx), channel co.
def _build_w1_map():
    idx = np.zeros((144, 256), np.int32)
    msk = np.zeros((144, 256), np.bool_)
    for di in range(3):
        for dj in range(3):
            for qy in range(4):
                for qx in range(4):
                    k = (di * 3 + dj) * 16 + qy * 4 + qx
                    for dy in range(2):
                        for dx in range(2):
                            for py in range(2):
                                for px in range(2):
                                    ky = 4 * di + qy - 2 * py - dy - 2
                                    kx = 4 * dj + qx - 2 * px - dx - 2
                                    if 0 <= ky < 5 and 0 <= kx < 5:
                                        base = ((dy * 2 + dx) * 4
                                                + (py * 2 + px)) * 16
                                        for co in range(16):
                                            idx[k, base + co] = (ky * 5 + kx) * 16 + co
                                            msk[k, base + co] = True
    return idx, msk


# Layer 2 patch feature  k = (di*3+dj)*64 + (py*2+px)*16 + ci  reads the
# layer-1 pooled value at (2*(i+di-1)+py, 2*(j+dj-1)+px, ci); output column
# c = (dy*2+dx)*32 + co2 is conv2 at (2i+dy, 2j+dx, co2).
def _build_w2_map():
    idx = np.zeros((576, 128), np.int32)
    msk = np.zeros((576, 128), np.bool_)
    for di in range(3):
        for dj in range(3):
            for py in range(2):
                for px in range(2):
                    for ci in range(16):
                        k = (di * 3 + dj) * 64 + (py * 2 + px) * 16 + ci
                        for dy in range(2):
                            for dx in range(2):
                                ky = 2 * di + py - dy
                                kx = 2 * dj + px - dx
                                if 0 <= ky < 5 and 0 <= kx < 5:
                                    base = (dy * 2 + dx) * 32
                                    for co in range(32):
                                        idx[k, base + co] = ((ky * 5 + kx) * 16 + ci) * 32 + co
                                        msk[k, base + co] = True
    return idx, msk


def _build_block_sum():
    # (320, 10): sums lane blocks of 32 -> the 10 logits.
    s = np.zeros((320, 10), np.float32)
    for d in range(10):
        s[d * 32:(d + 1) * 32, d] = 1.0
    return s


_W1_IDX, _W1_MSK = _build_w1_map()
_W2_IDX, _W2_MSK = _build_w2_map()
_S_SUM = _build_block_sum()


# ------------------------------ fused kernel --------------------------------

def _detector_kernel(x_ref, w1_ref, s1_ref, t1_ref, w2_ref, s2_ref, t2_ref,
                     wfl_ref, ssum_ref, bf_ref, o_ref,
                     p1_ref, p2_ref, a1_ref):
    bt = x_ref.shape[0]          # images per grid step

    # Padding rows of the patch matrices / halo of the coarse grid must be 0.
    p1_ref[...] = jnp.zeros_like(p1_ref)
    p2_ref[...] = jnp.zeros_like(p2_ref)
    a1_ref[...] = jnp.zeros_like(a1_ref)

    # ---- layer 1: in-VMEM im2col (3x3 coarse neighbourhood = 12x12 pixels) --
    for b in range(bt):
        for i in range(7):
            r = b * 56 + i * 8
            pieces = [x_ref[b, i + di, dj:dj + 7, :]
                      for di in range(3) for dj in range(3)]       # 9 x (7,16)
            p1_ref[r:r + 7, :] = jnp.concatenate(pieces, axis=-1)  # (7,144)

    acc1 = jnp.dot(p1_ref[...], w1_ref[...],
                   preferred_element_type=jnp.float32)             # (bt*56,256)
    y1 = jnp.maximum(acc1 * s1_ref[...] + t1_ref[...], 0.0)        # BN + ReLU
    # maxpool 2x2 == max over the 4 window-corner lane blocks
    pool1 = jnp.maximum(jnp.maximum(y1[:, 0:64], y1[:, 64:128]),
                        jnp.maximum(y1[:, 128:192], y1[:, 192:256]))  # (.,64)

    # scatter pooled rows into the zero-padded 9x9 coarse activation grid
    for b in range(bt):
        for i in range(7):
            r = b * 56 + i * 8
            a1_ref[b, i + 1, 1:8, :] = pool1[r:r + 7, :]

    # ---- layer 2: same trick on the 64-channel coarse grid ------------------
    for b in range(bt):
        for i in range(7):
            r = b * 56 + i * 8
            pieces = [a1_ref[b, i + di, dj:dj + 7, :]
                      for di in range(3) for dj in range(3)]       # 9 x (7,64)
            p2_ref[r:r + 7, :] = jnp.concatenate(pieces, axis=-1)  # (7,576)

    acc2 = jnp.dot(p2_ref[...], w2_ref[...],
                   preferred_element_type=jnp.float32)             # (bt*56,128)
    y2 = jnp.maximum(acc2 * s2_ref[...] + t2_ref[...], 0.0)
    pool2 = jnp.maximum(jnp.maximum(y2[:, 0:32], y2[:, 32:64]),
                        jnp.maximum(y2[:, 64:96], y2[:, 96:128]))  # (bt*56,32)

    # ---- fused fc: lane-replicated permuted weight + block-sum matmul -------
    for b in range(bt):
        blk = pool2[b * 56:(b + 1) * 56, :]                        # (56,32)
        prod = jnp.concatenate([blk] * 10, axis=-1) * wfl_ref[...]  # (56,320)
        logits = jnp.sum(jnp.dot(prod, ssum_ref[...],
                                 preferred_element_type=jnp.float32),
                         axis=0, keepdims=True) + bf_ref[...]       # (1,10)
        o_ref[0, b:b + 1, :] = logits


def _fused_forward(x4, kp, bt):
    npad = x4.shape[0]
    g = npad // bt
    out = pl.pallas_call(
        _detector_kernel,
        out_shape=jax.ShapeDtypeStruct((g, bt, 10), jnp.float32),
        grid=(g,),
        in_specs=[
            pl.BlockSpec((bt, 9, 9, 16), lambda n: (n, 0, 0, 0)),
            pl.BlockSpec((144, 256), lambda n: (0, 0)),
            pl.BlockSpec((1, 256), lambda n: (0, 0)),
            pl.BlockSpec((1, 256), lambda n: (0, 0)),
            pl.BlockSpec((576, 128), lambda n: (0, 0)),
            pl.BlockSpec((1, 128), lambda n: (0, 0)),
            pl.BlockSpec((1, 128), lambda n: (0, 0)),
            pl.BlockSpec((56, 320), lambda n: (0, 0)),
            pl.BlockSpec((320, 10), lambda n: (0, 0)),
            pl.BlockSpec((1, 10), lambda n: (0, 0)),
        ],
        out_specs=pl.BlockSpec((1, bt, 10), lambda n: (n, 0, 0)),
        scratch_shapes=[
            pltpu.VMEM((bt * 56, 144), jnp.float32),   # layer-1 patches
            pltpu.VMEM((bt * 56, 576), jnp.float32),   # layer-2 patches
            pltpu.VMEM((bt, 9, 9, 64), jnp.float32),   # pooled layer-1 grid
        ],
        compiler_params=pltpu.CompilerParams(
            dimension_semantics=("parallel",)),
    )(x4, kp["w1"], kp["s1"], kp["t1"], kp["w2"], kp["s2"], kp["t2"],
      kp["wfl"], kp["ssum"], kp["bf"])
    return out.reshape(npad, 10)


# ----------------------------- parameter prep -------------------------------

def fold_bn(conv_b, gamma, beta, mean, var):
    scale = gamma / jnp.sqrt(var + EPS)
    shift = (conv_b - mean) * scale + beta
    return scale, shift


def prepare_params(p):
    """One-time transform of PyTorch-style params into kernel-ready arrays."""
    s1, t1 = fold_bn(p["b1"], p["g1"], p["be1"], p["m1"], p["v1"])
    s2, t2 = fold_bn(p["b2"], p["g2"], p["be2"], p["m2"], p["v2"])
    w1big = jnp.where(jnp.asarray(_W1_MSK),
                      p["w1"].reshape(-1)[jnp.asarray(_W1_IDX)], 0.0)
    w2big = jnp.where(jnp.asarray(_W2_MSK),
                      p["w2"].reshape(-1)[jnp.asarray(_W2_IDX)], 0.0)
    # fc weight permuted to the kernel's (row = 8*i + j, lane = d*32 + c)
    # layout -> no runtime NCHW flatten/transpose.
    wfl = p["wf"].reshape(32, 7, 7, 10).transpose(1, 2, 3, 0).reshape(7, 7, 320)
    wfl = jnp.pad(wfl, ((0, 0), (0, 1), (0, 0))).reshape(56, 320)
    return {
        "w1": w1big.astype(jnp.float32),
        "s1": jnp.tile(s1, 16).reshape(1, 256).astype(jnp.float32),
        "t1": jnp.tile(t1, 16).reshape(1, 256).astype(jnp.float32),
        "w2": w2big.astype(jnp.float32),
        "s2": jnp.tile(s2, 4).reshape(1, 128).astype(jnp.float32),
        "t2": jnp.tile(t2, 4).reshape(1, 128).astype(jnp.float32),
        "wfl": wfl.astype(jnp.float32),
        "ssum": jnp.asarray(_S_SUM, jnp.float32),
        "bf": p["bf"].reshape(1, 10).astype(jnp.float32),
    }


def _batch_tile(n):
    # >=2 grid steps whenever n>=2 (keeps both v7x TensorCores busy); cap the
    # tile so scratch / register pressure per step stays small.
    if n >= 8:
        return 4
    return max(1, n // 2)


# ------------------------------ forward passes -------------------------------

@jax.jit
def detector_forward(x_nchw, kp):
    assert x_nchw.shape[1:] == (1, 28, 28), "Detector expects (N, 1, 28, 28)"
    n = x_nchw.shape[0]
    # NCHW -> HW, pad by 4 (conv pad 2 + pooling-window alignment), then
    # space-to-depth 4x4 -> the 9x9x16 coarse grid the kernel consumes.
    x = jnp.transpose(x_nchw, (0, 2, 3, 1))[..., 0]           # (N, 28, 28)
    xp = jnp.pad(x, ((0, 0), (4, 4), (4, 4)))                 # (N, 36, 36)
    x4 = xp.reshape(n, 9, 4, 9, 4).transpose(0, 1, 3, 2, 4).reshape(n, 9, 9, 16)

    bt = _batch_tile(n)
    npad = ((n + bt - 1) // bt) * bt
    if npad != n:
        x4 = jnp.pad(x4, ((0, npad - n), (0, 0), (0, 0), (0, 0)))
    out = _fused_forward(x4.astype(jnp.float32), kp, bt)
    return out[:n]


# ------------------------- pure-JAX reference & init -------------------------

def im2col(x, k=5, pad=2):
    N, H, W, C = x.shape
    xp = jnp.pad(x, ((0, 0), (pad, pad), (pad, pad), (0, 0)))
    cols = []
    for di in range(k):
        for dj in range(k):
            cols.append(xp[:, di:di + H, dj:dj + W, :])
    p = jnp.stack(cols, axis=3)
    return p.reshape(N, H * W, k * k * C)


def init_params(key):
    ks = jax.random.split(key, 14)
    p = {}
    p["w1"] = 0.1 * jax.random.normal(ks[0], (5, 5, 1, 16), jnp.float32)
    p["b1"] = 0.1 * jax.random.normal(ks[1], (16,), jnp.float32)
    p["g1"] = 1.0 + 0.1 * jax.random.normal(ks[2], (16,), jnp.float32)
    p["be1"] = 0.1 * jax.random.normal(ks[3], (16,), jnp.float32)
    p["m1"] = 0.1 * jax.random.normal(ks[4], (16,), jnp.float32)
    p["v1"] = 1.0 + 0.1 * jax.random.uniform(ks[5], (16,), jnp.float32)
    p["w2"] = 0.05 * jax.random.normal(ks[6], (5, 5, 16, 32), jnp.float32)
    p["b2"] = 0.1 * jax.random.normal(ks[7], (32,), jnp.float32)
    p["g2"] = 1.0 + 0.1 * jax.random.normal(ks[8], (32,), jnp.float32)
    p["be2"] = 0.1 * jax.random.normal(ks[9], (32,), jnp.float32)
    p["m2"] = 0.1 * jax.random.normal(ks[10], (32,), jnp.float32)
    p["v2"] = 1.0 + 0.1 * jax.random.uniform(ks[11], (32,), jnp.float32)
    p["wf"] = 0.05 * jax.random.normal(ks[12], (7 * 7 * 32, 10), jnp.float32)
    p["bf"] = 0.1 * jax.random.normal(ks[13], (10,), jnp.float32)
    return p


def detector_reference(x_nchw, p):
    # pure-JAX reference (PyTorch semantics, eval-mode BN)
    N = x_nchw.shape[0]
    x = jnp.transpose(x_nchw, (0, 2, 3, 1))

    def layer(x, w, b, g, be, m, v, cout):
        s, t = fold_bn(b, g, be, m, v)
        H = x.shape[1]
        pa = im2col(x)
        o = jnp.einsum("nmk,kc->nmc", pa, w.reshape(-1, cout),
                       precision=jax.lax.Precision.HIGHEST)
        o = jnp.maximum(o * s + t, 0.0).reshape(N, H, H, cout)
        return jnp.max(o.reshape(N, H // 2, 2, H // 2, 2, cout), axis=(2, 4))

    o1 = layer(x, p["w1"], p["b1"], p["g1"], p["be1"], p["m1"], p["v1"], 16)
    o2 = layer(o1, p["w2"], p["b2"], p["g2"], p["be2"], p["m2"], p["v2"], 32)
    flat = jnp.transpose(o2, (0, 3, 1, 2)).reshape(N, -1)
    return jnp.dot(flat, p["wf"],
                   precision=jax.lax.Precision.HIGHEST) + p["bf"]


if __name__ == "__main__":
    key = jax.random.PRNGKey(0)
    kx, kparams_key = jax.random.split(key)
    x = jax.random.normal(kx, (2, 1, 28, 28), jnp.float32)
    params = init_params(kparams_key)
    kernel_params = prepare_params(params)        # one-time weight transform

    out = detector_forward(x, kernel_params)
    out = jax.block_until_ready(out)
    assert out.shape == (2, 10) and out.dtype == jnp.float32

    ref = detector_reference(x, params)
    diff = float(jnp.max(jnp.abs(out - ref)))
    assert bool(jnp.allclose(out, ref, atol=1e-2, rtol=1e-2)), (
        "max abs diff = %g" % diff)

    print("KERNEL_OK")
</pallas_src>

<mosaic_0001>
module attributes {stable_mosaic.version = 11 : i64} {
  func.func @_detector_kernel(%arg0: i32, %arg1: memref<1x9x9x16xf32, #tpu.memory_space<vmem>>, %arg2: memref<144x256xf32, #tpu.memory_space<vmem>>, %arg3: memref<1x256xf32, #tpu.memory_space<vmem>>, %arg4: memref<1x256xf32, #tpu.memory_space<vmem>>, %arg5: memref<576x128xf32, #tpu.memory_space<vmem>>, %arg6: memref<1x128xf32, #tpu.memory_space<vmem>>, %arg7: memref<1x128xf32, #tpu.memory_space<vmem>>, %arg8: memref<56x320xf32, #tpu.memory_space<vmem>>, %arg9: memref<320x10xf32, #tpu.memory_space<vmem>>, %arg10: memref<1x10xf32, #tpu.memory_space<vmem>>, %arg11: memref<1x1x10xf32, #tpu.memory_space<vmem>>, %arg12: memref<56x144xf32, #tpu.memory_space<vmem>>, %arg13: memref<56x576xf32, #tpu.memory_space<vmem>>, %arg14: memref<1x9x9x64xf32, #tpu.memory_space<vmem>>) attributes {dimension_semantics = [#tpu.dimension_semantics<parallel>], iteration_bounds = array<i64: 2>, scalar_prefetch = 0 : i64, scratch_operands = 3 : i64, tpu.core_type = #tpu.core_type<tc>, window_params = [{transform_indices = @transform_0, window_bounds = array<i64: 1, 9, 9, 16>}, {pipeline_mode = #tpu.pipeline_mode<synchronous>, transform_indices = @transform_1, window_bounds = array<i64: 144, 256>}, {pipeline_mode = #tpu.pipeline_mode<synchronous>, transform_indices = @transform_2, window_bounds = array<i64: 1, 256>}, {pipeline_mode = #tpu.pipeline_mode<synchronous>, transform_indices = @transform_3, window_bounds = array<i64: 1, 256>}, {pipeline_mode = #tpu.pipeline_mode<synchronous>, transform_indices = @transform_4, window_bounds = array<i64: 576, 128>}, {pipeline_mode = #tpu.pipeline_mode<synchronous>, transform_indices = @transform_5, window_bounds = array<i64: 1, 128>}, {pipeline_mode = #tpu.pipeline_mode<synchronous>, transform_indices = @transform_6, window_bounds = array<i64: 1, 128>}, {pipeline_mode = #tpu.pipeline_mode<synchronous>, transform_indices = @transform_7, window_bounds = array<i64: 56, 320>}, {pipeline_mode = #tpu.pipeline_mode<synchronous>, transform_indices = @transform_8, window_bounds = array<i64: 320, 10>}, {pipeline_mode = #tpu.pipeline_mode<synchronous>, transform_indices = @transform_9, window_bounds = array<i64: 1, 10>}, {transform_indices = @transform_10, window_bounds = array<i64: 1, 1, 10>}]} {
    %cst = arith.constant 0.000000e+00 : f32
    %0 = vector.broadcast %cst : f32 to vector<56x144xf32>
    %c0 = arith.constant 0 : index
    %c0_0 = arith.constant 0 : index
    %1 = vector.load %arg12[%c0, %c0_0] : memref<56x144xf32, #tpu.memory_space<vmem>>, vector<56x144xf32>
    tpu.vector_store %arg12[%c0, %c0_0], %0 {strides = array<i32>} : memref<56x144xf32, #tpu.memory_space<vmem>>, vector<56x144xf32>,
    %cst_1 = arith.constant 0.000000e+00 : f32
    %2 = vector.broadcast %cst_1 : f32 to vector<56x576xf32>
    %c0_2 = arith.constant 0 : index
    %c0_3 = arith.constant 0 : index
    %3 = vector.load %arg13[%c0_2, %c0_3] : memref<56x576xf32, #tpu.memory_space<vmem>>, vector<56x576xf32>
    tpu.vector_store %arg13[%c0_2, %c0_3], %2 {strides = array<i32>} : memref<56x576xf32, #tpu.memory_space<vmem>>, vector<56x576xf32>,
    %cst_4 = arith.constant 0.000000e+00 : f32
    %4 = vector.broadcast %cst_4 : f32 to vector<1x9x9x64xf32>
    %c0_5 = arith.constant 0 : index
    %c0_6 = arith.constant 0 : index
    %c0_7 = arith.constant 0 : index
    %c0_8 = arith.constant 0 : index
    %5 = vector.load %arg14[%c0_5, %c0_6, %c0_7, %c0_8] : memref<1x9x9x64xf32, #tpu.memory_space<vmem>>, vector<1x9x9x64xf32>
    tpu.vector_store %arg14[%c0_5, %c0_6, %c0_7, %c0_8], %4 {strides = array<i32>} : memref<1x9x9x64xf32, #tpu.memory_space<vmem>>, vector<1x9x9x64xf32>,
    %c0_9 = arith.constant 0 : index
    %c0_10 = arith.constant 0 : index
    %c0_11 = arith.constant 0 : index
    %c0_12 = arith.constant 0 : index
    %6 = vector.load %arg1[%c0_9, %c0_10, %c0_11, %c0_12] : memref<1x9x9x16xf32, #tpu.memory_space<vmem>>, vector<1x1x7x16xf32>
    %7 = vector.shape_cast %6 : vector<1x1x7x16xf32> to vector<7x16xf32>
    %c0_13 = arith.constant 0 : index
    %c0_14 = arith.constant 0 : index
    %c1 = arith.constant 1 : index
    %c0_15 = arith.constant 0 : index
    %8 = vector.load %arg1[%c0_13, %c0_14, %c1, %c0_15] : memref<1x9x9x16xf32, #tpu.memory_space<vmem>>, vector<1x1x7x16xf32>
    %9 = vector.shape_cast %8 : vector<1x1x7x16xf32> to vector<7x16xf32>
    %c0_16 = arith.constant 0 : index
    %c0_17 = arith.constant 0 : index
    %c2 = arith.constant 2 : index
    %c0_18 = arith.constant 0 : index
    %10 = vector.load %arg1[%c0_16, %c0_17, %c2, %c0_18] : memref<1x9x9x16xf32, #tpu.memory_space<vmem>>, vector<1x1x7x16xf32>
    %11 = vector.shape_cast %10 : vector<1x1x7x16xf32> to vector<7x16xf32>
    %c0_19 = arith.constant 0 : index
    %c1_20 = arith.constant 1 : index
    %c0_21 = arith.constant 0 : index
    %c0_22 = arith.constant 0 : index
    %12 = vector.load %arg1[%c0_19, %c1_20, %c0_21, %c0_22] : memref<1x9x9x16xf32, #tpu.memory_space<vmem>>, vector<1x1x7x16xf32>
    %13 = vector.shape_cast %12 : vector<1x1x7x16xf32> to vector<7x16xf32>
    %c0_23 = arith.constant 0 : index
    %c1_24 = arith.constant 1 : index
    %c1_25 = arith.constant 1 : index
    %c0_26 = arith.constant 0 : index
    %14 = vector.load %arg1[%c0_23, %c1_24, %c1_25, %c0_26] : memref<1x9x9x16xf32, #tpu.memory_space<vmem>>, vector<1x1x7x16xf32>
    %15 = vector.shape_cast %14 : vector<1x1x7x16xf32> to vector<7x16xf32>
    %c0_27 = arith.constant 0 : index
    %c1_28 = arith.constant 1 : index
    %c2_29 = arith.constant 2 : index
    %c0_30 = arith.constant 0 : index
    %16 = vector.load %arg1[%c0_27, %c1_28, %c2_29, %c0_30] : memref<1x9x9x16xf32, #tpu.memory_space<vmem>>, vector<1x1x7x16xf32>
    %17 = vector.shape_cast %16 : vector<1x1x7x16xf32> to vector<7x16xf32>
    %c0_31 = arith.constant 0 : index
    %c2_32 = arith.constant 2 : index
    %c0_33 = arith.constant 0 : index
    %c0_34 = arith.constant 0 : index
    %18 = vector.load %arg1[%c0_31, %c2_32, %c0_33, %c0_34] : memref<1x9x9x16xf32, #tpu.memory_space<vmem>>, vector<1x1x7x16xf32>
    %19 = vector.shape_cast %18 : vector<1x1x7x16xf32> to vector<7x16xf32>
    %c0_35 = arith.constant 0 : index
    %c2_36 = arith.constant 2 : index
    %c1_37 = arith.constant 1 : index
    %c0_38 = arith.constant 0 : index
    %20 = vector.load %arg1[%c0_35, %c2_36, %c1_37, %c0_38] : memref<1x9x9x16xf32, #tpu.memory_space<vmem>>, vector<1x1x7x16xf32>
    %21 = vector.shape_cast %20 : vector<1x1x7x16xf32> to vector<7x16xf32>
    %c0_39 = arith.constant 0 : index
    %c2_40 = arith.constant 2 : index
    %c2_41 = arith.constant 2 : index
    %c0_42 = arith.constant 0 : index
    %22 = vector.load %arg1[%c0_39, %c2_40, %c2_41, %c0_42] : memref<1x9x9x16xf32, #tpu.memory_space<vmem>>, vector<1x1x7x16xf32>
    %23 = vector.shape_cast %22 : vector<1x1x7x16xf32> to vector<7x16xf32>
    %24 = tpu.concatenate %7, %9, %11, %13, %15, %17, %19, %21, %23 in 1 : vector<7x16xf32>, vector<7x16xf32>, vector<7x16xf32>, vector<7x16xf32>, vector<7x16xf32>, vector<7x16xf32>, vector<7x16xf32>, vector<7x16xf32>, vector<7x16xf32> -> vector<7x144xf32>
    %c0_43 = arith.constant 0 : index
    %c0_44 = arith.constant 0 : index
    %25 = vector.load %arg12[%c0_43, %c0_44] : memref<56x144xf32, #tpu.memory_space<vmem>>, vector<7x144xf32>
    tpu.vector_store %arg12[%c0_43, %c0_44], %24 {strides = array<i32>} : memref<56x144xf32, #tpu.memory_space<vmem>>, vector<7x144xf32>,
    %c0_45 = arith.constant 0 : index
    %c1_46 = arith.constant 1 : index
    %c0_47 = arith.constant 0 : index
    %c0_48 = arith.constant 0 : index
    %26 = vector.load %arg1[%c0_45, %c1_46, %c0_47, %c0_48] : memref<1x9x9x16xf32, #tpu.memory_space<vmem>>, vector<1x1x7x16xf32>
    %27 = vector.shape_cast %26 : vector<1x1x7x16xf32> to vector<7x16xf32>
    %c0_49 = arith.constant 0 : index
    %c1_50 = arith.constant 1 : index
    %c1_51 = arith.constant 1 : index
    %c0_52 = arith.constant 0 : index
    %28 = vector.load %arg1[%c0_49, %c1_50, %c1_51, %c0_52] : memref<1x9x9x16xf32, #tpu.memory_space<vmem>>, vector<1x1x7x16xf32>
    %29 = vector.shape_cast %28 : vector<1x1x7x16xf32> to vector<7x16xf32>
    %c0_53 = arith.constant 0 : index
    %c1_54 = arith.constant 1 : index
    %c2_55 = arith.constant 2 : index
    %c0_56 = arith.constant 0 : index
    %30 = vector.load %arg1[%c0_53, %c1_54, %c2_55, %c0_56] : memref<1x9x9x16xf32, #tpu.memory_space<vmem>>, vector<1x1x7x16xf32>
    %31 = vector.shape_cast %30 : vector<1x1x7x16xf32> to vector<7x16xf32>
    %c0_57 = arith.constant 0 : index
    %c2_58 = arith.constant 2 : index
    %c0_59 = arith.constant 0 : index
    %c0_60 = arith.constant 0 : index
    %32 = vector.load %arg1[%c0_57, %c2_58, %c0_59, %c0_60] : memref<1x9x9x16xf32, #tpu.memory_space<vmem>>, vector<1x1x7x16xf32>
    %33 = vector.shape_cast %32 : vector<1x1x7x16xf32> to vector<7x16xf32>
    %c0_61 = arith.constant 0 : index
    %c2_62 = arith.constant 2 : index
    %c1_63 = arith.constant 1 : index
    %c0_64 = arith.constant 0 : index
    %34 = vector.load %arg1[%c0_61, %c2_62, %c1_63, %c0_64] : memref<1x9x9x16xf32, #tpu.memory_space<vmem>>, vector<1x1x7x16xf32>
    %35 = vector.shape_cast %34 : vector<1x1x7x16xf32> to vector<7x16xf32>
    %c0_65 = arith.constant 0 : index
    %c2_66 = arith.constant 2 : index
    %c2_67 = arith.constant 2 : index
    %c0_68 = arith.constant 0 : index
    %36 = vector.load %arg1[%c0_65, %c2_66, %c2_67, %c0_68] : memref<1x9x9x16xf32, #tpu.memory_space<vmem>>, vector<1x1x7x16xf32>
    %37 = vector.shape_cast %36 : vector<1x1x7x16xf32> to vector<7x16xf32>
    %c0_69 = arith.constant 0 : index
    %c3 = arith.constant 3 : index
    %c0_70 = arith.constant 0 : index
    %c0_71 = arith.constant 0 : index
    %38 = vector.load %arg1[%c0_69, %c3, %c0_70, %c0_71] : memref<1x9x9x16xf32, #tpu.memory_space<vmem>>, vector<1x1x7x16xf32>
    %39 = vector.shape_cast %38 : vector<1x1x7x16xf32> to vector<7x16xf32>
    %c0_72 = arith.constant 0 : index
    %c3_73 = arith.constant 3 : index
    %c1_74 = arith.constant 1 : index
    %c0_75 = arith.constant 0 : index
    %40 = vector.load %arg1[%c0_72, %c3_73, %c1_74, %c0_75] : memref<1x9x9x16xf32, #tpu.memory_space<vmem>>, vector<1x1x7x16xf32>
    %41 = vector.shape_cast %40 : vector<1x1x7x16xf32> to vector<7x16xf32>
    %c0_76 = arith.constant 0 : index
    %c3_77 = arith.constant 3 : index
    %c2_78 = arith.constant 2 : index
    %c0_79 = arith.constant 0 : index
    %42 = vector.load %arg1[%c0_76, %c3_77, %c2_78, %c0_79] : memref<1x9x9x16xf32, #tpu.memory_space<vmem>>, vector<1x1x7x16xf32>
    %43 = vector.shape_cast %42 : vector<1x1x7x16xf32> to vector<7x16xf32>
    %44 = tpu.concatenate %27, %29, %31, %33, %35, %37, %39, %41, %43 in 1 : vector<7x16xf32>, vector<7x16xf32>, vector<7x16xf32>, vector<7x16xf32>, vector<7x16xf32>, vector<7x16xf32>, vector<7x16xf32>, vector<7x16xf32>, vector<7x16xf32> -> vector<7x144xf32>
    %c8 = arith.constant 8 : index
    %c0_80 = arith.constant 0 : index
    %45 = vector.load %arg12[%c8, %c0_80] : memref<56x144xf32, #tpu.memory_space<vmem>>, vector<7x144xf32>
    tpu.vector_store %arg12[%c8, %c0_80], %44 {strides = array<i32>} : memref<56x144xf32, #tpu.memory_space<vmem>>, vector<7x144xf32>,
    %c0_81 = arith.constant 0 : index
    %c2_82 = arith.constant 2 : index
    %c0_83 = arith.constant 0 : index
    %c0_84 = arith.constant 0 : index
    %46 = vector.load %arg1[%c0_81, %c2_82, %c0_83, %c0_84] : memref<1x9x9x16xf32, #tpu.memory_space<vmem>>, vector<1x1x7x16xf32>
    %47 = vector.shape_cast %46 : vector<1x1x7x16xf32> to vector<7x16xf32>
    %c0_85 = arith.constant 0 : index
    %c2_86 = arith.constant 2 : index
    %c1_87 = arith.constant 1 : index
    %c0_88 = arith.constant 0 : index
    %48 = vector.load %arg1[%c0_85, %c2_86, %c1_87, %c0_88] : memref<1x9x9x16xf32, #tpu.memory_space<vmem>>, vector<1x1x7x16xf32>
    %49 = vector.shape_cast %48 : vector<1x1x7x16xf32> to vector<7x16xf32>
    %c0_89 = arith.constant 0 : index
    %c2_90 = arith.constant 2 : index
    %c2_91 = arith.constant 2 : index
    %c0_92 = arith.constant 0 : index
    %50 = vector.load %arg1[%c0_89, %c2_90, %c2_91, %c0_92] : memref<1x9x9x16xf32, #tpu.memory_space<vmem>>, vector<1x1x7x16xf32>
    %51 = vector.shape_cast %50 : vector<1x1x7x16xf32> to vector<7x16xf32>
    %c0_93 = arith.constant 0 : index
    %c3_94 = arith.constant 3 : index
    %c0_95 = arith.constant 0 : index
    %c0_96 = arith.constant 0 : index
    %52 = vector.load %arg1[%c0_93, %c3_94, %c0_95, %c0_96] : memref<1x9x9x16xf32, #tpu.memory_space<vmem>>, vector<1x1x7x16xf32>
    %53 = vector.shape_cast %52 : vector<1x1x7x16xf32> to vector<7x16xf32>
    %c0_97 = arith.constant 0 : index
    %c3_98 = arith.constant 3 : index
    %c1_99 = arith.constant 1 : index
    %c0_100 = arith.constant 0 : index
    %54 = vector.load %arg1[%c0_97, %c3_98, %c1_99, %c0_100] : memref<1x9x9x16xf32, #tpu.memory_space<vmem>>, vector<1x1x7x16xf32>
    %55 = vector.shape_cast %54 : vector<1x1x7x16xf32> to vector<7x16xf32>
    %c0_101 = arith.constant 0 : index
    %c3_102 = arith.constant 3 : index
    %c2_103 = arith.constant 2 : index
    %c0_104 = arith.constant 0 : index
    %56 = vector.load %arg1[%c0_101, %c3_102, %c2_103, %c0_104] : memref<1x9x9x16xf32, #tpu.memory_space<vmem>>, vector<1x1x7x16xf32>
    %57 = vector.shape_cast %56 : vector<1x1x7x16xf32> to vector<7x16xf32>
    %c0_105 = arith.constant 0 : index
    %c4 = arith.constant 4 : index
    %c0_106 = arith.constant 0 : index
    %c0_107 = arith.constant 0 : index
    %58 = vector.load %arg1[%c0_105, %c4, %c0_106, %c0_107] : memref<1x9x9x16xf32, #tpu.memory_space<vmem>>, vector<1x1x7x16xf32>
    %59 = vector.shape_cast %58 : vector<1x1x7x16xf32> to vector<7x16xf32>
    %c0_108 = arith.constant 0 : index
    %c4_109 = arith.constant 4 : index
    %c1_110 = arith.constant 1 : index
    %c0_111 = arith.constant 0 : index
    %60 = vector.load %arg1[%c0_108, %c4_109, %c1_110, %c0_111] : memref<1x9x9x16xf32, #tpu.memory_space<vmem>>, vector<1x1x7x16xf32>
    %61 = vector.shape_cast %60 : vector<1x1x7x16xf32> to vector<7x16xf32>
    %c0_112 = arith.constant 0 : index
    %c4_113 = arith.constant 4 : index
    %c2_114 = arith.constant 2 : index
    %c0_115 = arith.constant 0 : index
    %62 = vector.load %arg1[%c0_112, %c4_113, %c2_114, %c0_115] : memref<1x9x9x16xf32, #tpu.memory_space<vmem>>, vector<1x1x7x16xf32>
    %63 = vector.shape_cast %62 : vector<1x1x7x16xf32> to vector<7x16xf32>
    %64 = tpu.concatenate %47, %49, %51, %53, %55, %57, %59, %61, %63 in 1 : vector<7x16xf32>, vector<7x16xf32>, vector<7x16xf32>, vector<7x16xf32>, vector<7x16xf32>, vector<7x16xf32>, vector<7x16xf32>, vector<7x16xf32>, vector<7x16xf32> -> vector<7x144xf32>
    %c16 = arith.constant 16 : index
    %c0_116 = arith.constant 0 : index
    %65 = vector.load %arg12[%c16, %c0_116] : memref<56x144xf32, #tpu.memory_space<vmem>>, vector<7x144xf32>
    tpu.vector_store %arg12[%c16, %c0_116], %64 {strides = array<i32>} : memref<56x144xf32, #tpu.memory_space<vmem>>, vector<7x144xf32>,
    %c0_117 = arith.constant 0 : index
    %c3_118 = arith.constant 3 : index
    %c0_119 = arith.constant 0 : index
    %c0_120 = arith.constant 0 : index
    %66 = vector.load %arg1[%c0_117, %c3_118, %c0_119, %c0_120] : memref<1x9x9x16xf32, #tpu.memory_space<vmem>>, vector<1x1x7x16xf32>
    %67 = vector.shape_cast %66 : vector<1x1x7x16xf32> to vector<7x16xf32>
    %c0_121 = arith.constant 0 : index
    %c3_122 = arith.constant 3 : index
    %c1_123 = arith.constant 1 : index
    %c0_124 = arith.constant 0 : index
    %68 = vector.load %arg1[%c0_121, %c3_122, %c1_123, %c0_124] : memref<1x9x9x16xf32, #tpu.memory_space<vmem>>, vector<1x1x7x16xf32>
    %69 = vector.shape_cast %68 : vector<1x1x7x16xf32> to vector<7x16xf32>
    %c0_125 = arith.constant 0 : index
    %c3_126 = arith.constant 3 : index
    %c2_127 = arith.constant 2 : index
    %c0_128 = arith.constant 0 : index
    %70 = vector.load %arg1[%c0_125, %c3_126, %c2_127, %c0_128] : memref<1x9x9x16xf32, #tpu.memory_space<vmem>>, vector<1x1x7x16xf32>
    %71 = vector.shape_cast %70 : vector<1x1x7x16xf32> to vector<7x16xf32>
    %c0_129 = arith.constant 0 : index
    %c4_130 = arith.constant 4 : index
    %c0_131 = arith.constant 0 : index
    %c0_132 = arith.constant 0 : index
    %72 = vector.load %arg1[%c0_129, %c4_130, %c0_131, %c0_132] : memref<1x9x9x16xf32, #tpu.memory_space<vmem>>, vector<1x1x7x16xf32>
    %73 = vector.shape_cast %72 : vector<1x1x7x16xf32> to vector<7x16xf32>
    %c0_133 = arith.constant 0 : index
    %c4_134 = arith.constant 4 : index
    %c1_135 = arith.constant 1 : index
    %c0_136 = arith.constant 0 : index
    %74 = vector.load %arg1[%c0_133, %c4_134, %c1_135, %c0_136] : memref<1x9x9x16xf32, #tpu.memory_space<vmem>>, vector<1x1x7x16xf32>
    %75 = vector.shape_cast %74 : vector<1x1x7x16xf32> to vector<7x16xf32>
    %c0_137 = arith.constant 0 : index
    %c4_138 = arith.constant 4 : index
    %c2_139 = arith.constant 2 : index
    %c0_140 = arith.constant 0 : index
    %76 = vector.load %arg1[%c0_137, %c4_138, %c2_139, %c0_140] : memref<1x9x9x16xf32, #tpu.memory_space<vmem>>, vector<1x1x7x16xf32>
    %77 = vector.shape_cast %76 : vector<1x1x7x16xf32> to vector<7x16xf32>
    %c0_141 = arith.constant 0 : index
    %c5 = arith.constant 5 : index
    %c0_142 = arith.constant 0 : index
    %c0_143 = arith.constant 0 : index
    %78 = vector.load %arg1[%c0_141, %c5, %c0_142, %c0_143] : memref<1x9x9x16xf32, #tpu.memory_space<vmem>>, vector<1x1x7x16xf32>
    %79 = vector.shape_cast %78 : vector<1x1x7x16xf32> to vector<7x16xf32>
    %c0_144 = arith.constant 0 : index
    %c5_145 = arith.constant 5 : index
    %c1_146 = arith.constant 1 : index
    %c0_147 = arith.constant 0 : index
    %80 = vector.load %arg1[%c0_144, %c5_145, %c1_146, %c0_147] : memref<1x9x9x16xf32, #tpu.memory_space<vmem>>, vector<1x1x7x16xf32>
    %81 = vector.shape_cast %80 : vector<1x1x7x16xf32> to vector<7x16xf32>
    %c0_148 = arith.constant 0 : index
    %c5_149 = arith.constant 5 : index
    %c2_150 = arith.constant 2 : index
    %c0_151 = arith.constant 0 : index
    %82 = vector.load %arg1[%c0_148, %c5_149, %c2_150, %c0_151] : memref<1x9x9x16xf32, #tpu.memory_space<vmem>>, vector<1x1x7x16xf32>
    %83 = vector.shape_cast %82 : vector<1x1x7x16xf32> to vector<7x16xf32>
    %84 = tpu.concatenate %67, %69, %71, %73, %75, %77, %79, %81, %83 in 1 : vector<7x16xf32>, vector<7x16xf32>, vector<7x16xf32>, vector<7x16xf32>, vector<7x16xf32>, vector<7x16xf32>, vector<7x16xf32>, vector<7x16xf32>, vector<7x16xf32> -> vector<7x144xf32>
    %c24 = arith.constant 24 : index
    %c0_152 = arith.constant 0 : index
    %85 = vector.load %arg12[%c24, %c0_152] : memref<56x144xf32, #tpu.memory_space<vmem>>, vector<7x144xf32>
    tpu.vector_store %arg12[%c24, %c0_152], %84 {strides = array<i32>} : memref<56x144xf32, #tpu.memory_space<vmem>>, vector<7x144xf32>,
    %c0_153 = arith.constant 0 : index
    %c4_154 = arith.constant 4 : index
    %c0_155 = arith.constant 0 : index
    %c0_156 = arith.constant 0 : index
    %86 = vector.load %arg1[%c0_153, %c4_154, %c0_155, %c0_156] : memref<1x9x9x16xf32, #tpu.memory_space<vmem>>, vector<1x1x7x16xf32>
    %87 = vector.shape_cast %86 : vector<1x1x7x16xf32> to vector<7x16xf32>
    %c0_157 = arith.constant 0 : index
    %c4_158 = arith.constant 4 : index
    %c1_159 = arith.constant 1 : index
    %c0_160 = arith.constant 0 : index
    %88 = vector.load %arg1[%c0_157, %c4_158, %c1_159, %c0_160] : memref<1x9x9x16xf32, #tpu.memory_space<vmem>>, vector<1x1x7x16xf32>
    %89 = vector.shape_cast %88 : vector<1x1x7x16xf32> to vector<7x16xf32>
    %c0_161 = arith.constant 0 : index
    %c4_162 = arith.constant 4 : index
    %c2_163 = arith.constant 2 : index
    %c0_164 = arith.constant 0 : index
    %90 = vector.load %arg1[%c0_161, %c4_162, %c2_163, %c0_164] : memref<1x9x9x16xf32, #tpu.memory_space<vmem>>, vector<1x1x7x16xf32>
    %91 = vector.shape_cast %90 : vector<1x1x7x16xf32> to vector<7x16xf32>
    %c0_165 = arith.constant 0 : index
    %c5_166 = arith.constant 5 : index
    %c0_167 = arith.constant 0 : index
    %c0_168 = arith.constant 0 : index
    %92 = vector.load %arg1[%c0_165, %c5_166, %c0_167, %c0_168] : memref<1x9x9x16xf32, #tpu.memory_space<vmem>>, vector<1x1x7x16xf32>
    %93 = vector.shape_cast %92 : vector<1x1x7x16xf32> to vector<7x16xf32>
    %c0_169 = arith.constant 0 : index
    %c5_170 = arith.constant 5 : index
    %c1_171 = arith.constant 1 : index
    %c0_172 = arith.constant 0 : index
    %94 = vector.load %arg1[%c0_169, %c5_170, %c1_171, %c0_172] : memref<1x9x9x16xf32, #tpu.memory_space<vmem>>, vector<1x1x7x16xf32>
    %95 = vector.shape_cast %94 : vector<1x1x7x16xf32> to vector<7x16xf32>
    %c0_173 = arith.constant 0 : index
    %c5_174 = arith.constant 5 : index
    %c2_175 = arith.constant 2 : index
    %c0_176 = arith.constant 0 : index
    %96 = vector.load %arg1[%c0_173, %c5_174, %c2_175, %c0_176] : memref<1x9x9x16xf32, #tpu.memory_space<vmem>>, vector<1x1x7x16xf32>
    %97 = vector.shape_cast %96 : vector<1x1x7x16xf32> to vector<7x16xf32>
    %c0_177 = arith.constant 0 : index
    %c6 = arith.constant 6 : index
    %c0_178 = arith.constant 0 : index
    %c0_179 = arith.constant 0 : index
    %98 = vector.load %arg1[%c0_177, %c6, %c0_178, %c0_179] : memref<1x9x9x16xf32, #tpu.memory_space<vmem>>, vector<1x1x7x16xf32>
    %99 = vector.shape_cast %98 : vector<1x1x7x16xf32> to vector<7x16xf32>
    %c0_180 = arith.constant 0 : index
    %c6_181 = arith.constant 6 : index
    %c1_182 = arith.constant 1 : index
    %c0_183 = arith.constant 0 : index
    %100 = vector.load %arg1[%c0_180, %c6_181, %c1_182, %c0_183] : memref<1x9x9x16xf32, #tpu.memory_space<vmem>>, vector<1x1x7x16xf32>
    %101 = vector.shape_cast %100 : vector<1x1x7x16xf32> to vector<7x16xf32>
    %c0_184 = arith.constant 0 : index
    %c6_185 = arith.constant 6 : index
    %c2_186 = arith.constant 2 : index
    %c0_187 = arith.constant 0 : index
    %102 = vector.load %arg1[%c0_184, %c6_185, %c2_186, %c0_187] : memref<1x9x9x16xf32, #tpu.memory_space<vmem>>, vector<1x1x7x16xf32>
    %103 = vector.shape_cast %102 : vector<1x1x7x16xf32> to vector<7x16xf32>
    %104 = tpu.concatenate %87, %89, %91, %93, %95, %97, %99, %101, %103 in 1 : vector<7x16xf32>, vector<7x16xf32>, vector<7x16xf32>, vector<7x16xf32>, vector<7x16xf32>, vector<7x16xf32>, vector<7x16xf32>, vector<7x16xf32>, vector<7x16xf32> -> vector<7x144xf32>
    %c32 = arith.constant 32 : index
    %c0_188 = arith.constant 0 : index
    %105 = vector.load %arg12[%c32, %c0_188] : memref<56x144xf32, #tpu.memory_space<vmem>>, vector<7x144xf32>
    tpu.vector_store %arg12[%c32, %c0_188], %104 {strides = array<i32>} : memref<56x144xf32, #tpu.memory_space<vmem>>, vector<7x144xf32>,
    %c0_189 = arith.constant 0 : index
    %c5_190 = arith.constant 5 : index
    %c0_191 = arith.constant 0 : index
    %c0_192 = arith.constant 0 : index
    %106 = vector.load %arg1[%c0_189, %c5_190, %c0_191, %c0_192] : memref<1x9x9x16xf32, #tpu.memory_space<vmem>>, vector<1x1x7x16xf32>
    %107 = vector.shape_cast %106 : vector<1x1x7x16xf32> to vector<7x16xf32>
    %c0_193 = arith.constant 0 : index
    %c5_194 = arith.constant 5 : index
    %c1_195 = arith.constant 1 : index
    %c0_196 = arith.constant 0 : index
    %108 = vector.load %arg1[%c0_193, %c5_194, %c1_195, %c0_196] : memref<1x9x9x16xf32, #tpu.memory_space<vmem>>, vector<1x1x7x16xf32>
    %109 = vector.shape_cast %108 : vector<1x1x7x16xf32> to vector<7x16xf32>
    %c0_197 = arith.constant 0 : index
    %c5_198 = arith.constant 5 : index
    %c2_199 = arith.constant 2 : index
    %c0_200 = arith.constant 0 : index
    %110 = vector.load %arg1[%c0_197, %c5_198, %c2_199, %c0_200] : memref<1x9x9x16xf32, #tpu.memory_space<vmem>>, vector<1x1x7x16xf32>
    %111 = vector.shape_cast %110 : vector<1x1x7x16xf32> to vector<7x16xf32>
    %c0_201 = arith.constant 0 : index
    %c6_202 = arith.constant 6 : index
    %c0_203 = arith.constant 0 : index
    %c0_204 = arith.constant 0 : index
    %112 = vector.load %arg1[%c0_201, %c6_202, %c0_203, %c0_204] : memref<1x9x9x16xf32, #tpu.memory_space<vmem>>, vector<1x1x7x16xf32>
    %113 = vector.shape_cast %112 : vector<1x1x7x16xf32> to vector<7x16xf32>
    %c0_205 = arith.constant 0 : index
    %c6_206 = arith.constant 6 : index
    %c1_207 = arith.constant 1 : index
    %c0_208 = arith.constant 0 : index
    %114 = vector.load %arg1[%c0_205, %c6_206, %c1_207, %c0_208] : memref<1x9x9x16xf32, #tpu.memory_space<vmem>>, vector<1x1x7x16xf32>
    %115 = vector.shape_cast %114 : vector<1x1x7x16xf32> to vector<7x16xf32>
    %c0_209 = arith.constant 0 : index
    %c6_210 = arith.constant 6 : index
    %c2_211 = arith.constant 2 : index
    %c0_212 = arith.constant 0 : index
    %116 = vector.load %arg1[%c0_209, %c6_210, %c2_211, %c0_212] : memref<1x9x9x16xf32, #tpu.memory_space<vmem>>, vector<1x1x7x16xf32>
    %117 = vector.shape_cast %116 : vector<1x1x7x16xf32> to vector<7x16xf32>
    %c0_213 = arith.constant 0 : index
    %c7 = arith.constant 7 : index
    %c0_214 = arith.constant 0 : index
    %c0_215 = arith.constant 0 : index
    %118 = vector.load %arg1[%c0_213, %c7, %c0_214, %c0_215] : memref<1x9x9x16xf32, #tpu.memory_space<vmem>>, vector<1x1x7x16xf32>
    %119 = vector.shape_cast %118 : vector<1x1x7x16xf32> to vector<7x16xf32>
    %c0_216 = arith.constant 0 : index
    %c7_217 = arith.constant 7 : index
    %c1_218 = arith.constant 1 : index
    %c0_219 = arith.constant 0 : index
    %120 = vector.load %arg1[%c0_216, %c7_217, %c1_218, %c0_219] : memref<1x9x9x16xf32, #tpu.memory_space<vmem>>, vector<1x1x7x16xf32>
    %121 = vector.shape_cast %120 : vector<1x1x7x16xf32> to vector<7x16xf32>
    %c0_220 = arith.constant 0 : index
    %c7_221 = arith.constant 7 : index
    %c2_222 = arith.constant 2 : index
    %c0_223 = arith.constant 0 : index
    %122 = vector.load %arg1[%c0_220, %c7_221, %c2_222, %c0_223] : memref<1x9x9x16xf32, #tpu.memory_space<vmem>>, vector<1x1x7x16xf32>
    %123 = vector.shape_cast %122 : vector<1x1x7x16xf32> to vector<7x16xf32>
    %124 = tpu.concatenate %107, %109, %111, %113, %115, %117, %119, %121, %123 in 1 : vector<7x16xf32>, vector<7x16xf32>, vector<7x16xf32>, vector<7x16xf32>, vector<7x16xf32>, vector<7x16xf32>, vector<7x16xf32>, vector<7x16xf32>, vector<7x16xf32> -> vector<7x144xf32>
    %c40 = arith.constant 40 : index
    %c0_224 = arith.constant 0 : index
    %125 = vector.load %arg12[%c40, %c0_224] : memref<56x144xf32, #tpu.memory_space<vmem>>, vector<7x144xf32>
    tpu.vector_store %arg12[%c40, %c0_224], %124 {strides = array<i32>} : memref<56x144xf32, #tpu.memory_space<vmem>>, vector<7x144xf32>,
    %c0_225 = arith.constant 0 : index
    %c6_226 = arith.constant 6 : index
    %c0_227 = arith.constant 0 : index
    %c0_228 = arith.constant 0 : index
    %126 = vector.load %arg1[%c0_225, %c6_226, %c0_227, %c0_228] : memref<1x9x9x16xf32, #tpu.memory_space<vmem>>, vector<1x1x7x16xf32>
    %127 = vector.shape_cast %126 : vector<1x1x7x16xf32> to vector<7x16xf32>
    %c0_229 = arith.constant 0 : index
    %c6_230 = arith.constant 6 : index
    %c1_231 = arith.constant 1 : index
    %c0_232 = arith.constant 0 : index
    %128 = vector.load %arg1[%c0_229, %c6_230, %c1_231, %c0_232] : memref<1x9x9x16xf32, #tpu.memory_space<vmem>>, vector<1x1x7x16xf32>
    %129 = vector.shape_cast %128 : vector<1x1x7x16xf32> to vector<7x16xf32>
    %c0_233 = arith.constant 0 : index
    %c6_234 = arith.constant 6 : index
    %c2_235 = arith.constant 2 : index
    %c0_236 = arith.constant 0 : index
    %130 = vector.load %arg1[%c0_233, %c6_234, %c2_235, %c0_236] : memref<1x9x9x16xf32, #tpu.memory_space<vmem>>, vector<1x1x7x16xf32>
    %131 = vector.shape_cast %130 : vector<1x1x7x16xf32> to vector<7x16xf32>
    %c0_237 = arith.constant 0 : index
    %c7_238 = arith.constant 7 : index
    %c0_239 = arith.constant 0 : index
    %c0_240 = arith.constant 0 : index
    %132 = vector.load %arg1[%c0_237, %c7_238, %c0_239, %c0_240] : memref<1x9x9x16xf32, #tpu.memory_space<vmem>>, vector<1x1x7x16xf32>
    %133 = vector.shape_cast %132 : vector<1x1x7x16xf32> to vector<7x16xf32>
    %c0_241 = arith.constant 0 : index
    %c7_242 = arith.constant 7 : index
    %c1_243 = arith.constant 1 : index
    %c0_244 = arith.constant 0 : index
    %134 = vector.load %arg1[%c0_241, %c7_242, %c1_243, %c0_244] : memref<1x9x9x16xf32, #tpu.memory_space<vmem>>, vector<1x1x7x16xf32>
    %135 = vector.shape_cast %134 : vector<1x1x7x16xf32> to vector<7x16xf32>
    %c0_245 = arith.constant 0 : index
    %c7_246 = arith.constant 7 : index
    %c2_247 = arith.constant 2 : index
    %c0_248 = arith.constant 0 : index
    %136 = vector.load %arg1[%c0_245, %c7_246, %c2_247, %c0_248] : memref<1x9x9x16xf32, #tpu.memory_space<vmem>>, vector<1x1x7x16xf32>
    %137 = vector.shape_cast %136 : vector<1x1x7x16xf32> to vector<7x16xf32>
    %c0_249 = arith.constant 0 : index
    %c8_250 = arith.constant 8 : index
    %c0_251 = arith.constant 0 : index
    %c0_252 = arith.constant 0 : index
    %138 = vector.load %arg1[%c0_249, %c8_250, %c0_251, %c0_252] : memref<1x9x9x16xf32, #tpu.memory_space<vmem>>, vector<1x1x7x16xf32>
    %139 = vector.shape_cast %138 : vector<1x1x7x16xf32> to vector<7x16xf32>
    %c0_253 = arith.constant 0 : index
    %c8_254 = arith.constant 8 : index
    %c1_255 = arith.constant 1 : index
    %c0_256 = arith.constant 0 : index
    %140 = vector.load %arg1[%c0_253, %c8_254, %c1_255, %c0_256] : memref<1x9x9x16xf32, #tpu.memory_space<vmem>>, vector<1x1x7x16xf32>
    %141 = vector.shape_cast %140 : vector<1x1x7x16xf32> to vector<7x16xf32>
    %c0_257 = arith.constant 0 : index
    %c8_258 = arith.constant 8 : index
    %c2_259 = arith.constant 2 : index
    %c0_260 = arith.constant 0 : index
    %142 = vector.load %arg1[%c0_257, %c8_258, %c2_259, %c0_260] : memref<1x9x9x16xf32, #tpu.memory_space<vmem>>, vector<1x1x7x16xf32>
    %143 = vector.shape_cast %142 : vector<1x1x7x16xf32> to vector<7x16xf32>
    %144 = tpu.concatenate %127, %129, %131, %133, %135, %137, %139, %141, %143 in 1 : vector<7x16xf32>, vector<7x16xf32>, vector<7x16xf32>, vector<7x16xf32>, vector<7x16xf32>, vector<7x16xf32>, vector<7x16xf32>, vector<7x16xf32>, vector<7x16xf32> -> vector<7x144xf32>
    %c48 = arith.constant 48 : index
    %c0_261 = arith.constant 0 : index
    %145 = vector.load %arg12[%c48, %c0_261] : memref<56x144xf32, #tpu.memory_space<vmem>>, vector<7x144xf32>
    tpu.vector_store %arg12[%c48, %c0_261], %144 {strides = array<i32>} : memref<56x144xf32, #tpu.memory_space<vmem>>, vector<7x144xf32>,
    %c0_262 = arith.constant 0 : index
    %c0_263 = arith.constant 0 : index
    %146 = vector.load %arg12[%c0_262, %c0_263] : memref<56x144xf32, #tpu.memory_space<vmem>>, vector<56x144xf32>
    %c0_264 = arith.constant 0 : index
    %c0_265 = arith.constant 0 : index
    %147 = vector.load %arg2[%c0_264, %c0_265] : memref<144x256xf32, #tpu.memory_space<vmem>>, vector<144x256xf32>
    %cst_266 = arith.constant dense<0.000000e+00> : vector<56x256xf32>
    %148 = tpu.matmul %146, %147, %cst_266 {dimension_numbers = #tpu.dot_dimension_numbers<[1], [0], [0], [1], [0, 0, 1, 1], [], []>} : vector<56x144xf32>, vector<144x256xf32>, vector<56x256xf32> -> vector<56x256xf32>
    %c0_267 = arith.constant 0 : index
    %c0_268 = arith.constant 0 : index
    %149 = vector.load %arg3[%c0_267, %c0_268] : memref<1x256xf32, #tpu.memory_space<vmem>>, vector<1x256xf32>
    %150 = vector.broadcast %149 : vector<1x256xf32> to vector<56x256xf32>
    %151 = arith.mulf %148, %150 : vector<56x256xf32>
    %c0_269 = arith.constant 0 : index
    %c0_270 = arith.constant 0 : index
    %152 = vector.load %arg4[%c0_269, %c0_270] : memref<1x256xf32, #tpu.memory_space<vmem>>, vector<1x256xf32>
    %153 = vector.broadcast %152 : vector<1x256xf32> to vector<56x256xf32>
    %154 = arith.addf %151, %153 : vector<56x256xf32>
    %cst_271 = arith.constant 0.000000e+00 : f32
    %155 = vector.broadcast %cst_271 : f32 to vector<56x256xf32>
    %156 = arith.maximumf %154, %155 : vector<56x256xf32>
    %157 = vector.extract_strided_slice %156 {offsets = [0, 0], sizes = [56, 64], strides = [1, 1]} : vector<56x256xf32> to vector<56x64xf32>
    %158 = vector.extract_strided_slice %156 {offsets = [0, 64], sizes = [56, 64], strides = [1, 1]} : vector<56x256xf32> to vector<56x64xf32>
    %159 = arith.maximumf %157, %158 : vector<56x64xf32>
    %160 = vector.extract_strided_slice %156 {offsets = [0, 128], sizes = [56, 64], strides = [1, 1]} : vector<56x256xf32> to vector<56x64xf32>
    %161 = vector.extract_strided_slice %156 {offsets = [0, 192], sizes = [56, 64], strides = [1, 1]} : vector<56x256xf32> to vector<56x64xf32>
    %162 = arith.maximumf %160, %161 : vector<56x64xf32>
    %163 = arith.maximumf %159, %162 : vector<56x64xf32>
    %164 = vector.extract_strided_slice %163 {offsets = [0, 0], sizes = [7, 64], strides = [1, 1]} : vector<56x64xf32> to vector<7x64xf32>
    %c0_272 = arith.constant 0 : index
    %c1_273 = arith.constant 1 : index
    %c1_274 = arith.constant 1 : index
    %c0_275 = arith.constant 0 : index
    %165 = vector.load %arg14[%c0_272, %c1_273, %c1_274, %c0_275] : memref<1x9x9x64xf32, #tpu.memory_space<vmem>>, vector<1x1x7x64xf32>
    %166 = vector.shape_cast %165 : vector<1x1x7x64xf32> to vector<7x64xf32>
    %167 = vector.shape_cast %164 : vector<7x64xf32> to vector<1x1x7x64xf32>
    tpu.vector_store %arg14[%c0_272, %c1_273, %c1_274, %c0_275], %167 {strides = array<i32>} : memref<1x9x9x64xf32, #tpu.memory_space<vmem>>, vector<1x1x7x64xf32>,
    %168 = vector.extract_strided_slice %163 {offsets = [8, 0], sizes = [7, 64], strides = [1, 1]} : vector<56x64xf32> to vector<7x64xf32>
    %c0_276 = arith.constant 0 : index
    %c2_277 = arith.constant 2 : index
    %c1_278 = arith.constant 1 : index
    %c0_279 = arith.constant 0 : index
    %169 = vector.load %arg14[%c0_276, %c2_277, %c1_278, %c0_279] : memref<1x9x9x64xf32, #tpu.memory_space<vmem>>, vector<1x1x7x64xf32>
    %170 = vector.shape_cast %169 : vector<1x1x7x64xf32> to vector<7x64xf32>
    %171 = vector.shape_cast %168 : vector<7x64xf32> to vector<1x1x7x64xf32>
    tpu.vector_store %arg14[%c0_276, %c2_277, %c1_278, %c0_279], %171 {strides = array<i32>} : memref<1x9x9x64xf32, #tpu.memory_space<vmem>>, vector<1x1x7x64xf32>,
    %172 = vector.extract_strided_slice %163 {offsets = [16, 0], sizes = [7, 64], strides = [1, 1]} : vector<56x64xf32> to vector<7x64xf32>
    %c0_280 = arith.constant 0 : index
    %c3_281 = arith.constant 3 : index
    %c1_282 = arith.constant 1 : index
    %c0_283 = arith.constant 0 : index
    %173 = vector.load %arg14[%c0_280, %c3_281, %c1_282, %c0_283] : memref<1x9x9x64xf32, #tpu.memory_space<vmem>>, vector<1x1x7x64xf32>
    %174 = vector.shape_cast %173 : vector<1x1x7x64xf32> to vector<7x64xf32>
    %175 = vector.shape_cast %172 : vector<7x64xf32> to vector<1x1x7x64xf32>
    tpu.vector_store %arg14[%c0_280, %c3_281, %c1_282, %c0_283], %175 {strides = array<i32>} : memref<1x9x9x64xf32, #tpu.memory_space<vmem>>, vector<1x1x7x64xf32>,
    %176 = vector.extract_strided_slice %163 {offsets = [24, 0], sizes = [7, 64], strides = [1, 1]} : vector<56x64xf32> to vector<7x64xf32>
    %c0_284 = arith.constant 0 : index
    %c4_285 = arith.constant 4 : index
    %c1_286 = arith.constant 1 : index
    %c0_287 = arith.constant 0 : index
    %177 = vector.load %arg14[%c0_284, %c4_285, %c1_286, %c0_287] : memref<1x9x9x64xf32, #tpu.memory_space<vmem>>, vector<1x1x7x64xf32>
    %178 = vector.shape_cast %177 : vector<1x1x7x64xf32> to vector<7x64xf32>
    %179 = vector.shape_cast %176 : vector<7x64xf32> to vector<1x1x7x64xf32>
    tpu.vector_store %arg14[%c0_284, %c4_285, %c1_286, %c0_287], %179 {strides = array<i32>} : memref<1x9x9x64xf32, #tpu.memory_space<vmem>>, vector<1x1x7x64xf32>,
    %180 = vector.extract_strided_slice %163 {offsets = [32, 0], sizes = [7, 64], strides = [1, 1]} : vector<56x64xf32> to vector<7x64xf32>
    %c0_288 = arith.constant 0 : index
    %c5_289 = arith.constant 5 : index
    %c1_290 = arith.constant 1 : index
    %c0_291 = arith.constant 0 : index
    %181 = vector.load %arg14[%c0_288, %c5_289, %c1_290, %c0_291] : memref<1x9x9x64xf32, #tpu.memory_space<vmem>>, vector<1x1x7x64xf32>
    %182 = vector.shape_cast %181 : vector<1x1x7x64xf32> to vector<7x64xf32>
    %183 = vector.shape_cast %180 : vector<7x64xf32> to vector<1x1x7x64xf32>
    tpu.vector_store %arg14[%c0_288, %c5_289, %c1_290, %c0_291], %183 {strides = array<i32>} : memref<1x9x9x64xf32, #tpu.memory_space<vmem>>, vector<1x1x7x64xf32>,
    %184 = vector.extract_strided_slice %163 {offsets = [40, 0], sizes = [7, 64], strides = [1, 1]} : vector<56x64xf32> to vector<7x64xf32>
    %c0_292 = arith.constant 0 : index
    %c6_293 = arith.constant 6 : index
    %c1_294 = arith.constant 1 : index
    %c0_295 = arith.constant 0 : index
    %185 = vector.load %arg14[%c0_292, %c6_293, %c1_294, %c0_295] : memref<1x9x9x64xf32, #tpu.memory_space<vmem>>, vector<1x1x7x64xf32>
    %186 = vector.shape_cast %185 : vector<1x1x7x64xf32> to vector<7x64xf32>
    %187 = vector.shape_cast %184 : vector<7x64xf32> to vector<1x1x7x64xf32>
    tpu.vector_store %arg14[%c0_292, %c6_293, %c1_294, %c0_295], %187 {strides = array<i32>} : memref<1x9x9x64xf32, #tpu.memory_space<vmem>>, vector<1x1x7x64xf32>,
    %188 = vector.extract_strided_slice %163 {offsets = [48, 0], sizes = [7, 64], strides = [1, 1]} : vector<56x64xf32> to vector<7x64xf32>
    %c0_296 = arith.constant 0 : index
    %c7_297 = arith.constant 7 : index
    %c1_298 = arith.constant 1 : index
    %c0_299 = arith.constant 0 : index
    %189 = vector.load %arg14[%c0_296, %c7_297, %c1_298, %c0_299] : memref<1x9x9x64xf32, #tpu.memory_space<vmem>>, vector<1x1x7x64xf32>
    %190 = vector.shape_cast %189 : vector<1x1x7x64xf32> to vector<7x64xf32>
    %191 = vector.shape_cast %188 : vector<7x64xf32> to vector<1x1x7x64xf32>
    tpu.vector_store %arg14[%c0_296, %c7_297, %c1_298, %c0_299], %191 {strides = array<i32>} : memref<1x9x9x64xf32, #tpu.memory_space<vmem>>, vector<1x1x7x64xf32>,
    %c0_300 = arith.constant 0 : index
    %c0_301 = arith.constant 0 : index
    %c0_302 = arith.constant 0 : index
    %c0_303 = arith.constant 0 : index
    %192 = vector.load %arg14[%c0_300, %c0_301, %c0_302, %c0_303] : memref<1x9x9x64xf32, #tpu.memory_space<vmem>>, vector<1x1x7x64xf32>
    %193 = vector.shape_cast %192 : vector<1x1x7x64xf32> to vector<7x64xf32>
    %c0_304 = arith.constant 0 : index
    %c0_305 = arith.constant 0 : index
    %c1_306 = arith.constant 1 : index
    %c0_307 = arith.constant 0 : index
    %194 = vector.load %arg14[%c0_304, %c0_305, %c1_306, %c0_307] : memref<1x9x9x64xf32, #tpu.memory_space<vmem>>, vector<1x1x7x64xf32>
    %195 = vector.shape_cast %194 : vector<1x1x7x64xf32> to vector<7x64xf32>
    %c0_308 = arith.constant 0 : index
    %c0_309 = arith.constant 0 : index
    %c2_310 = arith.constant 2 : index
    %c0_311 = arith.constant 0 : index
    %196 = vector.load %arg14[%c0_308, %c0_309, %c2_310, %c0_311] : memref<1x9x9x64xf32, #tpu.memory_space<vmem>>, vector<1x1x7x64xf32>
    %197 = vector.shape_cast %196 : vector<1x1x7x64xf32> to vector<7x64xf32>
    %c0_312 = arith.constant 0 : index
    %c1_313 = arith.constant 1 : index
    %c0_314 = arith.constant 0 : index
    %c0_315 = arith.constant 0 : index
    %198 = vector.load %arg14[%c0_312, %c1_313, %c0_314, %c0_315] : memref<1x9x9x64xf32, #tpu.memory_space<vmem>>, vector<1x1x7x64xf32>
    %199 = vector.shape_cast %198 : vector<1x1x7x64xf32> to vector<7x64xf32>
    %c0_316 = arith.constant 0 : index
    %c1_317 = arith.constant 1 : index
    %c1_318 = arith.constant 1 : index
    %c0_319 = arith.constant 0 : index
    %200 = vector.load %arg14[%c0_316, %c1_317, %c1_318, %c0_319] : memref<1x9x9x64xf32, #tpu.memory_space<vmem>>, vector<1x1x7x64xf32>
    %201 = vector.shape_cast %200 : vector<1x1x7x64xf32> to vector<7x64xf32>
    %c0_320 = arith.constant 0 : index
    %c1_321 = arith.constant 1 : index
    %c2_322 = arith.constant 2 : index
    %c0_323 = arith.constant 0 : index
    %202 = vector.load %arg14[%c0_320, %c1_321, %c2_322, %c0_323] : memref<1x9x9x64xf32, #tpu.memory_space<vmem>>, vector<1x1x7x64xf32>
    %203 = vector.shape_cast %202 : vector<1x1x7x64xf32> to vector<7x64xf32>
    %c0_324 = arith.constant 0 : index
    %c2_325 = arith.constant 2 : index
    %c0_326 = arith.constant 0 : index
    %c0_327 = arith.constant 0 : index
    %204 = vector.load %arg14[%c0_324, %c2_325, %c0_326, %c0_327] : memref<1x9x9x64xf32, #tpu.memory_space<vmem>>, vector<1x1x7x64xf32>
    %205 = vector.shape_cast %204 : vector<1x1x7x64xf32> to vector<7x64xf32>
    %c0_328 = arith.constant 0 : index
    %c2_329 = arith.constant 2 : index
    %c1_330 = arith.constant 1 : index
    %c0_331 = arith.constant 0 : index
    %206 = vector.load %arg14[%c0_328, %c2_329, %c1_330, %c0_331] : memref<1x9x9x64xf32, #tpu.memory_space<vmem>>, vector<1x1x7x64xf32>
    %207 = vector.shape_cast %206 : vector<1x1x7x64xf32> to vector<7x64xf32>
    %c0_332 = arith.constant 0 : index
    %c2_333 = arith.constant 2 : index
    %c2_334 = arith.constant 2 : index
    %c0_335 = arith.constant 0 : index
    %208 = vector.load %arg14[%c0_332, %c2_333, %c2_334, %c0_335] : memref<1x9x9x64xf32, #tpu.memory_space<vmem>>, vector<1x1x7x64xf32>
    %209 = vector.shape_cast %208 : vector<1x1x7x64xf32> to vector<7x64xf32>
    %210 = tpu.concatenate %193, %195, %197, %199, %201, %203, %205, %207, %209 in 1 : vector<7x64xf32>, vector<7x64xf32>, vector<7x64xf32>, vector<7x64xf32>, vector<7x64xf32>, vector<7x64xf32>, vector<7x64xf32>, vector<7x64xf32>, vector<7x64xf32> -> vector<7x576xf32>
    %c0_336 = arith.constant 0 : index
    %c0_337 = arith.constant 0 : index
    %211 = vector.load %arg13[%c0_336, %c0_337] : memref<56x576xf32, #tpu.memory_space<vmem>>, vector<7x576xf32>
    tpu.vector_store %arg13[%c0_336, %c0_337], %210 {strides = array<i32>} : memref<56x576xf32, #tpu.memory_space<vmem>>, vector<7x576xf32>,
    %c0_338 = arith.constant 0 : index
    %c1_339 = arith.constant 1 : index
    %c0_340 = arith.constant 0 : index
    %c0_341 = arith.constant 0 : index
    %212 = vector.load %arg14[%c0_338, %c1_339, %c0_340, %c0_341] : memref<1x9x9x64xf32, #tpu.memory_space<vmem>>, vector<1x1x7x64xf32>
    %213 = vector.shape_cast %212 : vector<1x1x7x64xf32> to vector<7x64xf32>
    %c0_342 = arith.constant 0 : index
    %c1_343 = arith.constant 1 : index
    %c1_344 = arith.constant 1 : index
    %c0_345 = arith.constant 0 : index
    %214 = vector.load %arg14[%c0_342, %c1_343, %c1_344, %c0_345] : memref<1x9x9x64xf32, #tpu.memory_space<vmem>>, vector<1x1x7x64xf32>
    %215 = vector.shape_cast %214 : vector<1x1x7x64xf32> to vector<7x64xf32>
    %c0_346 = arith.constant 0 : index
    %c1_347 = arith.constant 1 : index
    %c2_348 = arith.constant 2 : index
    %c0_349 = arith.constant 0 : index
    %216 = vector.load %arg14[%c0_346, %c1_347, %c2_348, %c0_349] : memref<1x9x9x64xf32, #tpu.memory_space<vmem>>, vector<1x1x7x64xf32>
    %217 = vector.shape_cast %216 : vector<1x1x7x64xf32> to vector<7x64xf32>
    %c0_350 = arith.constant 0 : index
    %c2_351 = arith.constant 2 : index
    %c0_352 = arith.constant 0 : index
    %c0_353 = arith.constant 0 : index
    %218 = vector.load %arg14[%c0_350, %c2_351, %c0_352, %c0_353] : memref<1x9x9x64xf32, #tpu.memory_space<vmem>>, vector<1x1x7x64xf32>
    %219 = vector.shape_cast %218 : vector<1x1x7x64xf32> to vector<7x64xf32>
    %c0_354 = arith.constant 0 : index
    %c2_355 = arith.constant 2 : index
    %c1_356 = arith.constant 1 : index
    %c0_357 = arith.constant 0 : index
    %220 = vector.load %arg14[%c0_354, %c2_355, %c1_356, %c0_357] : memref<1x9x9x64xf32, #tpu.memory_space<vmem>>, vector<1x1x7x64xf32>
    %221 = vector.shape_cast %220 : vector<1x1x7x64xf32> to vector<7x64xf32>
    %c0_358 = arith.constant 0 : index
    %c2_359 = arith.constant 2 : index
    %c2_360 = arith.constant 2 : index
    %c0_361 = arith.constant 0 : index
    %222 = vector.load %arg14[%c0_358, %c2_359, %c2_360, %c0_361] : memref<1x9x9x64xf32, #tpu.memory_space<vmem>>, vector<1x1x7x64xf32>
    %223 = vector.shape_cast %222 : vector<1x1x7x64xf32> to vector<7x64xf32>
    %c0_362 = arith.constant 0 : index
    %c3_363 = arith.constant 3 : index
    %c0_364 = arith.constant 0 : index
    %c0_365 = arith.constant 0 : index
    %224 = vector.load %arg14[%c0_362, %c3_363, %c0_364, %c0_365] : memref<1x9x9x64xf32, #tpu.memory_space<vmem>>, vector<1x1x7x64xf32>
    %225 = vector.shape_cast %224 : vector<1x1x7x64xf32> to vector<7x64xf32>
    %c0_366 = arith.constant 0 : index
    %c3_367 = arith.constant 3 : index
    %c1_368 = arith.constant 1 : index
    %c0_369 = arith.constant 0 : index
    %226 = vector.load %arg14[%c0_366, %c3_367, %c1_368, %c0_369] : memref<1x9x9x64xf32, #tpu.memory_space<vmem>>, vector<1x1x7x64xf32>
    %227 = vector.shape_cast %226 : vector<1x1x7x64xf32> to vector<7x64xf32>
    %c0_370 = arith.constant 0 : index
    %c3_371 = arith.constant 3 : index
    %c2_372 = arith.constant 2 : index
    %c0_373 = arith.constant 0 : index
    %228 = vector.load %arg14[%c0_370, %c3_371, %c2_372, %c0_373] : memref<1x9x9x64xf32, #tpu.memory_space<vmem>>, vector<1x1x7x64xf32>
    %229 = vector.shape_cast %228 : vector<1x1x7x64xf32> to vector<7x64xf32>
    %230 = tpu.concatenate %213, %215, %217, %219, %221, %223, %225, %227, %229 in 1 : vector<7x64xf32>, vector<7x64xf32>, vector<7x64xf32>, vector<7x64xf32>, vector<7x64xf32>, vector<7x64xf32>, vector<7x64xf32>, vector<7x64xf32>, vector<7x64xf32> -> vector<7x576xf32>
    %c8_374 = arith.constant 8 : index
    %c0_375 = arith.constant 0 : index
    %231 = vector.load %arg13[%c8_374, %c0_375] : memref<56x576xf32, #tpu.memory_space<vmem>>, vector<7x576xf32>
    tpu.vector_store %arg13[%c8_374, %c0_375], %230 {strides = array<i32>} : memref<56x576xf32, #tpu.memory_space<vmem>>, vector<7x576xf32>,
    %c0_376 = arith.constant 0 : index
    %c2_377 = arith.constant 2 : index
    %c0_378 = arith.constant 0 : index
    %c0_379 = arith.constant 0 : index
    %232 = vector.load %arg14[%c0_376, %c2_377, %c0_378, %c0_379] : memref<1x9x9x64xf32, #tpu.memory_space<vmem>>, vector<1x1x7x64xf32>
    %233 = vector.shape_cast %232 : vector<1x1x7x64xf32> to vector<7x64xf32>
    %c0_380 = arith.constant 0 : index
    %c2_381 = arith.constant 2 : index
    %c1_382 = arith.constant 1 : index
    %c0_383 = arith.constant 0 : index
    %234 = vector.load %arg14[%c0_380, %c2_381, %c1_382, %c0_383] : memref<1x9x9x64xf32, #tpu.memory_space<vmem>>, vector<1x1x7x64xf32>
    %235 = vector.shape_cast %234 : vector<1x1x7x64xf32> to vector<7x64xf32>
    %c0_384 = arith.constant 0 : index
    %c2_385 = arith.constant 2 : index
    %c2_386 = arith.constant 2 : index
    %c0_387 = arith.constant 0 : index
    %236 = vector.load %arg14[%c0_384, %c2_385, %c2_386, %c0_387] : memref<1x9x9x64xf32, #tpu.memory_space<vmem>>, vector<1x1x7x64xf32>
    %237 = vector.shape_cast %236 : vector<1x1x7x64xf32> to vector<7x64xf32>
    %c0_388 = arith.constant 0 : index
    %c3_389 = arith.constant 3 : index
    %c0_390 = arith.constant 0 : index
    %c0_391 = arith.constant 0 : index
    %238 = vector.load %arg14[%c0_388, %c3_389, %c0_390, %c0_391] : memref<1x9x9x64xf32, #tpu.memory_space<vmem>>, vector<1x1x7x64xf32>
    %239 = vector.shape_cast %238 : vector<1x1x7x64xf32> to vector<7x64xf32>
    %c0_392 = arith.constant 0 : index
    %c3_393 = arith.constant 3 : index
    %c1_394 = arith.constant 1 : index
    %c0_395 = arith.constant 0 : index
    %240 = vector.load %arg14[%c0_392, %c3_393, %c1_394, %c0_395] : memref<1x9x9x64xf32, #tpu.memory_space<vmem>>, vector<1x1x7x64xf32>
    %241 = vector.shape_cast %240 : vector<1x1x7x64xf32> to vector<7x64xf32>
    %c0_396 = arith.constant 0 : index
    %c3_397 = arith.constant 3 : index
    %c2_398 = arith.constant 2 : index
    %c0_399 = arith.constant 0 : index
    %242 = vector.load %arg14[%c0_396, %c3_397, %c2_398, %c0_399] : memref<1x9x9x64xf32, #tpu.memory_space<vmem>>, vector<1x1x7x64xf32>
    %243 = vector.shape_cast %242 : vector<1x1x7x64xf32> to vector<7x64xf32>
    %c0_400 = arith.constant 0 : index
    %c4_401 = arith.constant 4 : index
    %c0_402 = arith.constant 0 : index
    %c0_403 = arith.constant 0 : index
    %244 = vector.load %arg14[%c0_400, %c4_401, %c0_402, %c0_403] : memref<1x9x9x64xf32, #tpu.memory_space<vmem>>, vector<1x1x7x64xf32>
    %245 = vector.shape_cast %244 : vector<1x1x7x64xf32> to vector<7x64xf32>
    %c0_404 = arith.constant 0 : index
    %c4_405 = arith.constant 4 : index
    %c1_406 = arith.constant 1 : index
    %c0_407 = arith.constant 0 : index
    %246 = vector.load %arg14[%c0_404, %c4_405, %c1_406, %c0_407] : memref<1x9x9x64xf32, #tpu.memory_space<vmem>>, vector<1x1x7x64xf32>
    %247 = vector.shape_cast %246 : vector<1x1x7x64xf32> to vector<7x64xf32>
    %c0_408 = arith.constant 0 : index
    %c4_409 = arith.constant 4 : index
    %c2_410 = arith.constant 2 : index
    %c0_411 = arith.constant 0 : index
    %248 = vector.load %arg14[%c0_408, %c4_409, %c2_410, %c0_411] : memref<1x9x9x64xf32, #tpu.memory_space<vmem>>, vector<1x1x7x64xf32>
    %249 = vector.shape_cast %248 : vector<1x1x7x64xf32> to vector<7x64xf32>
    %250 = tpu.concatenate %233, %235, %237, %239, %241, %243, %245, %247, %249 in 1 : vector<7x64xf32>, vector<7x64xf32>, vector<7x64xf32>, vector<7x64xf32>, vector<7x64xf32>, vector<7x64xf32>, vector<7x64xf32>, vector<7x64xf32>, vector<7x64xf32> -> vector<7x576xf32>
    %c16_412 = arith.constant 16 : index
    %c0_413 = arith.constant 0 : index
    %251 = vector.load %arg13[%c16_412, %c0_413] : memref<56x576xf32, #tpu.memory_space<vmem>>, vector<7x576xf32>
    tpu.vector_store %arg13[%c16_412, %c0_413], %250 {strides = array<i32>} : memref<56x576xf32, #tpu.memory_space<vmem>>, vector<7x576xf32>,
    %c0_414 = arith.constant 0 : index
    %c3_415 = arith.constant 3 : index
    %c0_416 = arith.constant 0 : index
    %c0_417 = arith.constant 0 : index
    %252 = vector.load %arg14[%c0_414, %c3_415, %c0_416, %c0_417] : memref<1x9x9x64xf32, #tpu.memory_space<vmem>>, vector<1x1x7x64xf32>
    %253 = vector.shape_cast %252 : vector<1x1x7x64xf32> to vector<7x64xf32>
    %c0_418 = arith.constant 0 : index
    %c3_419 = arith.constant 3 : index
    %c1_420 = arith.constant 1 : index
    %c0_421 = arith.constant 0 : index
    %254 = vector.load %arg14[%c0_418, %c3_419, %c1_420, %c0_421] : memref<1x9x9x64xf32, #tpu.memory_space<vmem>>, vector<1x1x7x64xf32>
    %255 = vector.shape_cast %254 : vector<1x1x7x64xf32> to vector<7x64xf32>
    %c0_422 = arith.constant 0 : index
    %c3_423 = arith.constant 3 : index
    %c2_424 = arith.constant 2 : index
    %c0_425 = arith.constant 0 : index
    %256 = vector.load %arg14[%c0_422, %c3_423, %c2_424, %c0_425] : memref<1x9x9x64xf32, #tpu.memory_space<vmem>>, vector<1x1x7x64xf32>
    %257 = vector.shape_cast %256 : vector<1x1x7x64xf32> to vector<7x64xf32>
    %c0_426 = arith.constant 0 : index
    %c4_427 = arith.constant 4 : index
    %c0_428 = arith.constant 0 : index
    %c0_429 = arith.constant 0 : index
    %258 = vector.load %arg14[%c0_426, %c4_427, %c0_428, %c0_429] : memref<1x9x9x64xf32, #tpu.memory_space<vmem>>, vector<1x1x7x64xf32>
    %259 = vector.shape_cast %258 : vector<1x1x7x64xf32> to vector<7x64xf32>
    %c0_430 = arith.constant 0 : index
    %c4_431 = arith.constant 4 : index
    %c1_432 = arith.constant 1 : index
    %c0_433 = arith.constant 0 : index
    %260 = vector.load %arg14[%c0_430, %c4_431, %c1_432, %c0_433] : memref<1x9x9x64xf32, #tpu.memory_space<vmem>>, vector<1x1x7x64xf32>
    %261 = vector.shape_cast %260 : vector<1x1x7x64xf32> to vector<7x64xf32>
    %c0_434 = arith.constant 0 : index
    %c4_435 = arith.constant 4 : index
    %c2_436 = arith.constant 2 : index
    %c0_437 = arith.constant 0 : index
    %262 = vector.load %arg14[%c0_434, %c4_435, %c2_436, %c0_437] : memref<1x9x9x64xf32, #tpu.memory_space<vmem>>, vector<1x1x7x64xf32>
    %263 = vector.shape_cast %262 : vector<1x1x7x64xf32> to vector<7x64xf32>
    %c0_438 = arith.constant 0 : index
    %c5_439 = arith.constant 5 : index
    %c0_440 = arith.constant 0 : index
    %c0_441 = arith.constant 0 : index
    %264 = vector.load %arg14[%c0_438, %c5_439, %c0_440, %c0_441] : memref<1x9x9x64xf32, #tpu.memory_space<vmem>>, vector<1x1x7x64xf32>
    %265 = vector.shape_cast %264 : vector<1x1x7x64xf32> to vector<7x64xf32>
    %c0_442 = arith.constant 0 : index
    %c5_443 = arith.constant 5 : index
    %c1_444 = arith.constant 1 : index
    %c0_445 = arith.constant 0 : index
    %266 = vector.load %arg14[%c0_442, %c5_443, %c1_444, %c0_445] : memref<1x9x9x64xf32, #tpu.memory_space<vmem>>, vector<1x1x7x64xf32>
    %267 = vector.shape_cast %266 : vector<1x1x7x64xf32> to vector<7x64xf32>
    %c0_446 = arith.constant 0 : index
    %c5_447 = arith.constant 5 : index
    %c2_448 = arith.constant 2 : index
    %c0_449 = arith.constant 0 : index
    %268 = vector.load %arg14[%c0_446, %c5_447, %c2_448, %c0_449] : memref<1x9x9x64xf32, #tpu.memory_space<vmem>>, vector<1x1x7x64xf32>
    %269 = vector.shape_cast %268 : vector<1x1x7x64xf32> to vector<7x64xf32>
    %270 = tpu.concatenate %253, %255, %257, %259, %261, %263, %265, %267, %269 in 1 : vector<7x64xf32>, vector<7x64xf32>, vector<7x64xf32>, vector<7x64xf32>, vector<7x64xf32>, vector<7x64xf32>, vector<7x64xf32>, vector<7x64xf32>, vector<7x64xf32> -> vector<7x576xf32>
    %c24_450 = arith.constant 24 : index
    %c0_451 = arith.constant 0 : index
    %271 = vector.load %arg13[%c24_450, %c0_451] : memref<56x576xf32, #tpu.memory_space<vmem>>, vector<7x576xf32>
    tpu.vector_store %arg13[%c24_450, %c0_451], %270 {strides = array<i32>} : memref<56x576xf32, #tpu.memory_space<vmem>>, vector<7x576xf32>,
    %c0_452 = arith.constant 0 : index
    %c4_453 = arith.constant 4 : index
    %c0_454 = arith.constant 0 : index
    %c0_455 = arith.constant 0 : index
    %272 = vector.load %arg14[%c0_452, %c4_453, %c0_454, %c0_455] : memref<1x9x9x64xf32, #tpu.memory_space<vmem>>, vector<1x1x7x64xf32>
    %273 = vector.shape_cast %272 : vector<1x1x7x64xf32> to vector<7x64xf32>
    %c0_456 = arith.constant 0 : index
    %c4_457 = arith.constant 4 : index
    %c1_458 = arith.constant 1 : index
    %c0_459 = arith.constant 0 : index
    %274 = vector.load %arg14[%c0_456, %c4_457, %c1_458, %c0_459] : memref<1x9x9x64xf32, #tpu.memory_space<vmem>>, vector<1x1x7x64xf32>
    %275 = vector.shape_cast %274 : vector<1x1x7x64xf32> to vector<7x64xf32>
    %c0_460 = arith.constant 0 : index
    %c4_461 = arith.constant 4 : index
    %c2_462 = arith.constant 2 : index
    %c0_463 = arith.constant 0 : index
    %276 = vector.load %arg14[%c0_460, %c4_461, %c2_462, %c0_463] : memref<1x9x9x64xf32, #tpu.memory_space<vmem>>, vector<1x1x7x64xf32>
    %277 = vector.shape_cast %276 : vector<1x1x7x64xf32> to vector<7x64xf32>
    %c0_464 = arith.constant 0 : index
    %c5_465 = arith.constant 5 : index
    %c0_466 = arith.constant 0 : index
    %c0_467 = arith.constant 0 : index
    %278 = vector.load %arg14[%c0_464, %c5_465, %c0_466, %c0_467] : memref<1x9x9x64xf32, #tpu.memory_space<vmem>>, vector<1x1x7x64xf32>
    %279 = vector.shape_cast %278 : vector<1x1x7x64xf32> to vector<7x64xf32>
    %c0_468 = arith.constant 0 : index
    %c5_469 = arith.constant 5 : index
    %c1_470 = arith.constant 1 : index
    %c0_471 = arith.constant 0 : index
    %280 = vector.load %arg14[%c0_468, %c5_469, %c1_470, %c0_471] : memref<1x9x9x64xf32, #tpu.memory_space<vmem>>, vector<1x1x7x64xf32>
    %281 = vector.shape_cast %280 : vector<1x1x7x64xf32> to vector<7x64xf32>
    %c0_472 = arith.constant 0 : index
    %c5_473 = arith.constant 5 : index
    %c2_474 = arith.constant 2 : index
    %c0_475 = arith.constant 0 : index
    %282 = vector.load %arg14[%c0_472, %c5_473, %c2_474, %c0_475] : memref<1x9x9x64xf32, #tpu.memory_space<vmem>>, vector<1x1x7x64xf32>
    %283 = vector.shape_cast %282 : vector<1x1x7x64xf32> to vector<7x64xf32>
    %c0_476 = arith.constant 0 : index
    %c6_477 = arith.constant 6 : index
    %c0_478 = arith.constant 0 : index
    %c0_479 = arith.constant 0 : index
    %284 = vector.load %arg14[%c0_476, %c6_477, %c0_478, %c0_479] : memref<1x9x9x64xf32, #tpu.memory_space<vmem>>, vector<1x1x7x64xf32>
    %285 = vector.shape_cast %284 : vector<1x1x7x64xf32> to vector<7x64xf32>
    %c0_480 = arith.constant 0 : index
    %c6_481 = arith.constant 6 : index
    %c1_482 = arith.constant 1 : index
    %c0_483 = arith.constant 0 : index
    %286 = vector.load %arg14[%c0_480, %c6_481, %c1_482, %c0_483] : memref<1x9x9x64xf32, #tpu.memory_space<vmem>>, vector<1x1x7x64xf32>
    %287 = vector.shape_cast %286 : vector<1x1x7x64xf32> to vector<7x64xf32>
    %c0_484 = arith.constant 0 : index
    %c6_485 = arith.constant 6 : index
    %c2_486 = arith.constant 2 : index
    %c0_487 = arith.constant 0 : index
    %288 = vector.load %arg14[%c0_484, %c6_485, %c2_486, %c0_487] : memref<1x9x9x64xf32, #tpu.memory_space<vmem>>, vector<1x1x7x64xf32>
    %289 = vector.shape_cast %288 : vector<1x1x7x64xf32> to vector<7x64xf32>
    %290 = tpu.concatenate %273, %275, %277, %279, %281, %283, %285, %287, %289 in 1 : vector<7x64xf32>, vector<7x64xf32>, vector<7x64xf32>, vector<7x64xf32>, vector<7x64xf32>, vector<7x64xf32>, vector<7x64xf32>, vector<7x64xf32>, vector<7x64xf32> -> vector<7x576xf32>
    %c32_488 = arith.constant 32 : index
    %c0_489 = arith.constant 0 : index
    %291 = vector.load %arg13[%c32_488, %c0_489] : memref<56x576xf32, #tpu.memory_space<vmem>>, vector<7x576xf32>
    tpu.vector_store %arg13[%c32_488, %c0_489], %290 {strides = array<i32>} : memref<56x576xf32, #tpu.memory_space<vmem>>, vector<7x576xf32>,
    %c0_490 = arith.constant 0 : index
    %c5_491 = arith.constant 5 : index
    %c0_492 = arith.constant 0 : index
    %c0_493 = arith.constant 0 : index
    %292 = vector.load %arg14[%c0_490, %c5_491, %c0_492, %c0_493] : memref<1x9x9x64xf32, #tpu.memory_space<vmem>>, vector<1x1x7x64xf32>
    %293 = vector.shape_cast %292 : vector<1x1x7x64xf32> to vector<7x64xf32>
    %c0_494 = arith.constant 0 : index
    %c5_495 = arith.constant 5 : index
    %c1_496 = arith.constant 1 : index
    %c0_497 = arith.constant 0 : index
    %294 = vector.load %arg14[%c0_494, %c5_495, %c1_496, %c0_497] : memref<1x9x9x64xf32, #tpu.memory_space<vmem>>, vector<1x1x7x64xf32>
    %295 = vector.shape_cast %294 : vector<1x1x7x64xf32> to vector<7x64xf32>
    %c0_498 = arith.constant 0 : index
    %c5_499 = arith.constant 5 : index
    %c2_500 = arith.constant 2 : index
    %c0_501 = arith.constant 0 : index
    %296 = vector.load %arg14[%c0_498, %c5_499, %c2_500, %c0_501] : memref<1x9x9x64xf32, #tpu.memory_space<vmem>>, vector<1x1x7x64xf32>
    %297 = vector.shape_cast %296 : vector<1x1x7x64xf32> to vector<7x64xf32>
    %c0_502 = arith.constant 0 : index
    %c6_503 = arith.constant 6 : index
    %c0_504 = arith.constant 0 : index
    %c0_505 = arith.constant 0 : index
    %298 = vector.load %arg14[%c0_502, %c6_503, %c0_504, %c0_505] : memref<1x9x9x64xf32, #tpu.memory_space<vmem>>, vector<1x1x7x64xf32>
    %299 = vector.shape_cast %298 : vector<1x1x7x64xf32> to vector<7x64xf32>
    %c0_506 = arith.constant 0 : index
    %c6_507 = arith.constant 6 : index
    %c1_508 = arith.constant 1 : index
    %c0_509 = arith.constant 0 : index
    %300 = vector.load %arg14[%c0_506, %c6_507, %c1_508, %c0_509] : memref<1x9x9x64xf32, #tpu.memory_space<vmem>>, vector<1x1x7x64xf32>
    %301 = vector.shape_cast %300 : vector<1x1x7x64xf32> to vector<7x64xf32>
    %c0_510 = arith.constant 0 : index
    %c6_511 = arith.constant 6 : index
    %c2_512 = arith.constant 2 : index
    %c0_513 = arith.constant 0 : index
    %302 = vector.load %arg14[%c0_510, %c6_511, %c2_512, %c0_513] : memref<1x9x9x64xf32, #tpu.memory_space<vmem>>, vector<1x1x7x64xf32>
    %303 = vector.shape_cast %302 : vector<1x1x7x64xf32> to vector<7x64xf32>
    %c0_514 = arith.constant 0 : index
    %c7_515 = arith.constant 7 : index
    %c0_516 = arith.constant 0 : index
    %c0_517 = arith.constant 0 : index
    %304 = vector.load %arg14[%c0_514, %c7_515, %c0_516, %c0_517] : memref<1x9x9x64xf32, #tpu.memory_space<vmem>>, vector<1x1x7x64xf32>
    %305 = vector.shape_cast %304 : vector<1x1x7x64xf32> to vector<7x64xf32>
    %c0_518 = arith.constant 0 : index
    %c7_519 = arith.constant 7 : index
    %c1_520 = arith.constant 1 : index
    %c0_521 = arith.constant 0 : index
    %306 = vector.load %arg14[%c0_518, %c7_519, %c1_520, %c0_521] : memref<1x9x9x64xf32, #tpu.memory_space<vmem>>, vector<1x1x7x64xf32>
    %307 = vector.shape_cast %306 : vector<1x1x7x64xf32> to vector<7x64xf32>
    %c0_522 = arith.constant 0 : index
    %c7_523 = arith.constant 7 : index
    %c2_524 = arith.constant 2 : index
    %c0_525 = arith.constant 0 : index
    %308 = vector.load %arg14[%c0_522, %c7_523, %c2_524, %c0_525] : memref<1x9x9x64xf32, #tpu.memory_space<vmem>>, vector<1x1x7x64xf32>
    %309 = vector.shape_cast %308 : vector<1x1x7x64xf32> to vector<7x64xf32>
    %310 = tpu.concatenate %293, %295, %297, %299, %301, %303, %305, %307, %309 in 1 : vector<7x64xf32>, vector<7x64xf32>, vector<7x64xf32>, vector<7x64xf32>, vector<7x64xf32>, vector<7x64xf32>, vector<7x64xf32>, vector<7x64xf32>, vector<7x64xf32> -> vector<7x576xf32>
    %c40_526 = arith.constant 40 : index
    %c0_527 = arith.constant 0 : index
    %311 = vector.load %arg13[%c40_526, %c0_527] : memref<56x576xf32, #tpu.memory_space<vmem>>, vector<7x576xf32>
    tpu.vector_store %arg13[%c40_526, %c0_527], %310 {strides = array<i32>} : memref<56x576xf32, #tpu.memory_space<vmem>>, vector<7x576xf32>,
    %c0_528 = arith.constant 0 : index
    %c6_529 = arith.constant 6 : index
    %c0_530 = arith.constant 0 : index
    %c0_531 = arith.constant 0 : index
    %312 = vector.load %arg14[%c0_528, %c6_529, %c0_530, %c0_531] : memref<1x9x9x64xf32, #tpu.memory_space<vmem>>, vector<1x1x7x64xf32>
    %313 = vector.shape_cast %312 : vector<1x1x7x64xf32> to vector<7x64xf32>
    %c0_532 = arith.constant 0 : index
    %c6_533 = arith.constant 6 : index
    %c1_534 = arith.constant 1 : index
    %c0_535 = arith.constant 0 : index
    %314 = vector.load %arg14[%c0_532, %c6_533, %c1_534, %c0_535] : memref<1x9x9x64xf32, #tpu.memory_space<vmem>>, vector<1x1x7x64xf32>
    %315 = vector.shape_cast %314 : vector<1x1x7x64xf32> to vector<7x64xf32>
    %c0_536 = arith.constant 0 : index
    %c6_537 = arith.constant 6 : index
    %c2_538 = arith.constant 2 : index
    %c0_539 = arith.constant 0 : index
    %316 = vector.load %arg14[%c0_536, %c6_537, %c2_538, %c0_539] : memref<1x9x9x64xf32, #tpu.memory_space<vmem>>, vector<1x1x7x64xf32>
    %317 = vector.shape_cast %316 : vector<1x1x7x64xf32> to vector<7x64xf32>
    %c0_540 = arith.constant 0 : index
    %c7_541 = arith.constant 7 : index
    %c0_542 = arith.constant 0 : index
    %c0_543 = arith.constant 0 : index
    %318 = vector.load %arg14[%c0_540, %c7_541, %c0_542, %c0_543] : memref<1x9x9x64xf32, #tpu.memory_space<vmem>>, vector<1x1x7x64xf32>
    %319 = vector.shape_cast %318 : vector<1x1x7x64xf32> to vector<7x64xf32>
    %c0_544 = arith.constant 0 : index
    %c7_545 = arith.constant 7 : index
    %c1_546 = arith.constant 1 : index
    %c0_547 = arith.constant 0 : index
    %320 = vector.load %arg14[%c0_544, %c7_545, %c1_546, %c0_547] : memref<1x9x9x64xf32, #tpu.memory_space<vmem>>, vector<1x1x7x64xf32>
    %321 = vector.shape_cast %320 : vector<1x1x7x64xf32> to vector<7x64xf32>
    %c0_548 = arith.constant 0 : index
    %c7_549 = arith.constant 7 : index
    %c2_550 = arith.constant 2 : index
    %c0_551 = arith.constant 0 : index
    %322 = vector.load %arg14[%c0_548, %c7_549, %c2_550, %c0_551] : memref<1x9x9x64xf32, #tpu.memory_space<vmem>>, vector<1x1x7x64xf32>
    %323 = vector.shape_cast %322 : vector<1x1x7x64xf32> to vector<7x64xf32>
    %c0_552 = arith.constant 0 : index
    %c8_553 = arith.constant 8 : index
    %c0_554 = arith.constant 0 : index
    %c0_555 = arith.constant 0 : index
    %324 = vector.load %arg14[%c0_552, %c8_553, %c0_554, %c0_555] : memref<1x9x9x64xf32, #tpu.memory_space<vmem>>, vector<1x1x7x64xf32>
    %325 = vector.shape_cast %324 : vector<1x1x7x64xf32> to vector<7x64xf32>
    %c0_556 = arith.constant 0 : index
    %c8_557 = arith.constant 8 : index
    %c1_558 = arith.constant 1 : index
    %c0_559 = arith.constant 0 : index
    %326 = vector.load %arg14[%c0_556, %c8_557, %c1_558, %c0_559] : memref<1x9x9x64xf32, #tpu.memory_space<vmem>>, vector<1x1x7x64xf32>
    %327 = vector.shape_cast %326 : vector<1x1x7x64xf32> to vector<7x64xf32>
    %c0_560 = arith.constant 0 : index
    %c8_561 = arith.constant 8 : index
    %c2_562 = arith.constant 2 : index
    %c0_563 = arith.constant 0 : index
    %328 = vector.load %arg14[%c0_560, %c8_561, %c2_562, %c0_563] : memref<1x9x9x64xf32, #tpu.memory_space<vmem>>, vector<1x1x7x64xf32>
    %329 = vector.shape_cast %328 : vector<1x1x7x64xf32> to vector<7x64xf32>
    %330 = tpu.concatenate %313, %315, %317, %319, %321, %323, %325, %327, %329 in 1 : vector<7x64xf32>, vector<7x64xf32>, vector<7x64xf32>, vector<7x64xf32>, vector<7x64xf32>, vector<7x64xf32>, vector<7x64xf32>, vector<7x64xf32>, vector<7x64xf32> -> vector<7x576xf32>
    %c48_564 = arith.constant 48 : index
    %c0_565 = arith.constant 0 : index
    %331 = vector.load %arg13[%c48_564, %c0_565] : memref<56x576xf32, #tpu.memory_space<vmem>>, vector<7x576xf32>
    tpu.vector_store %arg13[%c48_564, %c0_565], %330 {strides = array<i32>} : memref<56x576xf32, #tpu.memory_space<vmem>>, vector<7x576xf32>,
    %c0_566 = arith.constant 0 : index
    %c0_567 = arith.constant 0 : index
    %332 = vector.load %arg13[%c0_566, %c0_567] : memref<56x576xf32, #tpu.memory_space<vmem>>, vector<56x576xf32>
    %c0_568 = arith.constant 0 : index
    %c0_569 = arith.constant 0 : index
    %333 = vector.load %arg5[%c0_568, %c0_569] : memref<576x128xf32, #tpu.memory_space<vmem>>, vector<576x128xf32>
    %cst_570 = arith.constant dense<0.000000e+00> : vector<56x128xf32>
    %334 = tpu.matmul %332, %333, %cst_570 {dimension_numbers = #tpu.dot_dimension_numbers<[1], [0], [0], [1], [0, 0, 1, 1], [], []>} : vector<56x576xf32>, vector<576x128xf32>, vector<56x128xf32> -> vector<56x128xf32>
    %c0_571 = arith.constant 0 : index
    %c0_572 = arith.constant 0 : index
    %335 = vector.load %arg6[%c0_571, %c0_572] : memref<1x128xf32, #tpu.memory_space<vmem>>, vector<1x128xf32>
    %336 = vector.broadcast %335 : vector<1x128xf32> to vector<56x128xf32>
    %337 = arith.mulf %334, %336 : vector<56x128xf32>
    %c0_573 = arith.constant 0 : index
    %c0_574 = arith.constant 0 : index
    %338 = vector.load %arg7[%c0_573, %c0_574] : memref<1x128xf32, #tpu.memory_space<vmem>>, vector<1x128xf32>
    %339 = vector.broadcast %338 : vector<1x128xf32> to vector<56x128xf32>
    %340 = arith.addf %337, %339 : vector<56x128xf32>
    %cst_575 = arith.constant 0.000000e+00 : f32
    %341 = vector.broadcast %cst_575 : f32 to vector<56x128xf32>
    %342 = arith.maximumf %340, %341 : vector<56x128xf32>
    %343 = vector.extract_strided_slice %342 {offsets = [0, 0], sizes = [56, 32], strides = [1, 1]} : vector<56x128xf32> to vector<56x32xf32>
    %344 = vector.extract_strided_slice %342 {offsets = [0, 32], sizes = [56, 32], strides = [1, 1]} : vector<56x128xf32> to vector<56x32xf32>
    %345 = arith.maximumf %343, %344 : vector<56x32xf32>
    %346 = vector.extract_strided_slice %342 {offsets = [0, 64], sizes = [56, 32], strides = [1, 1]} : vector<56x128xf32> to vector<56x32xf32>
    %347 = vector.extract_strided_slice %342 {offsets = [0, 96], sizes = [56, 32], strides = [1, 1]} : vector<56x128xf32> to vector<56x32xf32>
    %348 = arith.maximumf %346, %347 : vector<56x32xf32>
    %349 = arith.maximumf %345, %348 : vector<56x32xf32>
    %350 = tpu.concatenate %349, %349, %349, %349, %349, %349, %349, %349, %349, %349 in 1 : vector<56x32xf32>, vector<56x32xf32>, vector<56x32xf32>, vector<56x32xf32>, vector<56x32xf32>, vector<56x32xf32>, vector<56x32xf32>, vector<56x32xf32>, vector<56x32xf32>, vector<56x32xf32> -> vector<56x320xf32>
    %c0_576 = arith.constant 0 : index
    %c0_577 = arith.constant 0 : index
    %351 = vector.load %arg8[%c0_576, %c0_577] : memref<56x320xf32, #tpu.memory_space<vmem>>, vector<56x320xf32>
    %352 = arith.mulf %350, %351 : vector<56x320xf32>
    %c0_578 = arith.constant 0 : index
    %c0_579 = arith.constant 0 : index
    %353 = vector.load %arg9[%c0_578, %c0_579] : memref<320x10xf32, #tpu.memory_space<vmem>>, vector<320x10xf32>
    %cst_580 = arith.constant dense<0.000000e+00> : vector<56x10xf32>
    %354 = tpu.matmul %352, %353, %cst_580 {dimension_numbers = #tpu.dot_dimension_numbers<[1], [0], [0], [1], [0, 0, 1, 1], [], []>} : vector<56x320xf32>, vector<320x10xf32>, vector<56x10xf32> -> vector<56x10xf32>
    %cst_581 = arith.constant dense<0.000000e+00> : vector<10xf32>
    %355 = vector.multi_reduction <add>, %354, %cst_581 [0] : vector<56x10xf32> to vector<10xf32>
    %356 = vector.shape_cast %355 : vector<10xf32> to vector<1x10xf32>
    %c0_582 = arith.constant 0 : index
    %c0_583 = arith.constant 0 : index
    %357 = vector.load %arg10[%c0_582, %c0_583] : memref<1x10xf32, #tpu.memory_space<vmem>>, vector<1x10xf32>
    %358 = arith.addf %356, %357 : vector<1x10xf32>
    %c0_584 = arith.constant 0 : index
    %c0_585 = arith.constant 0 : index
    %c0_586 = arith.constant 0 : index
    %359 = vector.load %arg11[%c0_584, %c0_585, %c0_586] : memref<1x1x10xf32, #tpu.memory_space<vmem>>, vector<1x1x10xf32>
    %360 = vector.shape_cast %359 : vector<1x1x10xf32> to vector<1x10xf32>
    %361 = vector.shape_cast %358 : vector<1x10xf32> to vector<1x1x10xf32>
    tpu.vector_store %arg11[%c0_584, %c0_585, %c0_586], %361 {strides = array<i32>} : memref<1x1x10xf32, #tpu.memory_space<vmem>>, vector<1x1x10xf32>,
    return
  }
  func.func @transform_0(%arg0: i32) -> (i32, i32, i32, i32) {
    %c0_i32 = arith.constant 0 : i32
    %c0_i32_0 = arith.constant 0 : i32
    %c0_i32_1 = arith.constant 0 : i32
    %c0_i32_2 = arith.constant 0 : i32
    return %arg0, %c0_i32, %c0_i32_0, %c0_i32_1 : i32, i32, i32, i32
  }
  func.func @transform_1(%arg0: i32) -> (i32, i32) {
    %c0_i32 = arith.constant 0 : i32
    %c0_i32_0 = arith.constant 0 : i32
    %c0_i32_1 = arith.constant 0 : i32
    return %c0_i32, %c0_i32_0 : i32, i32
  }
  func.func @transform_2(%arg0: i32) -> (i32, i32) {
    %c0_i32 = arith.constant 0 : i32
    %c0_i32_0 = arith.constant 0 : i32
    %c0_i32_1 = arith.constant 0 : i32
    return %c0_i32, %c0_i32_0 : i32, i32
  }
  func.func @transform_3(%arg0: i32) -> (i32, i32) {
    %c0_i32 = arith.constant 0 : i32
    %c0_i32_0 = arith.constant 0 : i32
    %c0_i32_1 = arith.constant 0 : i32
    return %c0_i32, %c0_i32_0 : i32, i32
  }
  func.func @transform_4(%arg0: i32) -> (i32, i32) {
    %c0_i32 = arith.constant 0 : i32
    %c0_i32_0 = arith.constant 0 : i32
    %c0_i32_1 = arith.constant 0 : i32
    return %c0_i32, %c0_i32_0 : i32, i32
  }
  func.func @transform_5(%arg0: i32) -> (i32, i32) {
    %c0_i32 = arith.constant 0 : i32
    %c0_i32_0 = arith.constant 0 : i32
    %c0_i32_1 = arith.constant 0 : i32
    return %c0_i32, %c0_i32_0 : i32, i32
  }
  func.func @transform_6(%arg0: i32) -> (i32, i32) {
    %c0_i32 = arith.constant 0 : i32
    %c0_i32_0 = arith.constant 0 : i32
    %c0_i32_1 = arith.constant 0 : i32
    return %c0_i32, %c0_i32_0 : i32, i32
  }
  func.func @transform_7(%arg0: i32) -> (i32, i32) {
    %c0_i32 = arith.constant 0 : i32
    %c0_i32_0 = arith.constant 0 : i32
    %c0_i32_1 = arith.constant 0 : i32
    return %c0_i32, %c0_i32_0 : i32, i32
  }
  func.func @transform_8(%arg0: i32) -> (i32, i32) {
    %c0_i32 = arith.constant 0 : i32
    %c0_i32_0 = arith.constant 0 : i32
    %c0_i32_1 = arith.constant 0 : i32
    return %c0_i32, %c0_i32_0 : i32, i32
  }
  func.func @transform_9(%arg0: i32) -> (i32, i32) {
    %c0_i32 = arith.constant 0 : i32
    %c0_i32_0 = arith.constant 0 : i32
    %c0_i32_1 = arith.constant 0 : i32
    return %c0_i32, %c0_i32_0 : i32, i32
  }
  func.func @transform_10(%arg0: i32) -> (i32, i32, i32) {
    %c0_i32 = arith.constant 0 : i32
    %c0_i32_0 = arith.constant 0 : i32
    %c0_i32_1 = arith.constant 0 : i32
    return %arg0, %c0_i32, %c0_i32_0 : i32, i32, i32
  }
}

</mosaic_0001>

<bundles_post_ra>
// kernel: detector_forward.1
= control target key start
LH: loop header
LB: loop body
LE: loop exit
PB: predicated region body
PF: predicated region fallthrough
CT: control target
= control target key end

     0   :  { %s3776_s0 = inlined_call_operand.vmem [shape: f32[2,9,9,16], index: 0, kind: input, shape index: {}]   ;;  %s3777_s1 = inlined_call_operand.vmem [shape: f32[144,256], index: 1, kind: input, shape index: {}]   ;;  %s3778_s2 = inlined_call_operand.vmem [shape: f32[1,256], index: 2, kind: input, shape index: {}]   ;;  %s3779_s3 = inlined_call_operand.vmem [shape: f32[1,256], index: 3, kind: input, shape index: {}]   ;;  %s3780_s4 = inlined_call_operand.vmem [shape: f32[576,128], index: 4, kind: input, shape index: {}]   ;;  %s3781_s5 = inlined_call_operand.vmem [shape: f32[1,128], index: 5, kind: input, shape index: {}]   ;;  %s3782_s6 = inlined_call_operand.vmem [shape: f32[1,128], index: 6, kind: input, shape index: {}]   ;;  %s3783_s7 = inlined_call_operand.vmem [shape: f32[56,320], index: 7, kind: input, shape index: {}]   ;;  %s3784_s8 = inlined_call_operand.vmem [shape: f32[320,10], index: 8, kind: input, shape index: {}]   ;;  %s3785_s9 = inlined_call_operand.vmem [shape: f32[1,10], index: 9, kind: input, shape index: {}]   ;;  %s3786_s10 = inlined_call_operand.hbm [shape: f32[2,1,10], index: 10, kind: output, shape index: {}]  }
   0x1   :  { %3805 = sst [smem:[#allocation12_spill]] %s3776_s0 }
   0x2   :  { %15 = vsyncpa [#allocation6], 0 }
   0x3   :  { %17 = vsyncpa [#allocation6 + $0x1], 0  ;;  %s2484_s13 = smov 0   ;;  %s2486_s14 = smov 0  }
   0x4   :  { %s2488_s15 = smov 0   ;;  %s2490_s16 = smov 0  }
   0x5 LB: > { %3806 = sst [smem:[#allocation8_spill]] %s2415_s15  ;;  %s2505_s17 = sadd.s32 4294967295, %s2419_s16   ;;  %s2419_s16 = sphi %s2490_s16, %s3821_s16   ;;  %s2415_s15 = sphi %s2488_s15, %s3823_s15   ;;  %s2411_s14 = sphi %s2486_s14, %s3825_s14   ;;  %s2407_s13 = sphi %s2484_s13, %s3824_s13  }
   0x6   : > { %s2188_s18 = sadd.s32 4294967294, %s2419_s16   ;;  %s2509_s19 = sadd.s32 1, %s2419_s16  }
   0x7   : > { %3807 = sst [smem:[#allocation9_spill]] %s2509_s19  ;;  %s245_s20 = sadd.s32 1, %s2415_s15 }
   0x8   : > { %s242_s21 = ssub.s32 %s2419_s16, %s2509_s19  ;;  %p255_p0 = scmp.ne.s32.totalorder %s2415_s15, %s2411_s14 }
   0x9   : > { %p243_p1 = scmp.eq.s32.totalorder %s242_s21, 0  ;;  %p256_p2 = scmp.eq.s32.totalorder %s2505_s17, 1 }
   0xa   : > { %p261_p3 = scmp.ne.s32.totalorder %s2411_s14, %s2407_s13  ;;  %p262_p4 = scmp.eq.s32.totalorder %s2188_s18, 1 }
   0xb   : > { %s2520_s22 = scalar_select %p243_p1, %s2415_s15, %s245_s20  }
   0xc   : > { %p2522_p5 = por %p256_p2, %p255_p0  ;;  %p2526_p6 = por %p262_p4, %p261_p3 }
   0xd   : > { %3808 = sst [smem:[#allocation10_spill]] %s2520_s22  ;;  %p2191_p7 = scmp.ge.s32.totalorder %s2419_s16, 1 }
   0xe   : > { %s3810_s24 = scalar_select %p2526_p6, 1, 0 }
   0xf   : > { %p315_p8 = scmp.lt.s32.totalorder %s2419_s16, 3 }
  0x10   : > { %3811 = sst [smem:[#allocation11_spill]] %s3810_s24 }
  0x11   : > { %p316_p9 = pnand %p2191_p7, %p315_p8 }
  0x12   : > { %p352_p10 = scmp.lt.s32.totalorder (!%p316_p9), %s2505_s17, 1  ;;  %s3812_s0 = sld [smem:[#allocation12_spill]] (!%p316_p9) }
  0x13   : > { %319 = sbr.rel (%p316_p9) target bundleno = 1387 (0x56b), region = 60  ;;  %s3797_s30 = smov (!%p316_p9), 16  }
  0x14   : > { %s3791_s11 = smov (!%p316_p9), 48   ;;  %s3789_s12 = smov (!%p316_p9), 80  }
  0x15   : > { %s3799_s18 = smov (!%p316_p9), 32   ;;  %s3787_s20 = smov (!%p316_p9), 64  }
  0x16   : > { %s3793_s21 = smov (!%p316_p9), 96   ;;  %s3818_s27 = smov (!%p316_p9), 16  }
  0x17   : > { %s3819_s24 = smov (!%p316_p9), 32   ;;  %s350_s15 = sand.u32 (!%p316_p9), 1, %s2411_s14  }
  0x18   : > { %s353_s25 = scalar_select %p352_p10, %s2505_s17, 1  ;;  %v807_v30 = vld [vmem:[%s3777_s1 + $0xf0] sm:$0xff]  ;;  %v808_v31 = vld [vmem:[%s3777_s1 + $0xf8] sm:$0xff]  ;;  %v805_v32 = vld [vmem:[%s3777_s1 + $0xe0] sm:$0xff]  ;;  %vm358_vm0 = vcmask 130048   ;;  %v2428_v60 = vmov 0.0  }
  0x19   : > { %834 = vmatpush.msra.mxu0 %v807_v30  ;;  %910 = vmatpush.msra.mxu2 %v808_v31  ;;  %v806_v33 = vld [vmem:[%s3777_s1 + $0xe8] sm:$0xff]  ;;  %v803_v34 = vld [vmem:[%s3777_s1 + $0xd0] sm:$0xff]  ;;  %v804_v35 = vld [vmem:[%s3777_s1 + $0xd8] sm:$0xff]  ;;  %357 = vst [vmem:[#allocation2] sm:$0xff] %v2428_v60  ;;  %vm376_vm1 = vcmask 523264   ;;  %vm467_vm2 = vcmask 261120  }
  0x1a   : > { %s2307_s26 = smul.u32 144, %s353_s25  ;;  %s3795_s25 = smov 112   ;;  %v801_v39 = vld [vmem:[%s3777_s1 + $0xc0] sm:$0xff]  ;;  %v802_v40 = vld [vmem:[%s3777_s1 + $0xc8] sm:$0xff]  ;;  %v799_v41 = vld [vmem:[%s3777_s1 + $0xb0] sm:$0xff]  ;;  %359 = vst.msk [vmem:[#allocation2 + $0x8] sm:$0xff] %vm358_vm0, %v2428_v60 }
  0x1b   : > { %835 = vmatpush.msra.mxu0 %v805_v32  ;;  %911 = vmatpush.msra.mxu2 %v806_v33  ;;  %v800_v42 = vld [vmem:[%s3777_s1 + $0xb8] sm:$0xff]  ;;  %v797_v43 = vld [vmem:[%s3777_s1 + $0xa0] sm:$0xff]  ;;  %v798_v46 = vld [vmem:[%s3777_s1 + $0xa8] sm:$0xff]  ;;  %360 = vst [vmem:[#allocation2 + $0x10] sm:$0xff] %v2428_v60  ;;  %vm469_vm3 = vcmask 392192   ;;  %vm472_vm4 = vcmask 654336  }
  0x1c   : > { %s2537_s29 = scalar_lea.vmem %s3812_s0, %s2307_s26  ;;  %s3815_s26 = smov 80   ;;  %v795_v47 = vld [vmem:[%s3777_s1 + $0x90] sm:$0xff]  ;;  %v796_v49 = vld [vmem:[%s3777_s1 + $0x98] sm:$0xff]  ;;  %v793_v50 = vld [vmem:[%s3777_s1 + $0x80] sm:$0xff]  ;;  %361 = vst.msk [vmem:[#allocation2 + $0x18] sm:$0xff] %vm358_vm0, %v2428_v60  ;;  %vm474_vm5 = vcmask 785408  }
  0x1d   : > { %v428_v0 = vld [vmem:[%s2537_s29 + $0x1] sm:$0x7f]  ;;  %v2193_v1 = vld [vmem:[%s2537_s29 + $0x10] sm:$0x7f]  ;;  %836 = vmatpush.msra.mxu0 %v803_v34  ;;  %912 = vmatpush.msra.mxu2 %v804_v35  ;;  %s3816_s0 = smov 96   ;;  %v794_v51 = vld [vmem:[%s3777_s1 + $0x88] sm:$0xff] }
  0x1e   : > { %439 = vrot.lane.b32.xlu0 %v428_v0, %s3797_s30  ;;  %447 = vrot.lane.b32.xlu1 %v2193_v1, %s3791_s11  ;;  %v2195_v2 = vld [vmem:[%s2537_s29 + $0x12] sm:$0x7f]  ;;  %v429_v3 = vld [vmem:[%s2537_s29 + $0x2] sm:$0x7f]  ;;  %362 = vst [vmem:[#allocation2 + $0x20] sm:$0xff] %v2428_v60  ;;  %vm476_vm6 = vcmask 916480  }
  0x1f   : > { %455 = vrot.lane.b32.xlu2 %v2195_v2, %s3789_s12  ;;  %v2194_v4 = vld [vmem:[%s2537_s29 + $0x11] sm:$0x7f]  ;;  %v2196_v5 = vld [vmem:[%s2537_s29 + $0x20] sm:$0x7f]  ;;  %837 = vmatpush.msra.mxu0 %v801_v39  ;;  %v792_v53 = vld [vmem:[%s3777_s1 + $0x78] sm:$0xff]  ;;  %363 = vst.msk [vmem:[#allocation2 + $0x28] sm:$0xff] %vm358_vm0, %v2428_v60 }
  0x20   : > { %v2197_v6 = vld [vmem:[%s2537_s29 + $0x21] sm:$0x7f]  ;;  %v2200_v7 = vld [vmem:[%s2537_s29 + $0x11] sm:$0x7f]  ;;  %913 = vmatpush.msra.mxu2 %v802_v40  ;;  %v790_v57 = vld [vmem:[%s3777_s1 + $0x68] sm:$0xff]  ;;  %364 = vst [vmem:[#allocation2 + $0x30] sm:$0xff] %v2428_v60 }
  0x21   : > { %v2201_v8 = vld [vmem:[%s2537_s29 + $0x12] sm:$0x7f]  ;;  %v2202_v9 = vld [vmem:[%s2537_s29 + $0x20] sm:$0x7f]  ;;  %838 = vmatpush.msra.mxu0 %v799_v41  ;;  %v786_v63 = vld [vmem:[%s3777_s1 + $0x48] sm:$0xff]  ;;  %365 = vst.msk [vmem:[#allocation2 + $0x38] sm:$0xff] %vm358_vm0, %v2428_v60 }
  0x22   : > { %v2203_v10 = vld [vmem:[%s2537_s29 + $0x21] sm:$0x7f]  ;;  %v2205_v12 = vld [vmem:[%s2537_s29 + $0x30] sm:$0x7f]  ;;  %914 = vmatpush.msra.mxu2 %v800_v42  ;;  %v788_v61 = vld [vmem:[%s3777_s1 + $0x58] sm:$0xff]  ;;  %366 = vst [vmem:[#allocation2 + $0x40] sm:$0xff] %v2428_v60 }
  0x23   : > { %v2204_v11 = vld [vmem:[%s2537_s29 + $0x22] sm:$0x7f]  ;;  %v2206_v13 = vld [vmem:[%s2537_s29 + $0x31] sm:$0x7f]  ;;  %839 = vmatpush.msra.mxu0 %v797_v43  ;;  %367 = vst.msk [vmem:[#allocation2 + $0x48] sm:$0xff] %vm358_vm0, %v2428_v60  ;;  %vm479_vm7 = vcmask 129024  }
  0x24   : > { %v2209_v14 = vld [vmem:[%s2537_s29 + $0x21] sm:$0x7f]  ;;  %v2211_v16 = vld [vmem:[%s2537_s29 + $0x30] sm:$0x7f]  ;;  %915 = vmatpush.msra.mxu2 %v798_v46  ;;  %368 = vst [vmem:[#allocation2 + $0x50] sm:$0xff] %v2428_v60  ;;  %vm409_vm8 = vcmask 516096  }
  0x25   : > { %v2210_v15 = vld [vmem:[%s2537_s29 + $0x22] sm:$0x7f]  ;;  %v2212_v17 = vld [vmem:[%s2537_s29 + $0x31] sm:$0x7f]  ;;  %840 = vmatpush.msra.mxu0 %v795_v47  ;;  %369 = vst.msk [vmem:[#allocation2 + $0x58] sm:$0xff] %vm358_vm0, %v2428_v60  ;;  %vm1118_vm9 = vcmask 522240  }
  0x26   : > { %443 = vrot.lane.b32.xlu0 %v429_v3, %s3799_s18  ;;  %451 = vrot.lane.b32.xlu1 %v2194_v4, %s3787_s20  ;;  %v2213_v18 = vld [vmem:[%s2537_s29 + $0x32] sm:$0x7f]  ;;  %v2214_v19 = vld [vmem:[%s2537_s29 + $0x40] sm:$0x7f]  ;;  %370 = vst [vmem:[#allocation2 + $0x60] sm:$0xff] %v2428_v60  ;;  %vm2096_vm10 = vcmask 80896  }
  0x27   : > { %459 = vrot.lane.b32.xlu2 %v2196_v5, %s3793_s21  ;;  %v2215_v20 = vld [vmem:[%s2537_s29 + $0x41] sm:$0x7f]  ;;  %v2218_v21 = vld [vmem:[%s2537_s29 + $0x31] sm:$0x7f]  ;;  %916 = vmatpush.msra.mxu2 %v796_v49  ;;  %v784_v4 = vld [vmem:[%s3777_s1 + $0x38] sm:$0xff]  ;;  %371 = vst.msk [vmem:[#allocation2 + $0x68] sm:$0xff] %vm358_vm0, %v2428_v60 }
  0x28   : > { %v2219_v22 = vld [vmem:[%s2537_s29 + $0x32] sm:$0x7f]  ;;  %v2220_v23 = vld [vmem:[%s2537_s29 + $0x40] sm:$0x7f]  ;;  %841 = vmatpush.msra.mxu0 %v793_v50  ;;  %372 = vst [vmem:[#allocation3] sm:$0xff] %v2428_v60  ;;  %vm2118_vm11 = vcmask 73728  }
  0x29   : > { %v2221_v24 = vld [vmem:[%s2537_s29 + $0x41] sm:$0x7f]  ;;  %v2223_v26 = vld [vmem:[%s2537_s29 + $0x50] sm:$0x7f]  ;;  %917 = vmatpush.msra.mxu2 %v794_v51  ;;  %373 = vst [vmem:[#allocation3 + $0x8] sm:$0xff] %v2428_v60 }
  0x2a   : > { %v2222_v25 = vld [vmem:[%s2537_s29 + $0x42] sm:$0x7f]  ;;  %v2224_v27 = vld [vmem:[%s2537_s29 + $0x51] sm:$0x7f]  ;;  %374 = vst [vmem:[#allocation3 + $0x10] sm:$0xff] %v2428_v60 }
  0x2b   : > { %v2227_v28 = vld [vmem:[%s2537_s29 + $0x41] sm:$0x7f]  ;;  %v2229_v36 = vld [vmem:[%s2537_s29 + $0x50] sm:$0x7f]  ;;  %918 = vmatpush.msra.mxu2 %v792_v53  ;;  %375 = vst [vmem:[#allocation3 + $0x18] sm:$0xff] %v2428_v60 }
  0x2c   : > { %v2228_v29 = vld [vmem:[%s2537_s29 + $0x42] sm:$0x7f]  ;;  %v2230_v37 = vld [vmem:[%s2537_s29 + $0x51] sm:$0x7f]  ;;  %377 = vst.msk [vmem:[#allocation3 + $0x20] sm:$0xff] %vm376_vm1, %v2428_v60 }
  0x2d   : > { %v2231_v38 = vld [vmem:[%s2537_s29 + $0x52] sm:$0x7f]  ;;  %v2232_v44 = vld [vmem:[%s2537_s29 + $0x60] sm:$0x7f]  ;;  %919 = vmatpush.msra.mxu2 %v790_v57  ;;  %378 = vst [vmem:[#allocation3 + $0x28] sm:$0xff] %v2428_v60 }
  0x2e   : > { %463 = vrot.lane.b32.xlu0 %v2197_v6, %s3795_s25  ;;  %492 = vrot.lane.b32.xlu1 %v2200_v7, %s3797_s30  ;;  %v2233_v45 = vld [vmem:[%s2537_s29 + $0x61] sm:$0x7f]  ;;  %v2236_v48 = vld [vmem:[%s2537_s29 + $0x51] sm:$0x7f]  ;;  %379 = vst [vmem:[#allocation3 + $0x30] sm:$0xff] %v2428_v60 }
  0x2f   : > { %496 = vrot.lane.b32.xlu2 %v2201_v8, %s3799_s18  ;;  %v791_v52 = vld [vmem:[%s3777_s1 + $0x70] sm:$0xff]  ;;  %v2238_v55 = vld [vmem:[%s2537_s29 + $0x60] sm:$0x7f]  ;;  %920 = vmatpush.msra.mxu2 %v788_v61  ;;  %v782_v7 = vld [vmem:[%s3777_s1 + $0x28] sm:$0xff]  ;;  %380 = vst [vmem:[#allocation3 + $0x38] sm:$0xff] %v2428_v60 }
  0x30   : > { %v2237_v54 = vld [vmem:[%s2537_s29 + $0x52] sm:$0x7f]  ;;  %842 = vmatpush.msra.mxu0 %v791_v52  ;;  %v789_v56 = vld [vmem:[%s3777_s1 + $0x60] sm:$0xff]  ;;  %381 = vst [vmem:[#allocation3 + $0x40] sm:$0xff] %v2428_v60 }
  0x31   : > { %v2239_v58 = vld [vmem:[%s2537_s29 + $0x61] sm:$0x7f]  ;;  %v787_v59 = vld [vmem:[%s3777_s1 + $0x50] sm:$0xff]  ;;  %921 = vmatpush.msra.mxu2 %v786_v63  ;;  %382 = vst.msk [vmem:[#allocation3 + $0x48] sm:$0xff] %vm376_vm1, %v2428_v60 }
  0x32   : > { %843 = vmatpush.msra.mxu0 %v789_v56  ;;  %v785_v62 = vld [vmem:[%s3777_s1 + $0x40] sm:$0xff]  ;;  %v783_v0 = vld [vmem:[%s3777_s1 + $0x30] sm:$0xff]  ;;  %383 = vst [vmem:[#allocation3 + $0x50] sm:$0xff] %v2428_v60 }
  0x33   : > { %v2240_v1 = vld [vmem:[%s2537_s29 + $0x62] sm:$0x7f]  ;;  %v2241_v2 = vld [vmem:[%s2537_s29 + $0x70] sm:$0x7f]  ;;  %922 = vmatpush.msra.mxu2 %v784_v4  ;;  %384 = vst [vmem:[#allocation3 + $0x58] sm:$0xff] %v2428_v60 }
  0x34   : > { %844 = vmatpush.msra.mxu0 %v787_v59  ;;  %v781_v5 = vld [vmem:[%s3777_s1 + $0x20] sm:$0xff]  ;;  %v2242_v6 = vld [vmem:[%s2537_s29 + $0x71] sm:$0x7f]  ;;  %385 = vst [vmem:[#allocation3 + $0x60] sm:$0xff] %v2428_v60 }
  0x35   : > { %v811_v8 = vld [vmem:[%s3777_s1 + $0x110] sm:$0xff]  ;;  %923 = vmatpush.msra.mxu2 %v782_v7  ;;  %386 = vst [vmem:[#allocation3 + $0x68] sm:$0xff] %v2428_v60  ;;  %v2245_v39 = vld [vmem:[%s2537_s29 + $0x61] sm:$0x7f] }
  0x36   : > { %500 = vrot.lane.b32.xlu0 %v2202_v9, %s3791_s11  ;;  %504 = vrot.lane.b32.xlu1 %v2203_v10, %s3787_s20  ;;  %v779_v9 = vld [vmem:[%s3777_s1 + $0x10] sm:$0xff]  ;;  %v812_v10 = vld [vmem:[%s3777_s1 + $0x118] sm:$0xff]  ;;  %387 = vst.msk [vmem:[#allocation3 + $0x70] sm:$0xff] %vm376_vm1, %v2428_v60 }
  0x37   : > { %508 = vrot.lane.b32.xlu2 %v2204_v11, %s3789_s12  ;;  %845 = vmatpush.msra.mxu0 %v785_v62  ;;  %v780_v11 = vld [vmem:[%s3777_s1 + $0x18] sm:$0xff]  ;;  %388 = vst [vmem:[#allocation3 + $0x78] sm:$0xff] %v2428_v60  ;;  %v2199_v33 = vld [vmem:[%s2537_s29 + $0x10] sm:$0x7f]  ;;  %v2246_v40 = vld [vmem:[%s2537_s29 + $0x62] sm:$0x7f] }
  0x38   : > { %886 = vmatpush.msra.mxu1 %v811_v8  ;;  %962 = vmatpush.msra.mxu3 %v812_v10  ;;  %389 = vst [vmem:[#allocation3 + $0x80] sm:$0xff] %v2428_v60  ;;  %v2248_v46 = vld [vmem:[%s2537_s29 + $0x71] sm:$0x7f]  ;;  %v2198_v51 = vld [vmem:[%s2537_s29 + $0x22] sm:$0x7f] }
  0x39   : > { %846 = vmatpush.msra.mxu0 %v783_v0  ;;  %924 = vmatpush.msra.mxu2 %v780_v11  ;;  %390 = vst [vmem:[#allocation3 + $0x88] sm:$0xff] %v2428_v60  ;;  %v2249_v47 = vld [vmem:[%s2537_s29 + $0x72] sm:$0x7f]  ;;  %v2208_v52 = vld [vmem:[%s2537_s29 + $0x20] sm:$0x7f] }
  0x3a   : > { %391 = vst [vmem:[#allocation3 + $0x90] sm:$0xff] %v2428_v60  ;;  %v2207_v56 = vld [vmem:[%s2537_s29 + $0x32] sm:$0x7f]  ;;  %v2251_v57 = vld [vmem:[%s2537_s29 + $0x81] sm:$0x7f] }
  0x3b   : > { %847 = vmatpush.msra.mxu0 %v781_v5  ;;  %392 = vst.msk [vmem:[#allocation3 + $0x98] sm:$0xff] %vm376_vm1, %v2428_v60  ;;  %v2216_v61 = vld [vmem:[%s2537_s29 + $0x42] sm:$0x7f]  ;;  %v2247_v63 = vld [vmem:[%s2537_s29 + $0x70] sm:$0x7f] }
  0x3c   : > { %393 = vst [vmem:[#allocation3 + $0xa0] sm:$0xff] %v2428_v60  ;;  %v2250_v11 = vld [vmem:[%s2537_s29 + $0x80] sm:$0x7f] }
  0x3d   : > { %848 = vmatpush.msra.mxu0 %v779_v9  ;;  %394 = vst [vmem:[#allocation3 + $0xa8] sm:$0xff] %v2428_v60  ;;  %v2225_v9 = vld [vmem:[%s2537_s29 + $0x52] sm:$0x7f] }
  0x3e   : > { %512 = vrot.lane.b32.xlu0 %v2205_v12, %s3793_s21  ;;  %516 = vrot.lane.b32.xlu1 %v2206_v13, %s3795_s25  ;;  %v809_v12 = vld [vmem:[%s3777_s1 + $0x100] sm:$0xff]  ;;  %395 = vst [vmem:[#allocation3 + $0xb0] sm:$0xff] %v2428_v60 }
  0x3f   : > { %539 = vrot.lane.b32.xlu2 %v2209_v14, %s3797_s30  ;;  %v777_v13 = vld [vmem:[%s3777_s1] sm:$0xff]  ;;  %v810_v14 = vld [vmem:[%s3777_s1 + $0x108] sm:$0xff]  ;;  %887 = vmatpush.msra.mxu1 %v809_v12  ;;  %396 = vst [vmem:[#allocation3 + $0xb8] sm:$0xff] %v2428_v60 }
  0x40   : > { %963 = vmatpush.msra.mxu3 %v810_v14  ;;  %849 = vmatpush.msra.mxu0 %v777_v13  ;;  %397 = vst.msk [vmem:[#allocation3 + $0xc0] sm:$0xff] %vm376_vm1, %v2428_v60  ;;  %v2217_v13 = vld [vmem:[%s2537_s29 + $0x30] sm:$0x7f] }
  0x41   : > { %398 = vst [vmem:[#allocation3 + $0xc8] sm:$0xff] %v2428_v60 }
  0x42   : > { %399 = vst [vmem:[#allocation3 + $0xd0] sm:$0xff] %v2428_v60 }
  0x43   : > { %400 = vst [vmem:[#allocation3 + $0xd8] sm:$0xff] %v2428_v60 }
  0x44   : > { %401 = vst [vmem:[#allocation3 + $0xe0] sm:$0xff] %v2428_v60 }
  0x45   : > { %402 = vst.msk [vmem:[#allocation3 + $0xe8] sm:$0xff] %vm376_vm1, %v2428_v60 }
  0x46   : > { %543 = vrot.lane.b32.xlu0 %v2210_v15, %s3799_s18  ;;  %547 = vrot.lane.b32.xlu1 %v2211_v16, %s3791_s11  ;;  %v778_v15 = vld [vmem:[%s3777_s1 + $0x8] sm:$0xff]  ;;  %403 = vst [vmem:[#allocation3 + $0xf0] sm:$0xff] %v2428_v60 }
  0x47   : > { %551 = vrot.lane.b32.xlu2 %v2212_v17, %s3787_s20  ;;  %925 = vmatpush.msra.mxu2 %v778_v15  ;;  %404 = vst [vmem:[#allocation3 + $0xf8] sm:$0xff] %v2428_v60 }
  0x48   : > { %405 = vst [vmem:[#allocation3 + $0x100] sm:$0xff] %v2428_v60 }
  0x49   : > { %406 = vst [vmem:[#allocation3 + $0x108] sm:$0xff] %v2428_v60 }
  0x4a   : > { %407 = vst.msk [vmem:[#allocation3 + $0x110] sm:$0xff] %vm376_vm1, %v2428_v60 }
  0x4b   : > { %408 = vst.msk [vmem:[#allocation4] sm:$0xff] %vm376_vm1, %v2428_v60 }
  0x4c   : > { %411 = vst.msk [vmem:[#allocation4 + $0x10] sm:$0xff] %vm376_vm1, %v2428_v60 }
  0x4d   : > { %413 = vst.msk [vmem:[#allocation4 + $0x20] sm:$0xff] %vm376_vm1, %v2428_v60 }
  0x4e   : > { %555 = vrot.lane.b32.xlu0 %v2213_v18, %s3789_s12  ;;  %559 = vrot.lane.b32.xlu1 %v2214_v19, %s3793_s21  ;;  %v427_v19 = vld [vmem:[%s2537_s29] sm:$0x7f]  ;;  %415 = vst.msk [vmem:[#allocation4 + $0x30] sm:$0xff] %vm376_vm1, %v2428_v60 }
  0x4f   : > { %563 = vrot.lane.b32.xlu2 %v2215_v20, %s3795_s25  ;;  %417 = vst.msk [vmem:[#allocation4 + $0x40] sm:$0xff] %vm376_vm1, %v2428_v60 }
  0x50   : > { %419 = vst.msk [vmem:[#allocation4 + $0x50] sm:$0xff] %vm376_vm1, %v2428_v60 }
  0x51   : > { %421 = vst.msk [vmem:[#allocation4 + $0x60] sm:$0xff] %vm376_vm1, %v2428_v60 }
  0x52   : > { %423 = vst.msk [vmem:[#allocation4 + $0x70] sm:$0xff] %vm376_vm1, %v2428_v60 }
  0x53   : > { %425 = vst.msk [vmem:[#allocation4 + $0x80] sm:$0xff] %vm376_vm1, %v2428_v60 }
  0x54   : > { %480 = vst.msk [vmem:[#allocation2 + $0x8] sm:$0x7f] %vm479_vm7, %v2198_v51 }
  0x55   : > { %527 = vst.msk [vmem:[#allocation2 + $0x18] sm:$0x7f] %vm479_vm7, %v2207_v56 }
  0x56   : > { %586 = vrot.lane.b32.xlu0 %v2218_v21, %s3797_s30  ;;  %590 = vrot.lane.b32.xlu1 %v2219_v22, %s3799_s18  ;;  %574 = vst.msk [vmem:[#allocation2 + $0x28] sm:$0x7f] %vm479_vm7, %v2216_v61 }
  0x57   : > { %594 = vrot.lane.b32.xlu2 %v2220_v23, %s3791_s11  ;;  %s3813_s11 = smov 48   ;;  %621 = vst.msk [vmem:[#allocation2 + $0x38] sm:$0x7f] %vm479_vm7, %v2225_v9 }
  0x58   : > { %412 = vst.msk [vmem:[#allocation4 + $0x18] sm:$0x1] %vm409_vm8, %v2428_v60 }
  0x59   : > { %410 = vst.msk [vmem:[#allocation4 + $0x8] sm:$0x1] %vm409_vm8, %v2428_v60 }
  0x5a   : > { %414 = vst.msk [vmem:[#allocation4 + $0x28] sm:$0x1] %vm409_vm8, %v2428_v60 }
  0x5b   : > { %416 = vst.msk [vmem:[#allocation4 + $0x38] sm:$0x1] %vm409_vm8, %v2428_v60 }
  0x5c   : > { %v766_v12 = vld [vmem:[#allocation2 + $0x18] sm:$0xff]  ;;  %418 = vst.msk [vmem:[#allocation4 + $0x48] sm:$0x1] %vm409_vm8, %v2428_v60 }
  0x5d   : > { %420 = vst.msk [vmem:[#allocation4 + $0x58] sm:$0x1] %vm409_vm8, %v2428_v60 }
  0x5e   : > { %598 = vrot.lane.b32.xlu0 %v2221_v24, %s3787_s20  ;;  %602 = vrot.lane.b32.xlu1 %v2222_v25, %s3789_s12  ;;  %s3814_s12 = smov 64   ;;  %422 = vst.msk [vmem:[#allocation4 + $0x68] sm:$0x1] %vm409_vm8, %v2428_v60  ;;  %s2129_s20 = scalar_lea.hbm %s3786_s10, %s2505_s17 }
  0x5f   : > { %606 = vrot.lane.b32.xlu2 %v2223_v26, %s3793_s21  ;;  %424 = vst.msk [vmem:[#allocation4 + $0x78] sm:$0x1] %vm409_vm8, %v2428_v60 }
  0x60   : > { %426 = vst.msk [vmem:[#allocation4 + $0x88] sm:$0x1] %vm409_vm8, %v2428_v60 }
  0x66   : > { %610 = vrot.lane.b32.xlu0 %v2224_v27, %s3795_s25  ;;  %633 = vrot.lane.b32.xlu1 %v2227_v28, %s3797_s30  ;;  %s351_s25 = scalar_lea.vmem [#allocation5], %s350_s15 }
  0x67   : > { %637 = vrot.lane.b32.xlu2 %v2228_v29, %s3799_s18  ;;  %s3817_s18 = smov 112   ;;  %s2131_s28 = sshll.u32 %s351_s25, 4  ;;  %s2132_s28 = int_to_ptr.vmem [resolvable:$true] %s2131_s28 }
  0x6e   : > { %641 = vrot.lane.b32.xlu0 %v2229_v36, %s3813_s11  ;;  %645 = vrot.lane.b32.xlu1 %v2230_v37, %s3814_s12 }
  0x6f   : > { %649 = vrot.lane.b32.xlu2 %v2231_v38, %s3815_s26 }
  0x76   : > { %653 = vrot.lane.b32.xlu0 %v2232_v44, %s3816_s0  ;;  %657 = vrot.lane.b32.xlu1 %v2233_v45, %s3817_s18 }
  0x77   : > { %680 = vrot.lane.b32.xlu2 %v2236_v48, %s3818_s27 }
  0x79   : > { %v2701_v3 = vpop.permute.xlu2 %455 }
  0x7e   : > { %684 = vrot.lane.b32.xlu0 %v2237_v54, %s3819_s24  ;;  %688 = vrot.lane.b32.xlu1 %v2238_v55, %s3813_s11 }
  0x7f   : > { %692 = vrot.lane.b32.xlu2 %v2239_v58, %s3814_s12 }
  0x81   : > { %v460_v16 = vpop.permute.xlu2 %459 }
  0x86   : > { %696 = vrot.lane.b32.xlu0 %v2240_v1, %s3815_s26  ;;  %700 = vrot.lane.b32.xlu1 %v2241_v2, %s3816_s0  ;;  %v764_v1 = vld [vmem:[#allocation2 + $0x8] sm:$0xff] }
  0x87   : > { %704 = vrot.lane.b32.xlu2 %v2242_v6, %s3817_s18  ;;  %2253 = vmatmul.msk.f32.vlgmr.msra.gmra.mxu1 %vm358_vm0, %v764_v1 }
  0x88   : > { %2260 = vmatmul.msk.f32.vlgmr.msra.gmra.mxu3 %vm358_vm0, %v764_v1 }
  0x89   : > { %v497_v20 = vpop.permute.xlu2 %496 }
  0x8e   : > { %727 = vrot.lane.b32.xlu0 %v2245_v39, %s3818_s27  ;;  %731 = vrot.lane.b32.xlu1 %v2246_v40, %s3819_s24 }
  0x8f   : > { %735 = vrot.lane.b32.xlu2 %v2247_v63, %s3813_s11  ;;  %2254 = vmatmul.msk.f32.gmra.mxu1 %vm358_vm0, %v766_v12  ;;  %s2133_s11 = sshll.u32 %s2129_s20, 4  ;;  %s2134_s11 = int_to_ptr.hbm [resolvable:$true] %s2133_s11 }
  0x90   : > { %v440_v17 = vpop.permute.xlu0 %439  ;;  %v448_v18 = vpop.permute.xlu1 %447  ;;  %2261 = vmatmul.msk.f32.gmra.mxu3 %vm358_vm0, %v766_v12 }
  0x91   : > { %v466_v21 = vsel %vm358_vm0, %v427_v19, %v440_v17  ;;  %v509_v32 = vpop.permute.xlu2 %508 }
  0x96   : > { %739 = vrot.lane.b32.xlu0 %v2248_v46, %s3814_s12  ;;  %743 = vrot.lane.b32.xlu1 %v2249_v47, %s3815_s26  ;;  %s2121_s26 = scalar_lea.sflag [#allocation6], %s350_s15 }
  0x97   : > { %747 = vrot.lane.b32.xlu2 %v2250_v11, %s3816_s0 }
  0x98   : > { %v444_v22 = vpop.permute.xlu0 %443  ;;  %v452_v23 = vpop.permute.xlu1 %451 }
  0x99   : > { %v468_v24 = vsel %vm467_vm2, %v466_v21, %v444_v22  ;;  %v540_v38 = vpop.permute.xlu2 %539 }
  0x9a   : > { %v470_v25 = vsel %vm469_vm3, %v468_v24, %v448_v18  ;;  %v566_v58 = vsel %vm358_vm0, %v2208_v52, %v540_v38  ;;  %v2235_v52 = vld [vmem:[%s2537_s29 + $0x50] sm:$0x7f] }
  0x9b   : > { %v471_v26 = vsel %vm376_vm1, %v470_v25, %v452_v23 }
  0x9c   : > { %v473_v27 = vsel %vm472_vm4, %v471_v26, %v2701_v3  ;;  %v2234_v26 = vld [vmem:[%s2537_s29 + $0x62] sm:$0x7f] }
  0x9d   : > { %v475_v28 = vsel %vm474_vm5, %v473_v27, %v460_v16  ;;  %668 = vst.msk [vmem:[#allocation2 + $0x48] sm:$0x7f] %vm479_vm7, %v2234_v26 }
  0x9e   : > { %751 = vrot.lane.b32.xlu0 %v2251_v57, %s3817_s18  ;;  %s2371_s18 = sshra.s32 %s2134_s11, 4  ;;  %s2372_s18 = int_to_ptr.hbm [resolvable:$true] %s2371_s18 }
  0x9f   : > { %s2373_s27 = scalar_lea.hbm %s2372_s18, 1  ;;  %p2378_p0 = scmp.lt.s32.totalorder %s2372_s18, %s3786_s10 }
  0xa0   : > { %v464_v29 = vpop.permute.xlu0 %463  ;;  %v493_v30 = vpop.permute.xlu1 %492  ;;  %p2374_p11 = scmp.ne.s32.totalorder %s2372_s18, %s2373_s27 }
  0xa1   : > { %v477_v31 = vsel %vm476_vm6, %v475_v28, %v464_v29  ;;  %v519_v36 = vsel %vm358_vm0, %v2199_v33, %v493_v30  ;;  %v552_v48 = vpop.permute.xlu2 %551  ;;  %v770_v28 = vld [vmem:[#allocation2 + $0x38] sm:$0xff] }
  0xa2   : > { %478 = vst [vmem:[#allocation2] sm:$0x7f] %v477_v31  ;;  %v520_v41 = vsel %vm467_vm2, %v519_v36, %v497_v20  ;;  %v768_v20 = vld [vmem:[#allocation2 + $0x28] sm:$0xff]  ;;  %p2375_p12 = pnand %p2374_p11, %p2522_p5 }
  0xa3   : > { %2255 = vmatmul.msk.f32.gmra.mxu1 %vm358_vm0, %v768_v20  ;;  %2262 = vmatmul.msk.f32.gmra.mxu3 %vm358_vm0, %v768_v20  ;;  %v986_v20 = vld [vmem:[%s3778_s2] sm:$0x3] }
  0xa4   : > { %v772_v36 = vld [vmem:[#allocation2 + $0x48] sm:$0xff]  ;;  %p2376_p13 = pneg %p2375_p12 }
  0xa8   : > { %v501_v34 = vpop.permute.xlu0 %500  ;;  %v505_v35 = vpop.permute.xlu1 %504 }
  0xa9   : > { %v763_v37 = vld [vmem:[#allocation2] sm:$0xff]  ;;  %v521_v42 = vsel %vm469_vm3, %v520_v41, %v501_v34  ;;  %v564_v59 = vpop.permute.xlu2 %563 }
  0xaa   : > { %850 = vmatmul.f32.vlgmr.msra.gmra.mxu0 %v763_v37  ;;  %926 = vmatmul.f32.vlgmr.msra.gmra.mxu2 %v763_v37  ;;  %v522_v43 = vsel %vm376_vm1, %v521_v42, %v505_v35  ;;  %v2226_v34 = vld [vmem:[%s2537_s29 + $0x40] sm:$0x7f] }
  0xab   : > { %v523_v49 = vsel %vm472_vm4, %v522_v43, %v509_v32  ;;  %2256 = vmatmul.msk.f32.gmra.mxu1 %vm358_vm0, %v770_v28  ;;  %2263 = vmatmul.msk.f32.gmra.mxu3 %vm358_vm0, %v770_v28  ;;  %v2243_v43 = vld [vmem:[%s2537_s29 + $0x72] sm:$0x7f] }
  0xac   : > { %715 = vst.msk [vmem:[#allocation2 + $0x58] sm:$0x7f] %vm479_vm7, %v2243_v43 }
  0xb0   : > { %v513_v44 = vpop.permute.xlu0 %512  ;;  %v517_v45 = vpop.permute.xlu1 %516 }
  0xb1   : > { %v524_v50 = vsel %vm474_vm5, %v523_v49, %v513_v44  ;;  %v595_v7 = vpop.permute.xlu2 %594 }
  0xb2   : > { %v525_v53 = vsel %vm476_vm6, %v524_v50, %v517_v45 }
  0xb3   : > { %526 = vst [vmem:[#allocation2 + $0x10] sm:$0x7f] %v525_v53  ;;  %2257 = vmatmul.msk.f32.gmra.mxu1 %vm358_vm0, %v772_v36  ;;  %2264 = vmatmul.msk.f32.gmra.mxu3 %vm358_vm0, %v772_v36  ;;  %v774_v50 = vld [vmem:[#allocation2 + $0x58] sm:$0xff] }
  0xb8   : > { %v544_v54 = vpop.permute.xlu0 %543  ;;  %v548_v55 = vpop.permute.xlu1 %547 }
  0xb9   : > { %v567_v62 = vsel %vm467_vm2, %v566_v58, %v544_v54  ;;  %v607_v16 = vpop.permute.xlu2 %606 }
  0xba   : > { %v568_v0 = vsel %vm469_vm3, %v567_v62, %v548_v55  ;;  %v765_v5 = vld [vmem:[#allocation2 + $0x10] sm:$0xff] }
  0xbb   : > { %v569_v2 = vsel %vm376_vm1, %v568_v0, %v552_v48  ;;  %853 = vmatmul.f32.gmra.mxu0 %v765_v5  ;;  %929 = vmatmul.f32.gmra.mxu2 %v765_v5  ;;  %v2244_v5 = vld [vmem:[%s2537_s29 + $0x60] sm:$0x7f] }
  0xbc   : > { %2258 = vmatmul.msk.f32.gmra.mxu1 %vm358_vm0, %v774_v50  ;;  %2265 = vmatmul.msk.f32.gmra.mxu3 %vm358_vm0, %v774_v50 }
  0xc0   : > { %v556_v3 = vpop.permute.xlu0 %555  ;;  %v560_v4 = vpop.permute.xlu1 %559 }
  0xc1   : > { %v570_v6 = vsel %vm472_vm4, %v569_v2, %v556_v3  ;;  %v638_v24 = vpop.permute.xlu2 %637 }
  0xc2   : > { %v571_v8 = vsel %vm474_vm5, %v570_v6, %v560_v4 }
  0xc3   : > { %v572_v10 = vsel %vm476_vm6, %v571_v8, %v564_v59 }
  0xc4   : > { %573 = vst [vmem:[#allocation2 + $0x20] sm:$0x7f] %v572_v10 }
  0xc8   : > { %v587_v14 = vpop.permute.xlu0 %586  ;;  %v591_v15 = vpop.permute.xlu1 %590 }
  0xc9   : > { %v613_v17 = vsel %vm358_vm0, %v2217_v13, %v587_v14  ;;  %v650_v33 = vpop.permute.xlu2 %649 }
  0xca   : > { %v614_v19 = vsel %vm467_vm2, %v613_v17, %v591_v15 }
  0xcb   : > { %v767_v18 = vld [vmem:[#allocation2 + $0x20] sm:$0xff]  ;;  %v615_v23 = vsel %vm469_vm3, %v614_v19, %v595_v7 }
  0xcc   : > { %856 = vmatmul.f32.gmra.mxu0 %v767_v18  ;;  %932 = vmatmul.f32.gmra.mxu2 %v767_v18  ;;  %v2252_v18 = vld [vmem:[%s2537_s29 + $0x82] sm:$0x7f] }
  0xcd   : > { %762 = vst.msk [vmem:[#allocation2 + $0x68] sm:$0x7f] %vm479_vm7, %v2252_v18 }
  0xd0   : > { %v599_v21 = vpop.permute.xlu0 %598  ;;  %v603_v22 = vpop.permute.xlu1 %602 }
  0xd1   : > { %v616_v25 = vsel %vm376_vm1, %v615_v23, %v599_v21  ;;  %v681_v42 = vpop.permute.xlu2 %680  ;;  %v2917_v23 = vperm.slane %v986_v20, 0 }
  0xd2   : > { %v617_v27 = vsel %vm472_vm4, %v616_v25, %v603_v22  ;;  %v707_v55 = vsel %vm358_vm0, %v2235_v52, %v681_v42  ;;  %v1006_v22 = vld [vmem:[%s3779_s3] sm:$0x3] }
  0xd3   : > { %v618_v29 = vsel %vm474_vm5, %v617_v27, %v607_v16  ;;  %v2921_v28 = vperm.slane %v1006_v22, 0 }
  0xd8   : > { %v611_v30 = vpop.permute.xlu0 %610  ;;  %v634_v31 = vpop.permute.xlu1 %633 }
  0xd9   : > { %v619_v32 = vsel %vm476_vm6, %v618_v29, %v611_v30  ;;  %v660_v35 = vsel %vm358_vm0, %v2226_v34, %v634_v31  ;;  %v693_v51 = vpop.permute.xlu2 %692  ;;  %v2924_v31 = vperm.slane %v986_v20, 1 }
  0xda   : > { %620 = vst [vmem:[#allocation2 + $0x30] sm:$0x7f] %v619_v32  ;;  %v661_v39 = vsel %vm467_vm2, %v660_v35, %v638_v24  ;;  %v776_v24 = vld [vmem:[#allocation2 + $0x68] sm:$0xff] }
  0xdb   : > { %2259 = vmatmul.msk.f32.gmra.mxu1 %vm358_vm0, %v776_v24  ;;  %2266 = vmatmul.msk.f32.gmra.mxu3 %vm358_vm0, %v776_v24 }
  0xe0   : > { %v642_v37 = vpop.permute.xlu0 %641  ;;  %v646_v38 = vpop.permute.xlu1 %645 }
  0xe1   : > { %v769_v40 = vld [vmem:[#allocation2 + $0x30] sm:$0xff]  ;;  %v662_v41 = vsel %vm469_vm3, %v661_v39, %v642_v37  ;;  %v705_v59 = vpop.permute.xlu2 %704  ;;  %v2930_v37 = vperm.slane %v1006_v22, 1 }
  0xe2   : > { %859 = vmatmul.f32.gmra.mxu0 %v769_v40  ;;  %935 = vmatmul.f32.gmra.mxu2 %v769_v40  ;;  %v663_v44 = vsel %vm376_vm1, %v662_v41, %v646_v38 }
  0xe3   : > { %v664_v45 = vsel %vm472_vm4, %v663_v44, %v650_v33 }
  0xe8   : > { %v654_v46 = vpop.permute.xlu0 %653  ;;  %v658_v47 = vpop.permute.xlu1 %657 }
  0xe9   : > { %v665_v48 = vsel %vm474_vm5, %v664_v45, %v654_v46  ;;  %v736_v8 = vpop.permute.xlu2 %735 }
  0xea   : > { %v666_v49 = vsel %vm476_vm6, %v665_v48, %v658_v47 }
  0xeb   : > { %667 = vst [vmem:[#allocation2 + $0x40] sm:$0x7f] %v666_v49 }
  0xf0   : > { %v685_v53 = vpop.permute.xlu0 %684  ;;  %v689_v54 = vpop.permute.xlu1 %688 }
  0xf1   : > { %v708_v56 = vsel %vm467_vm2, %v707_v55, %v685_v53  ;;  %v748_v15 = vpop.permute.xlu2 %747 }
  0xf2   : > { %v771_v57 = vld [vmem:[#allocation2 + $0x40] sm:$0xff]  ;;  %v709_v58 = vsel %vm469_vm3, %v708_v56, %v689_v54 }
  0xf3   : > { %862 = vmatmul.f32.gmra.mxu0 %v771_v57  ;;  %938 = vmatmul.f32.gmra.mxu2 %v771_v57  ;;  %v710_v61 = vsel %vm376_vm1, %v709_v58, %v693_v51 }
  0xf8   : > { %v697_v62 = vpop.permute.xlu0 %696  ;;  %v701_v63 = vpop.permute.xlu1 %700 }
  0xf9   : > { %v711_v0 = vsel %vm472_vm4, %v710_v61, %v697_v62 }
  0xfa   : > { %v712_v1 = vsel %vm474_vm5, %v711_v0, %v701_v63 }
  0xfb   : > { %v713_v2 = vsel %vm476_vm6, %v712_v1, %v705_v59 }
  0xfc   : > { %714 = vst [vmem:[#allocation2 + $0x50] sm:$0x7f] %v713_v2 }
 0x100   : > { %v728_v4 = vpop.permute.xlu0 %727  ;;  %v732_v6 = vpop.permute.xlu1 %731 }
 0x101   : > { %v754_v7 = vsel %vm358_vm0, %v2244_v5, %v728_v4 }
 0x102   : > { %v755_v9 = vsel %vm467_vm2, %v754_v7, %v732_v6 }
 0x103   : > { %v773_v3 = vld [vmem:[#allocation2 + $0x50] sm:$0xff]  ;;  %v756_v10 = vsel %vm469_vm3, %v755_v9, %v736_v8 }
 0x104   : > { %865 = vmatmul.f32.gmra.mxu0 %v773_v3  ;;  %941 = vmatmul.f32.gmra.mxu2 %v773_v3  ;;  %v889_v25 = vpop.f32.mrf.mxu1 }
 0x108   : > { %v740_v11 = vpop.permute.xlu0 %739  ;;  %v744_v13 = vpop.permute.xlu1 %743 }
 0x109   : > { %v757_v12 = vsel %vm376_vm1, %v756_v10, %v740_v11 }
 0x10a   : > { %v758_v14 = vsel %vm472_vm4, %v757_v12, %v744_v13 }
 0x10b   : > { %v759_v16 = vsel %vm474_vm5, %v758_v14, %v748_v15  ;;  %v965_v33 = vpop.f32.mrf.mxu3 }
 0x10c   : > { %v892_v38 = vpop.f32.mrf.mxu1 }
 0x110   : > { %v752_v17 = vpop.permute.xlu0 %751 }
 0x111   : > { %v760_v19 = vsel %vm476_vm6, %v759_v16, %v752_v17 }
 0x112   : > { %761 = vst [vmem:[#allocation2 + $0x60] sm:$0x7f] %v760_v19 }
 0x113   : > { %v968_v46 = vpop.f32.mrf.mxu3 }
 0x119   : > { %v775_v26 = vld [vmem:[#allocation2 + $0x60] sm:$0xff] }
 0x11a   : > { %868 = vmatmul.f32.gmra.mxu0 %v775_v26  ;;  %944 = vmatmul.f32.gmra.mxu2 %v775_v26 }
 0x120   : > { %v895_v50 = vpop.f32.mrf.mxu1 }
 0x126   : > { %v971_v58 = vpop.f32.mrf.mxu3 }
 0x127   : > { %v851_v21 = vpop.f32.mrf.mxu0 }
 0x128   : > { %v890_v27 = vadd.f32 %v889_v25, %v851_v21  ;;  %v898_v1 = vpop.f32.mrf.mxu1 }
 0x12a   : > { %v992_v29 = vmul.f32 %v2917_v23, %v890_v27 }
 0x12c   : > { %v2927_v32 = vadd.f32 %v2921_v28, %v992_v29 }
 0x12d   : > { %v927_v30 = vpop.f32.mrf.mxu2 }
 0x12e   : > { %v966_v35 = vadd.f32 %v965_v33, %v927_v30  ;;  %v1026_v36 = vmax.f32 %v2927_v32, 0.0  ;;  %v974_v5 = vpop.f32.mrf.mxu3  ;;  %v1133_v33 = vld [vmem:[#allocation4 + $0x1] sm:$0x7f] }
 0x130   : > { %v993_v39 = vmul.f32 %v2924_v31, %v966_v35  ;;  %1047 = vrot.lane.b32.xlu1 %v1026_v36, %s3814_s12  ;;  %v901_v13 = vpop.f32.mrf.mxu1 }
 0x132   : > { %v2937_v41 = vadd.f32 %v2930_v37, %v993_v39 }
 0x134   : > { %v1027_v44 = vmax.f32 %v2937_v41, 0.0 }
 0x136   : > { %1082 = vrot.lane.b32.xlu2 %v1027_v44, %s3814_s12  ;;  %v977_v17 = vpop.f32.mrf.mxu3 }
 0x138   : > { %v854_v34 = vpop.f32.mrf.mxu0 }
 0x139   : > { %v893_v40 = vadd.f32 %v892_v38, %v854_v34  ;;  %v904_v26 = vpop.f32.mrf.mxu1 }
 0x13b   : > { %v994_v42 = vmul.f32 %v2917_v23, %v893_v40 }
 0x13d   : > { %v2942_v45 = vadd.f32 %v2921_v28, %v994_v42 }
 0x13e   : > { %v930_v43 = vpop.f32.mrf.mxu2 }
 0x13f   : > { %v969_v48 = vadd.f32 %v968_v46, %v930_v43  ;;  %v1028_v49 = vmax.f32 %v2942_v45, 0.0  ;;  %v980_v34 = vpop.f32.mrf.mxu3 }
 0x141   : > { %v995_v51 = vmul.f32 %v2924_v31, %v969_v48  ;;  %1049 = vrot.lane.b32.xlu0 %v1028_v49, %s3814_s12 }
 0x143   : > { %v2953_v53 = vadd.f32 %v2930_v37, %v995_v51 }
 0x145   : > { %v1029_v56 = vmax.f32 %v2953_v53, 0.0 }
 0x147   : > { %1084 = vrot.lane.b32.xlu1 %v1029_v56, %s3814_s12 }
 0x149   : > { %v857_v47 = vpop.f32.mrf.mxu0 }
 0x14a   : > { %v896_v52 = vadd.f32 %v895_v50, %v857_v47 }
 0x14c   : > { %v996_v54 = vmul.f32 %v2917_v23, %v896_v52 }
 0x14e   : > { %v2958_v57 = vadd.f32 %v2921_v28, %v996_v54 }
 0x14f   : > { %v933_v55 = vpop.f32.mrf.mxu2 }
 0x150   : > { %v972_v59 = vadd.f32 %v971_v58, %v933_v55  ;;  %v1030_v61 = vmax.f32 %v2958_v57, 0.0  ;;  %v1421_v57 = vld [vmem:[%s3780_s4 + $0x78] sm:$0xff] }
 0x151   : > { %1499 = vmatpush.msrb.mxu1 %v1421_v57  ;;  %v1435_v57 = vld [vmem:[%s3780_s4 + $0xe8] sm:$0xff] }
 0x152   : > { %v997_v62 = vmul.f32 %v2924_v31, %v972_v59  ;;  %1051 = vrot.lane.b32.xlu2 %v1030_v61, %s3814_s12 }
 0x154   : > { %v2969_v63 = vadd.f32 %v2930_v37, %v997_v62 }
 0x156   : > { %v1031_v0 = vmax.f32 %v2969_v63, 0.0 }
 0x158   : > { %1086 = vrot.lane.b32.xlu0 %v1031_v0, %s3814_s12 }
 0x15f   : > { %v860_v2 = vpop.f32.mrf.mxu0 }
 0x160   : > { %v899_v3 = vadd.f32 %v898_v1, %v860_v2 }
 0x162   : > { %v998_v4 = vmul.f32 %v2917_v23, %v899_v3 }
 0x164   : > { %v2977_v6 = vadd.f32 %v2921_v28, %v998_v4  ;;  %v983_v4 = vpop.f32.mrf.mxu3 }
 0x165   : > { %v936_v7 = vpop.f32.mrf.mxu2 }
 0x166   : > { %v975_v8 = vadd.f32 %v974_v5, %v936_v7  ;;  %v1032_v9 = vmax.f32 %v2977_v6, 0.0  ;;  %v1417_v6 = vld [vmem:[%s3780_s4 + $0x58] sm:$0xff] }
 0x168   : > { %v999_v10 = vmul.f32 %v2924_v31, %v975_v8  ;;  %1053 = vrot.lane.b32.xlu1 %v1032_v9, %s3814_s12 }
 0x16a   : > { %v2985_v11 = vadd.f32 %v2930_v37, %v999_v10 }
 0x16c   : > { %v1033_v12 = vmax.f32 %v2985_v11, 0.0  ;;  %v1418_v11 = vld [vmem:[%s3780_s4 + $0x60] sm:$0xff] }
 0x16e   : > { %1088 = vrot.lane.b32.xlu2 %v1033_v12, %s3814_s12 }
 0x170   : > { %v863_v14 = vpop.f32.mrf.mxu0 }
 0x171   : > { %v902_v15 = vadd.f32 %v901_v13, %v863_v14 }
 0x173   : > { %v1000_v16 = vmul.f32 %v2917_v23, %v902_v15 }
 0x175   : > { %v2993_v18 = vadd.f32 %v2921_v28, %v1000_v16  ;;  %v1416_v16 = vld [vmem:[%s3780_s4 + $0x50] sm:$0xff] }
 0x176   : > { %v939_v19 = vpop.f32.mrf.mxu2 }
 0x177   : > { %v978_v20 = vadd.f32 %v977_v17, %v939_v19  ;;  %v1034_v21 = vmax.f32 %v2993_v18, 0.0  ;;  %v1415_v19 = vld [vmem:[%s3780_s4 + $0x48] sm:$0xff] }
 0x178   : > { %v1132_v18 = vld [vmem:[#allocation4] sm:$0x7f] }
 0x179   : > { %v1001_v22 = vmul.f32 %v2924_v31, %v978_v20  ;;  %1055 = vrot.lane.b32.xlu0 %v1034_v21, %s3814_s12  ;;  %v1414_v20 = vld [vmem:[%s3780_s4 + $0x40] sm:$0xff] }
 0x17b   : > { %v3001_v24 = vadd.f32 %v2930_v37, %v1001_v22 }
 0x17d   : > { %v1035_v25 = vmax.f32 %v3001_v24, 0.0 }
 0x17f   : > { %1090 = vrot.lane.b32.xlu1 %v1035_v25, %s3814_s12 }
 0x181   : > { %v866_v27 = vpop.f32.mrf.mxu0 }
 0x182   : > { %v905_v29 = vadd.f32 %v904_v26, %v866_v27  ;;  %v1413_v26 = vld [vmem:[%s3780_s4 + $0x38] sm:$0xff]  ;;  %v1412_v27 = vld [vmem:[%s3780_s4 + $0x30] sm:$0xff] }
 0x184   : > { %v1002_v30 = vmul.f32 %v2917_v23, %v905_v29 }
 0x186   : > { %v3009_v35 = vadd.f32 %v2921_v28, %v1002_v30 }
 0x187   : > { %v942_v38 = vpop.f32.mrf.mxu2  ;;  %1142 = vrot.lane.b32.xlu1 %v1133_v33, %s3814_s12 }
 0x188   : > { %v981_v39 = vadd.f32 %v980_v34, %v942_v38  ;;  %v1036_v40 = vmax.f32 %v3009_v35, 0.0  ;;  %v1411_v34 = vld [vmem:[%s3780_s4 + $0x28] sm:$0xff]  ;;  %v1410_v38 = vld [vmem:[%s3780_s4 + $0x20] sm:$0xff] }
 0x18a   : > { %v1003_v42 = vmul.f32 %v2924_v31, %v981_v39  ;;  %1057 = vrot.lane.b32.xlu2 %v1036_v40, %s3814_s12  ;;  %v1409_v39 = vld [vmem:[%s3780_s4 + $0x18] sm:$0xff] }
 0x18c   : > { %v3018_v43 = vadd.f32 %v2930_v37, %v1003_v42 }
 0x18e   : > { %v1037_v46 = vmax.f32 %v3018_v43, 0.0  ;;  %v1436_v43 = vld [vmem:[%s3780_s4 + $0xf0] sm:$0xff] }
 0x190   : > { %1092 = vrot.lane.b32.xlu0 %v1037_v46, %s3814_s12  ;;  %v1083_v47 = vpop.permute.xlu2 %1082 }
 0x191   : > { %v1103_v50 = vmax.f32 %v1027_v44, %v1083_v47  ;;  %v907_v44 = vpop.f32.mrf.mxu1  ;;  %v1408_v47 = vld [vmem:[%s3780_s4 + $0x10] sm:$0xff] }
 0x197   : > { %v869_v41 = vpop.f32.mrf.mxu0 }
 0x198   : > { %v908_v32 = vadd.f32 %v907_v44, %v869_v41 }
 0x19a   : > { %v1004_v3 = vmul.f32 %v2917_v23, %v908_v32  ;;  %v1420_v23 = vld [vmem:[%s3780_s4 + $0x70] sm:$0xff] }
 0x19b   : > { %1500 = vmatpush.msrb.mxu1 %v1420_v23 }
 0x19c   : > { %v3052_v5 = vadd.f32 %v2921_v28, %v1004_v3 }
 0x1a2   : > { %v1048_v48 = vpop.permute.xlu1 %1047 }
 0x1a3   : > { %v1068_v51 = vmax.f32 %v1026_v36, %v1048_v48 }
 0x1a5   : > { %v1110_v52 = vmax.f32 %v1068_v51, %v1103_v50 }
 0x1a7   : > { %1119 = vst.msk [vmem:[#allocation4 + $0x11] sm:$0x7f] %vm1118_vm9, %v1110_v52  ;;  %v1407_v52 = vld [vmem:[%s3780_s4 + $0x8] sm:$0xff] }
 0x1ac   : > { %v1052_v36 = vpop.permute.xlu2 %1051 }
 0x1ad   : > { %v1070_v2 = vmax.f32 %v1030_v61, %v1052_v36 }
 0x1ae   : > { %v1167_v54 = vld [vmem:[#allocation4 + $0x11] sm:$0x7f] }
 0x1af   : > { %1176 = vrot.lane.b32.xlu2 %v1167_v54, %s3814_s12  ;;  %v1135_v17 = vld [vmem:[#allocation4 + $0x10] sm:$0x7f] }
 0x1b0   : > { %v1137_v30 = vld [vmem:[#allocation4 + $0x12] sm:$0x7f] }
 0x1b3   : > { %v1050_v55 = vpop.permute.xlu0 %1049 }
 0x1b4   : > { %v1069_v60 = vmax.f32 %v1028_v49, %v1050_v55  ;;  %v945_v49 = vpop.f32.mrf.mxu2 }
 0x1b5   : > { %v984_v7 = vadd.f32 %v983_v4, %v945_v49 }
 0x1b7   : > { %v1005_v28 = vmul.f32 %v2924_v31, %v984_v7  ;;  %v1419_v31 = vld [vmem:[%s3780_s4 + $0x68] sm:$0xff] }
 0x1b8   : > { %1501 = vmatpush.msrb.mxu1 %v1419_v31  ;;  %v1453_v31 = vld [vmem:[%s3780_s4 + $0x178] sm:$0xff] }
 0x1b9   : > { %v1085_v58 = vpop.permute.xlu1 %1084  ;;  %v3072_v15 = vadd.f32 %v2930_v37, %v1005_v28  ;;  %1575 = vmatpush.msrb.mxu0 %v1453_v31  ;;  %v1454_v31 = vld [vmem:[%s3780_s4 + $0x180] sm:$0xff] }
 0x1ba   : > { %v1104_v59 = vmax.f32 %v1029_v56, %v1085_v58  ;;  %1502 = vmatpush.msrb.mxu1 %v1418_v11 }
 0x1bb   : > { %v1039_v37 = vmax.f32 %v3072_v15, 0.0 }
 0x1bc   : > { %v1111_v62 = vmax.f32 %v1069_v60, %v1104_v59  ;;  %1503 = vmatpush.msrb.mxu1 %v1417_v6  ;;  %v1432_v6 = vld [vmem:[%s3780_s4 + $0xd0] sm:$0xff] }
 0x1be   : > { %1121 = vst.msk [vmem:[#allocation4 + $0x21] sm:$0x7f] %vm1118_vm9, %v1111_v62  ;;  %1504 = vmatpush.msrb.mxu1 %v1416_v16  ;;  %v1406_v62 = vld [vmem:[%s3780_s4] sm:$0xff]  ;;  %v1451_v16 = vld [vmem:[%s3780_s4 + $0x168] sm:$0xff] }
 0x1c0   : > { %1505 = vmatpush.msrb.mxu1 %v1415_v19  ;;  %v1431_v19 = vld [vmem:[%s3780_s4 + $0xc8] sm:$0xff] }
 0x1c2   : > { %1506 = vmatpush.msrb.mxu1 %v1414_v20 }
 0x1c4   : > { %1507 = vmatpush.msrb.mxu1 %v1413_v26  ;;  %v1450_v26 = vld [vmem:[%s3780_s4 + $0x160] sm:$0xff] }
 0x1c5   : > { %v1201_v56 = vld [vmem:[#allocation4 + $0x21] sm:$0x7f] }
 0x1c6   : > { %1210 = vrot.lane.b32.xlu0 %v1201_v56, %s3814_s12  ;;  %v1140_v61 = vld [vmem:[#allocation4 + $0x22] sm:$0x7f]  ;;  %1508 = vmatpush.msrb.mxu1 %v1412_v27 }
 0x1c7   : > { %1165 = vst.msk [vmem:[#allocation3 + $0x20] sm:$0x7f] %vm1118_vm9, %v1140_v61  ;;  %v1139_v33 = vld [vmem:[#allocation4 + $0x21] sm:$0x7f] }
 0x1c8   : > { %v1089_v63 = vpop.permute.xlu2 %1088  ;;  %1509 = vmatpush.msrb.mxu1 %v1411_v34  ;;  %v1171_v54 = vld [vmem:[#allocation4 + $0x22] sm:$0x7f] }
 0x1c9   : > { %v1106_v10 = vmax.f32 %v1033_v12, %v1089_v63  ;;  %v1169_v55 = vld [vmem:[#allocation4 + $0x20] sm:$0x7f]  ;;  %v1166_v63 = vld [vmem:[#allocation4 + $0x10] sm:$0x7f]  ;;  %v1448_v34 = vld [vmem:[%s3780_s4 + $0x150] sm:$0xff] }
 0x1ca   : > { %v1087_v1 = vpop.permute.xlu0 %1086  ;;  %1510 = vmatpush.msrb.mxu1 %v1410_v38  ;;  %v1467_v27 = vld [vmem:[%s3780_s4 + $0x1e8] sm:$0xff]  ;;  %v1428_v38 = vld [vmem:[%s3780_s4 + $0xb0] sm:$0xff] }
 0x1cb   : > { %v1105_v45 = vmax.f32 %v1031_v0, %v1087_v1  ;;  %v1038_v0 = vmax.f32 %v3052_v5, 0.0  ;;  %v1136_v5 = vld [vmem:[#allocation4 + $0x11] sm:$0x7f]  ;;  %v1138_v15 = vld [vmem:[#allocation4 + $0x20] sm:$0x7f] }
 0x1cc   : > { %1511 = vmatpush.msrb.mxu1 %v1409_v39  ;;  %v1466_v39 = vld [vmem:[%s3780_s4 + $0x1e0] sm:$0xff] }
 0x1cd   : > { %v1112_v53 = vmax.f32 %v1070_v2, %v1105_v45 }
 0x1ce   : > { %1059 = vrot.lane.b32.xlu0 %v1038_v0, %s3814_s12  ;;  %1512 = vmatpush.msrb.mxu1 %v1408_v47  ;;  %v1427_v47 = vld [vmem:[%s3780_s4 + $0xa8] sm:$0xff] }
 0x1cf   : > { %1123 = vst.msk [vmem:[#allocation4 + $0x31] sm:$0x7f] %vm1118_vm9, %v1112_v53 }
 0x1d0   : > { %1513 = vmatpush.msrb.mxu1 %v1407_v52  ;;  %v1476_v52 = vld [vmem:[%s3780_s4 + $0x230] sm:$0xff] }
 0x1d2   : > { %1514 = vmatpush.msrb.mxu1 %v1406_v62  ;;  %v1475_v62 = vld [vmem:[%s3780_s4 + $0x228] sm:$0xff] }
 0x1d6   : > { %v1235_v13 = vld [vmem:[#allocation4 + $0x31] sm:$0x7f]  ;;  %1146 = vrot.lane.b32.xlu0 %v1135_v17, %s3814_s12  ;;  %v1468_v17 = vld [vmem:[%s3780_s4 + $0x1f0] sm:$0xff] }
 0x1d7   : > { %1244 = vrot.lane.b32.xlu1 %v1235_v13, %s3814_s12  ;;  %v1203_v60 = vld [vmem:[#allocation4 + $0x30] sm:$0x7f]  ;;  %v1434_v13 = vld [vmem:[%s3780_s4 + $0xe0] sm:$0xff] }
 0x1d8   : > { %v1173_v23 = vld [vmem:[#allocation4 + $0x31] sm:$0x7f] }
 0x1da   : > { %v1054_v8 = vpop.permute.xlu1 %1053 }
 0x1db   : > { %v1071_v14 = vmax.f32 %v1032_v9, %v1054_v8  ;;  %v1174_v9 = vld [vmem:[#allocation4 + $0x32] sm:$0x7f] }
 0x1dc   : > { %1199 = vst.msk [vmem:[#allocation3 + $0x48] sm:$0x7f] %vm1118_vm9, %v1174_v9  ;;  %v1452_v9 = vld [vmem:[%s3780_s4 + $0x170] sm:$0xff] }
 0x1dd   : > { %v1113_v12 = vmax.f32 %v1071_v14, %v1106_v10  ;;  %v1433_v14 = vld [vmem:[%s3780_s4 + $0xd8] sm:$0xff]  ;;  %1576 = vmatpush.msrb.mxu0 %v1452_v9 }
 0x1de   : > { %1150 = vrot.lane.b32.xlu0 %v1137_v30, %s3814_s12  ;;  %v1449_v30 = vld [vmem:[%s3780_s4 + $0x158] sm:$0xff] }
 0x1df   : > { %1125 = vst.msk [vmem:[#allocation4 + $0x41] sm:$0x7f] %vm1118_vm9, %v1113_v12  ;;  %1094 = vrot.lane.b32.xlu1 %v1039_v37, %s3814_s12  ;;  %v1469_v12 = vld [vmem:[%s3780_s4 + $0x1f8] sm:$0xff]  ;;  %1577 = vmatpush.msrb.mxu0 %v1451_v16 }
 0x1e0   : > { %1613 = vmatpush.msrb.mxu2 %v1469_v12  ;;  %v1134_v12 = vld [vmem:[#allocation4 + $0x2] sm:$0x7f] }
 0x1e1   : > { %1578 = vmatpush.msrb.mxu0 %v1450_v26 }
 0x1e2   : > { %1614 = vmatpush.msrb.mxu2 %v1468_v17 }
 0x1e3   : > { %1579 = vmatpush.msrb.mxu0 %v1449_v30 }
 0x1e4   : > { %v1058_v44 = vpop.permute.xlu2 %1057  ;;  %1615 = vmatpush.msrb.mxu2 %v1467_v27  ;;  %v1471_v27 = vld [vmem:[%s3780_s4 + $0x208] sm:$0xff] }
 0x1e5   : > { %v1073_v1 = vmax.f32 %v1036_v40, %v1058_v44  ;;  %v1437_v40 = vld [vmem:[%s3780_s4 + $0xf8] sm:$0xff]  ;;  %1580 = vmatpush.msrb.mxu0 %v1448_v34  ;;  %v1442_v44 = vld [vmem:[%s3780_s4 + $0x120] sm:$0xff] }
 0x1e6   : > { %v1269_v22 = vld [vmem:[#allocation4 + $0x41] sm:$0x7f]  ;;  %1184 = vrot.lane.b32.xlu0 %v1171_v54, %s3814_s12  ;;  %1537 = vmatpush.msrb.mxu3 %v1437_v40  ;;  %v1425_v54 = vld [vmem:[%s3780_s4 + $0x98] sm:$0xff] }
 0x1e7   : > { %1278 = vrot.lane.b32.xlu2 %v1269_v22, %s3814_s12  ;;  %v1208_v29 = vld [vmem:[#allocation4 + $0x42] sm:$0x7f]  ;;  %1154 = vrot.lane.b32.xlu1 %v1139_v33, %s3814_s12  ;;  %v1430_v22 = vld [vmem:[%s3780_s4 + $0xc0] sm:$0xff]  ;;  %v1477_v33 = vld [vmem:[%s3780_s4 + $0x238] sm:$0xff] }
 0x1e8   : > { %1233 = vst.msk [vmem:[#allocation3 + $0x70] sm:$0x7f] %vm1118_vm9, %v1208_v29  ;;  %v1239_v2 = vld [vmem:[#allocation4 + $0x42] sm:$0x7f]  ;;  %1538 = vmatpush.msrb.mxu3 %v1436_v43  ;;  %v1429_v29 = vld [vmem:[%s3780_s4 + $0xb8] sm:$0xff]  ;;  %1659 = vmatpush.msra.mxu1 %v1477_v33 }
 0x1e9   : > { %v1237_v3 = vld [vmem:[#allocation4 + $0x40] sm:$0x7f]  ;;  %1616 = vmatpush.msrb.mxu2 %v1466_v39 }
 0x1ea   : > { %1539 = vmatpush.msrb.mxu3 %v1435_v57  ;;  %v1207_v61 = vld [vmem:[#allocation4 + $0x41] sm:$0x7f]  ;;  %1660 = vmatpush.msra.mxu1 %v1476_v52  ;;  %v1457_v57 = vld [vmem:[%s3780_s4 + $0x198] sm:$0xff] }
 0x1eb   : > { %v1056_v42 = vpop.permute.xlu0 %1055  ;;  %v1200_v40 = vld [vmem:[#allocation4 + $0x20] sm:$0x7f] }
 0x1ec   : > { %v1072_v50 = vmax.f32 %v1034_v21, %v1056_v42  ;;  %1540 = vmatpush.msrb.mxu3 %v1434_v13  ;;  %v1447_v42 = vld [vmem:[%s3780_s4 + $0x148] sm:$0xff]  ;;  %1661 = vmatpush.msra.mxu1 %v1475_v62 }
 0x1ed   : > { %1581 = vmatpush.msrb.mxu0 %v1447_v42  ;;  %v1470_v42 = vld [vmem:[%s3780_s4 + $0x200] sm:$0xff] }
 0x1ee   : > { %1541 = vmatpush.msrb.mxu3 %v1433_v14 }
 0x1ef   : > { %1180 = vrot.lane.b32.xlu1 %v1169_v55, %s3814_s12  ;;  %v1445_v55 = vld [vmem:[%s3780_s4 + $0x138] sm:$0xff] }
 0x1f0   : > { %1542 = vmatpush.msrb.mxu3 %v1432_v6 }
 0x1f1   : > { %v1091_v48 = vpop.permute.xlu1 %1090 }
 0x1f2   : > { %v1107_v51 = vmax.f32 %v1035_v25, %v1091_v48  ;;  %v1205_v25 = vld [vmem:[#allocation4 + $0x32] sm:$0x7f]  ;;  %1543 = vmatpush.msrb.mxu3 %v1431_v19 }
 0x1f3   : > { %1218 = vrot.lane.b32.xlu0 %v1205_v25, %s3814_s12  ;;  %v1426_v48 = vld [vmem:[%s3780_s4 + $0xa0] sm:$0xff]  ;;  %v1423_v25 = vld [vmem:[%s3780_s4 + $0x88] sm:$0xff] }
 0x1f4   : > { %v1114_v58 = vmax.f32 %v1072_v50, %v1107_v51  ;;  %1544 = vmatpush.msrb.mxu3 %v1430_v22  ;;  %v1446_v50 = vld [vmem:[%s3780_s4 + $0x140] sm:$0xff]  ;;  %v1465_v51 = vld [vmem:[%s3780_s4 + $0x1d8] sm:$0xff] }
 0x1f5   : > { %1582 = vmatpush.msrb.mxu0 %v1446_v50  ;;  %1617 = vmatpush.msrb.mxu2 %v1465_v51 }
 0x1f6   : > { %1127 = vst.msk [vmem:[#allocation4 + $0x51] sm:$0x7f] %vm1118_vm9, %v1114_v58  ;;  %1545 = vmatpush.msrb.mxu3 %v1429_v29  ;;  %v1424_v58 = vld [vmem:[%s3780_s4 + $0x90] sm:$0xff] }
 0x1f7   : > { %1214 = vrot.lane.b32.xlu1 %v1203_v60, %s3814_s12  ;;  %1583 = vmatpush.msrb.mxu0 %v1445_v55  ;;  %v1443_v60 = vld [vmem:[%s3780_s4 + $0x128] sm:$0xff] }
 0x1f8   : > { %1546 = vmatpush.msrb.mxu3 %v1428_v38 }
 0x1f9   : > { %v1143_v21 = vpop.permute.xlu1 %1142 }
 0x1fa   : > { %v1157_v24 = vsel %vm376_vm1, %v1132_v18, %v1143_v21  ;;  %1547 = vmatpush.msrb.mxu3 %v1427_v47  ;;  %v1444_v18 = vld [vmem:[%s3780_s4 + $0x130] sm:$0xff] }
 0x1fb   : > { %1161 = vst [vmem:[#allocation3] sm:$0x7f] %v1157_v24  ;;  %1252 = vrot.lane.b32.xlu0 %v1239_v2, %s3814_s12  ;;  %v1464_v21 = vld [vmem:[%s3780_s4 + $0x1d0] sm:$0xff]  ;;  %v1463_v24 = vld [vmem:[%s3780_s4 + $0x1c8] sm:$0xff]  ;;  %1584 = vmatpush.msrb.mxu0 %v1444_v18  ;;  %v1461_v2 = vld [vmem:[%s3780_s4 + $0x1b8] sm:$0xff] }
 0x1fc   : > { %1548 = vmatpush.msrb.mxu3 %v1426_v48  ;;  %1618 = vmatpush.msrb.mxu2 %v1464_v21 }
 0x1fd   : > { %v1303_v59 = vld [vmem:[#allocation4 + $0x51] sm:$0x7f]  ;;  %1585 = vmatpush.msrb.mxu0 %v1443_v60 }
 0x1fe   : > { %1312 = vrot.lane.b32.xlu2 %v1303_v59, %s3814_s12  ;;  %v1242_v41 = vld [vmem:[#allocation4 + $0x52] sm:$0x7f]  ;;  %1549 = vmatpush.msrb.mxu3 %v1425_v54  ;;  %v1268_v59 = vld [vmem:[#allocation4 + $0x40] sm:$0x7f] }
 0x1ff   : > { %1267 = vst.msk [vmem:[#allocation3 + $0x98] sm:$0x7f] %vm1118_vm9, %v1242_v41  ;;  %1248 = vrot.lane.b32.xlu1 %v1237_v3, %s3814_s12  ;;  %v1273_v4 = vld [vmem:[#allocation4 + $0x52] sm:$0x7f]  ;;  %1619 = vmatpush.msrb.mxu2 %v1463_v24  ;;  %v1170_v54 = vld [vmem:[#allocation4 + $0x21] sm:$0x7f] }
 0x200   : > { %v1271_v53 = vld [vmem:[#allocation4 + $0x50] sm:$0x7f]  ;;  %1550 = vmatpush.msrb.mxu3 %v1424_v58  ;;  %v1422_v41 = vld [vmem:[%s3780_s4 + $0x80] sm:$0xff]  ;;  %1586 = vmatpush.msrb.mxu0 %v1442_v44  ;;  %v1344_v44 = vld [vmem:[#allocation4 + $0x81] sm:$0x7f] }
 0x201   : > { %v1241_v10 = vld [vmem:[#allocation4 + $0x51] sm:$0x7f] }
 0x202   : > { %v1093_v32 = vpop.permute.xlu0 %1092  ;;  %v1371_v36 = vld [vmem:[#allocation3] sm:$0xff]  ;;  %1551 = vmatpush.msrb.mxu3 %v1423_v25  ;;  %v1302_v22 = vld [vmem:[#allocation4 + $0x50] sm:$0x7f] }
 0x203   : > { %v1108_v45 = vmax.f32 %v1037_v46, %v1093_v32  ;;  %1515 = vmatmul.f32.vlgmr.msrb.gmra.mxu1 %v1371_v36  ;;  %1286 = vrot.lane.b32.xlu0 %v1273_v4, %s3814_s12  ;;  %v1462_v36 = vld [vmem:[%s3780_s4 + $0x1c0] sm:$0xff] }
 0x204   : > { %1552 = vmatpush.msrb.mxu3 %v1422_v41  ;;  %1620 = vmatpush.msrb.mxu2 %v1462_v36  ;;  %v1474_v4 = vld [vmem:[%s3780_s4 + $0x220] sm:$0xff] }
 0x205   : > { %v1115_v49 = vmax.f32 %v1073_v1, %v1108_v45  ;;  %v1441_v1 = vld [vmem:[%s3780_s4 + $0x118] sm:$0xff]  ;;  %v1440_v45 = vld [vmem:[%s3780_s4 + $0x110] sm:$0xff]  ;;  %1662 = vmatpush.msra.mxu1 %v1474_v4 }
 0x206   : > { %1587 = vmatpush.msrb.mxu0 %v1441_v1  ;;  %1621 = vmatpush.msrb.mxu2 %v1461_v2  ;;  %v1168_v58 = vld [vmem:[#allocation4 + $0x12] sm:$0x7f]  ;;  %v1202_v1 = vld [vmem:[#allocation4 + $0x22] sm:$0x7f] }
 0x207   : > { %1129 = vst.msk [vmem:[#allocation4 + $0x61] sm:$0x7f] %vm1118_vm9, %v1115_v49  ;;  %1282 = vrot.lane.b32.xlu1 %v1271_v53, %s3814_s12  ;;  %v1460_v49 = vld [vmem:[%s3780_s4 + $0x1b0] sm:$0xff]  ;;  %v1439_v53 = vld [vmem:[%s3780_s4 + $0x108] sm:$0xff] }
 0x208   : > { %1588 = vmatpush.msrb.mxu0 %v1440_v45  ;;  %1622 = vmatpush.msrb.mxu2 %v1460_v49 }
 0x209   : > { %v1177_v28 = vpop.permute.xlu2 %1176 }
 0x20a   : > { %v1191_v8 = vsel %vm376_vm1, %v1166_v63, %v1177_v28  ;;  %1589 = vmatpush.msrb.mxu0 %v1439_v53  ;;  %v1455_v63 = vld [vmem:[%s3780_s4 + $0x188] sm:$0xff]  ;;  %v1172_v53 = vld [vmem:[#allocation4 + $0x30] sm:$0x7f] }
 0x20b   : > { %1195 = vst [vmem:[#allocation3 + $0x28] sm:$0x7f] %v1191_v8  ;;  %v1234_v8 = vld [vmem:[#allocation4 + $0x30] sm:$0x7f] }
 0x20e   : > { %v1337_v35 = vld [vmem:[#allocation4 + $0x61] sm:$0x7f] }
 0x20f   : > { %1347 = vrot.lane.b32.xlu2 %v1337_v35, %s3814_s12  ;;  %v1305_v46 = vld [vmem:[#allocation4 + $0x60] sm:$0x7f] }
 0x210   : > { %v1307_v56 = vld [vmem:[#allocation4 + $0x62] sm:$0x7f]  ;;  %1316 = vrot.lane.b32.xlu1 %v1305_v46, %s3814_s12 }
 0x211   : > { %v1276_v7 = vld [vmem:[#allocation4 + $0x62] sm:$0x7f]  ;;  %1320 = vrot.lane.b32.xlu0 %v1307_v56, %s3814_s12  ;;  %v1438_v56 = vld [vmem:[%s3780_s4 + $0x100] sm:$0xff] }
 0x212   : > { %1301 = vst.msk [vmem:[#allocation3 + $0xc0] sm:$0x7f] %vm1118_vm9, %v1276_v7  ;;  %v1376_v11 = vld [vmem:[#allocation3 + $0x28] sm:$0xff]  ;;  %v1275_v20 = vld [vmem:[#allocation4 + $0x61] sm:$0x7f]  ;;  %v1458_v7 = vld [vmem:[%s3780_s4 + $0x1a0] sm:$0xff]  ;;  %1590 = vmatpush.msrb.mxu0 %v1438_v56 }
 0x213   : > { %1518 = vmatmul.f32.gmra.mxu1 %v1376_v11  ;;  %v1459_v35 = vld [vmem:[%s3780_s4 + $0x1a8] sm:$0xff]  ;;  %v1472_v11 = vld [vmem:[%s3780_s4 + $0x210] sm:$0xff] }
 0x214   : > { %1623 = vmatpush.msrb.mxu2 %v1459_v35 }
 0x216   : > { %1624 = vmatpush.msrb.mxu2 %v1458_v7  ;;  %v1236_v7 = vld [vmem:[#allocation4 + $0x32] sm:$0x7f] }
 0x217   : > { %1188 = vrot.lane.b32.xlu2 %v1173_v23, %s3814_s12  ;;  %v1473_v23 = vld [vmem:[%s3780_s4 + $0x218] sm:$0xff] }
 0x218   : > { %1663 = vmatpush.msra.mxu1 %v1473_v23  ;;  %1625 = vmatpush.msrb.mxu2 %v1457_v57 }
 0x21a   : > { %1664 = vmatpush.msra.mxu1 %v1472_v11  ;;  %v1272_v11 = vld [vmem:[#allocation4 + $0x51] sm:$0x7f] }
 0x21c   : > { %1665 = vmatpush.msra.mxu1 %v1471_v27 }
 0x21e   : > { %1666 = vmatpush.msra.mxu1 %v1470_v42  ;;  %v1274_v42 = vld [vmem:[#allocation4 + $0x60] sm:$0x7f] }
 0x21f   : > { %1222 = vrot.lane.b32.xlu2 %v1207_v61, %s3814_s12  ;;  %v1456_v61 = vld [vmem:[%s3780_s4 + $0x190] sm:$0xff] }
 0x220   : > { %1626 = vmatpush.msrb.mxu2 %v1456_v61 }
 0x222   : > { %1627 = vmatpush.msrb.mxu2 %v1455_v63 }
 0x224   : > { %1628 = vmatpush.msrb.mxu2 %v1454_v31  ;;  %v1375_v31 = vld [vmem:[#allocation3 + $0x20] sm:$0xff] }
 0x227   : > { %1256 = vrot.lane.b32.xlu2 %v1241_v10, %s3814_s12 }
 0x22f   : > { %1290 = vrot.lane.b32.xlu2 %v1275_v20, %s3814_s12 }
 0x238   : > { %v1211_v43 = vpop.permute.xlu0 %1210 }
 0x239   : > { %v1225_v46 = vsel %vm376_vm1, %v1200_v40, %v1211_v43 }
 0x23a   : > { %1229 = vst [vmem:[#allocation3 + $0x50] sm:$0x7f] %v1225_v46  ;;  %v1238_v46 = vld [vmem:[#allocation4 + $0x41] sm:$0x7f] }
 0x240   : > { %v1060_v28 = vpop.permute.xlu0 %1059 }
 0x241   : > { %v1279_v32 = vpop.permute.xlu2 %1278  ;;  %v1381_v13 = vld [vmem:[#allocation3 + $0x50] sm:$0xff]  ;;  %v1074_v16 = vmax.f32 %v1038_v0, %v1060_v28 }
 0x242   : > { %v1293_v3 = vsel %vm376_vm1, %v1268_v59, %v1279_v32  ;;  %1521 = vmatmul.f32.gmra.mxu1 %v1381_v13  ;;  %v1336_v59 = vld [vmem:[#allocation4 + $0x60] sm:$0x7f]  ;;  %v1204_v32 = vld [vmem:[#allocation4 + $0x31] sm:$0x7f] }
 0x243   : > { %1297 = vst [vmem:[#allocation3 + $0xa0] sm:$0x7f] %v1293_v3 }
 0x248   : > { %v1147_v6 = vpop.permute.xlu0 %1146 }
 0x249   : > { %v1245_v10 = vpop.permute.xlu1 %1244  ;;  %v1158_v17 = vsel %vm376_vm1, %v1134_v12, %v1147_v6  ;;  %v1270_v6 = vld [vmem:[#allocation4 + $0x42] sm:$0x7f] }
 0x24a   : > { %v1259_v14 = vsel %vm376_vm1, %v1234_v8, %v1245_v10  ;;  %1162 = vst [vmem:[#allocation3 + $0x8] sm:$0x7f] %v1158_v17  ;;  %v1391_v39 = vld [vmem:[#allocation3 + $0xa0] sm:$0xff]  ;;  %v1206_v8 = vld [vmem:[#allocation4 + $0x40] sm:$0x7f] }
 0x24b   : > { %1263 = vst [vmem:[#allocation3 + $0x78] sm:$0x7f] %v1259_v14 }
 0x250   : > { %v1151_v0 = vpop.permute.xlu0 %1150 }
 0x251   : > { %v1095_v9 = vpop.permute.xlu1 %1094  ;;  %v1159_v33 = vsel %vm376_vm1, %v1136_v5, %v1151_v0  ;;  %v1372_v34 = vld [vmem:[#allocation3 + $0x8] sm:$0xff] }
 0x252   : > { %v1109_v19 = vmax.f32 %v1039_v37, %v1095_v9  ;;  %v1386_v20 = vld [vmem:[#allocation3 + $0x78] sm:$0xff]  ;;  %1163 = vst [vmem:[#allocation3 + $0x10] sm:$0x7f] %v1159_v33  ;;  %1553 = vmatmul.f32.vlgmr.msrb.gmra.mxu3 %v1372_v34  ;;  %v1304_v5 = vld [vmem:[#allocation4 + $0x52] sm:$0x7f] }
 0x253   : > { %1524 = vmatmul.f32.gmra.mxu1 %v1386_v20 }
 0x254   : > { %v1116_v29 = vmax.f32 %v1074_v16, %v1109_v19 }
 0x256   : > { %1131 = vst.msk [vmem:[#allocation4 + $0x71] sm:$0x7f] %vm1118_vm9, %v1116_v29 }
 0x258   : > { %v1313_v26 = vpop.permute.xlu2 %1312  ;;  %v1185_v55 = vpop.permute.xlu0 %1184 }
 0x259   : > { %v1327_v30 = vsel %vm376_vm1, %v1302_v22, %v1313_v26  ;;  %v1155_v37 = vpop.permute.xlu1 %1154  ;;  %v1193_v21 = vsel %vm376_vm1, %v1170_v54, %v1185_v55  ;;  %v1373_v24 = vld [vmem:[#allocation3 + $0x10] sm:$0xff]  ;;  %v1240_v22 = vld [vmem:[#allocation4 + $0x50] sm:$0x7f] }
 0x25a   : > { %1331 = vst [vmem:[#allocation3 + $0xc8] sm:$0x7f] %v1327_v30  ;;  %v1160_v38 = vsel %vm376_vm1, %v1138_v15, %v1155_v37  ;;  %1591 = vmatmul.f32.vlgmr.msrb.gmra.mxu0 %v1373_v24  ;;  %v1380_v30 = vld [vmem:[#allocation3 + $0x48] sm:$0xff]  ;;  %v1306_v15 = vld [vmem:[#allocation4 + $0x61] sm:$0x7f] }
 0x25b   : > { %1527 = vmatmul.f32.gmra.mxu1 %v1391_v39  ;;  %1164 = vst [vmem:[#allocation3 + $0x18] sm:$0x7f] %v1160_v38 }
 0x25c   : > { %1197 = vst [vmem:[#allocation3 + $0x38] sm:$0x7f] %v1193_v21 }
 0x25d   : > { %v1341_v47 = vld [vmem:[#allocation4 + $0x72] sm:$0x7f] }
 0x25e   : > { %v1339_v48 = vld [vmem:[#allocation4 + $0x70] sm:$0x7f]  ;;  %1355 = vrot.lane.b32.xlu0 %v1341_v47, %s3814_s12 }
 0x25f   : > { %v1309_v50 = vld [vmem:[#allocation4 + $0x71] sm:$0x7f]  ;;  %1351 = vrot.lane.b32.xlu1 %v1339_v48, %s3814_s12 }
 0x260   : > { %v1310_v51 = vld [vmem:[#allocation4 + $0x72] sm:$0x7f]  ;;  %1324 = vrot.lane.b32.xlu2 %v1309_v50, %s3814_s12 }
 0x261   : > { %1335 = vst.msk [vmem:[#allocation3 + $0xe8] sm:$0x7f] %vm1118_vm9, %v1310_v51  ;;  %v1396_v52 = vld [vmem:[#allocation3 + $0xc8] sm:$0xff]  ;;  %v1181_v18 = vpop.permute.xlu1 %1180  ;;  %v1385_v51 = vld [vmem:[#allocation3 + $0x70] sm:$0xff] }
 0x262   : > { %v1192_v25 = vsel %vm376_vm1, %v1168_v58, %v1181_v18  ;;  %v1374_v60 = vld [vmem:[#allocation3 + $0x18] sm:$0xff]  ;;  %v1395_v18 = vld [vmem:[#allocation3 + $0xc0] sm:$0xff] }
 0x263   : > { %1530 = vmatmul.f32.gmra.mxu1 %v1396_v52  ;;  %1196 = vst [vmem:[#allocation3 + $0x30] sm:$0x7f] %v1192_v25  ;;  %1629 = vmatmul.f32.vlgmr.msrb.gmra.mxu2 %v1374_v60  ;;  %v1378_v45 = vld [vmem:[#allocation3 + $0x38] sm:$0xff]  ;;  %v1308_v60 = vld [vmem:[#allocation4 + $0x70] sm:$0x7f] }
 0x264   : > { %1594 = vmatmul.f32.gmra.mxu0 %v1378_v45  ;;  %v1390_v58 = vld [vmem:[#allocation3 + $0x98] sm:$0xff] }
 0x265   : > { %v1219_v36 = vpop.permute.xlu0 %1218 }
 0x266   : > { %v1227_v3 = vsel %vm376_vm1, %v1204_v32, %v1219_v36 }
 0x267   : > { %1231 = vst [vmem:[#allocation3 + $0x60] sm:$0x7f] %v1227_v3 }
 0x268   : > { %1359 = vrot.lane.b32.xlu2 %v1344_v44, %s3814_s12  ;;  %v1400_v21 = vld [vmem:[#allocation3 + $0xe8] sm:$0xff] }
 0x269   : > { %v1348_v41 = vpop.permute.xlu2 %1347  ;;  %v1215_v2 = vpop.permute.xlu1 %1214 }
 0x26a   : > { %v1362_v62 = vsel %vm376_vm1, %v1336_v59, %v1348_v41  ;;  %v1226_v49 = vsel %vm376_vm1, %v1202_v1, %v1215_v2  ;;  %v1377_v4 = vld [vmem:[#allocation3 + $0x30] sm:$0xff]  ;;  %v1343_v41 = vld [vmem:[#allocation4 + $0x80] sm:$0x7f] }
 0x26b   : > { %1366 = vst [vmem:[#allocation3 + $0xf0] sm:$0x7f] %v1362_v62  ;;  %1556 = vmatmul.f32.gmra.mxu3 %v1377_v4  ;;  %v1345_v2 = vld [vmem:[#allocation4 + $0x82] sm:$0x7f] }
 0x26c   : > { %1230 = vst [vmem:[#allocation3 + $0x58] sm:$0x7f] %v1226_v49  ;;  %v1338_v49 = vld [vmem:[#allocation4 + $0x62] sm:$0x7f] }
 0x26d   : > { %v1253_v56 = vpop.permute.xlu0 %1252  ;;  %1370 = vst.msk [vmem:[#allocation3 + $0x110] sm:$0x7f] %vm1118_vm9, %v1345_v2 }
 0x26e   : > { %v1261_v23 = vsel %vm376_vm1, %v1238_v46, %v1253_v56  ;;  %v1383_v61 = vld [vmem:[#allocation3 + $0x60] sm:$0xff] }
 0x26f   : > { %1265 = vst [vmem:[#allocation3 + $0x88] sm:$0x7f] %v1261_v23  ;;  %1597 = vmatmul.f32.gmra.mxu0 %v1383_v61 }
 0x271   : > { %v1189_v35 = vpop.permute.xlu2 %1188  ;;  %v1249_v57 = vpop.permute.xlu1 %1248 }
 0x272   : > { %v1194_v40 = vsel %vm376_vm1, %v1172_v53, %v1189_v35  ;;  %v1401_v43 = vld [vmem:[#allocation3 + $0xf0] sm:$0xff]  ;;  %v1260_v63 = vsel %vm376_vm1, %v1236_v7, %v1249_v57 }
 0x273   : > { %1198 = vst [vmem:[#allocation3 + $0x40] sm:$0x7f] %v1194_v40  ;;  %1533 = vmatmul.f32.gmra.mxu1 %v1401_v43  ;;  %v1382_v28 = vld [vmem:[#allocation3 + $0x58] sm:$0xff]  ;;  %v1340_v40 = vld [vmem:[#allocation4 + $0x71] sm:$0x7f] }
 0x274   : > { %1264 = vst [vmem:[#allocation3 + $0x80] sm:$0x7f] %v1260_v63  ;;  %1559 = vmatmul.f32.gmra.mxu3 %v1382_v28  ;;  %v1405_v53 = vld [vmem:[#allocation3 + $0x110] sm:$0xff] }
 0x275   : > { %v1287_v12 = vpop.permute.xlu0 %1286 }
 0x276   : > { %v1295_v16 = vsel %vm376_vm1, %v1272_v11, %v1287_v12  ;;  %v1388_v17 = vld [vmem:[#allocation3 + $0x88] sm:$0xff]  ;;  %v3376_v12 = vld [vmem:[%s3781_s5] ss:$0 sm:$0xff] }
 0x277   : > { %1299 = vst [vmem:[#allocation3 + $0xb0] sm:$0x7f] %v1295_v16  ;;  %1600 = vmatmul.f32.gmra.mxu0 %v1388_v17  ;;  %v3381_v17 = vld [vmem:[%s3782_s6] ss:$0 sm:$0xff] }
 0x279   : > { %v1223_v10 = vpop.permute.xlu2 %1222  ;;  %v1283_v9 = vpop.permute.xlu1 %1282 }
 0x27a   : > { %v1228_v13 = vsel %vm376_vm1, %v1206_v8, %v1223_v10  ;;  %v1379_v14 = vld [vmem:[#allocation3 + $0x40] sm:$0xff]  ;;  %v1294_v19 = vsel %vm376_vm1, %v1270_v6, %v1283_v9 }
 0x27b   : > { %1232 = vst [vmem:[#allocation3 + $0x68] sm:$0x7f] %v1228_v13  ;;  %1632 = vmatmul.f32.gmra.mxu2 %v1379_v14  ;;  %2267 = vmatmul.msk.f32.vlgmr.msra.gmra.mxu1 %vm376_vm1, %v1375_v31  ;;  %v1387_v20 = vld [vmem:[#allocation3 + $0x80] sm:$0xff] }
 0x27c   : > { %1298 = vst [vmem:[#allocation3 + $0xa8] sm:$0x7f] %v1294_v19  ;;  %1562 = vmatmul.f32.gmra.mxu3 %v1387_v20 }
 0x27e   : > { %v1393_v33 = vld [vmem:[#allocation3 + $0xb0] sm:$0xff] }
 0x27f   : > { %1603 = vmatmul.f32.gmra.mxu0 %v1393_v33 }
 0x280   : > { %v1516_v24 = vpop.f32.mrf.mxu1 }
 0x281   : > { %v1257_v26 = vpop.permute.xlu2 %1256 }
 0x282   : > { %v1262_v27 = vsel %vm376_vm1, %v1240_v22, %v1257_v26  ;;  %v1384_v29 = vld [vmem:[#allocation3 + $0x68] sm:$0xff]  ;;  %v1317_v0 = vpop.permute.xlu1 %1316 }
 0x283   : > { %1266 = vst [vmem:[#allocation3 + $0x90] sm:$0x7f] %v1262_v27  ;;  %1635 = vmatmul.f32.gmra.mxu2 %v1384_v29  ;;  %2268 = vmatmul.msk.f32.gmra.mxu1 %vm376_vm1, %v1380_v30  ;;  %v1321_v37 = vpop.permute.xlu0 %1320  ;;  %v1328_v34 = vsel %vm376_vm1, %v1304_v5, %v1317_v0  ;;  %v1392_v39 = vld [vmem:[#allocation3 + $0xa8] sm:$0xff] }
 0x284   : > { %v1329_v38 = vsel %vm376_vm1, %v1306_v15, %v1321_v37  ;;  %1332 = vst [vmem:[#allocation3 + $0xd0] sm:$0x7f] %v1328_v34  ;;  %1565 = vmatmul.f32.gmra.mxu3 %v1392_v39 }
 0x285   : > { %1333 = vst [vmem:[#allocation3 + $0xd8] sm:$0x7f] %v1329_v38 }
 0x289   : > { %v1291_v47 = vpop.permute.xlu2 %1290 }
 0x28a   : > { %v1296_v48 = vsel %vm376_vm1, %v1274_v42, %v1291_v47  ;;  %v1389_v50 = vld [vmem:[#allocation3 + $0x90] sm:$0xff] }
 0x28b   : > { %1300 = vst [vmem:[#allocation3 + $0xb8] sm:$0x7f] %v1296_v48  ;;  %1638 = vmatmul.f32.gmra.mxu2 %v1389_v50  ;;  %2269 = vmatmul.msk.f32.gmra.mxu1 %vm376_vm1, %v1385_v51  ;;  %v1397_v52 = vld [vmem:[#allocation3 + $0xd0] sm:$0xff] }
 0x28c   : > { %v1398_v54 = vld [vmem:[#allocation3 + $0xd8] sm:$0xff]  ;;  %1568 = vmatmul.f32.gmra.mxu3 %v1397_v52 }
 0x28d   : > { %1606 = vmatmul.f32.gmra.mxu0 %v1398_v54 }
 0x290   : > { %v1519_v44 = vpop.f32.mrf.mxu1 }
 0x292   : > { %v1394_v55 = vld [vmem:[#allocation3 + $0xb8] sm:$0xff] }
 0x293   : > { %1641 = vmatmul.f32.gmra.mxu2 %v1394_v55  ;;  %2270 = vmatmul.msk.f32.gmra.mxu1 %vm376_vm1, %v1390_v58 }
 0x29b   : > { %2271 = vmatmul.msk.f32.gmra.mxu1 %vm376_vm1, %v1395_v18 }
 0x2a3   : > { %2272 = vmatmul.msk.f32.gmra.mxu1 %vm376_vm1, %v1400_v21 }
 0x2ab   : > { %2273 = vmatmul.msk.f32.gmra.mxu1 %vm376_vm1, %v1405_v53 }
 0x2ba   : > { %v1325_v25 = vpop.permute.xlu2 %1324 }
 0x2bb   : > { %v1330_v59 = vsel %vm376_vm1, %v1308_v60, %v1325_v25 }
 0x2bc   : > { %1334 = vst [vmem:[#allocation3 + $0xe0] sm:$0x7f] %v1330_v59 }
 0x2bf   : > { %v1522_v1 = vpop.f32.mrf.mxu1 }
 0x2c2   : > { %v1360_v62 = vpop.permute.xlu2 %1359 }
 0x2c3   : > { %v1399_v32 = vld [vmem:[#allocation3 + $0xe0] sm:$0xff]  ;;  %v1365_v36 = vsel %vm376_vm1, %v1343_v41, %v1360_v62 }
 0x2c4   : > { %1644 = vmatmul.f32.gmra.mxu2 %v1399_v32  ;;  %1369 = vst [vmem:[#allocation3 + $0x108] sm:$0x7f] %v1365_v36 }
 0x2cb   : > { %v1404_v3 = vld [vmem:[#allocation3 + $0x108] sm:$0xff] }
 0x2cc   : > { %1647 = vmatmul.f32.gmra.mxu2 %v1404_v3 }
 0x2d0   : > { %v1525_v45 = vpop.f32.mrf.mxu1  ;;  %v1356_v43 = vpop.permute.xlu0 %1355 }
 0x2d1   : > { %v1352_v4 = vpop.permute.xlu1 %1351  ;;  %v1364_v46 = vsel %vm376_vm1, %v1340_v40, %v1356_v43 }
 0x2d2   : > { %v1363_v35 = vsel %vm376_vm1, %v1338_v49, %v1352_v4  ;;  %1368 = vst [vmem:[#allocation3 + $0x100] sm:$0x7f] %v1364_v46 }
 0x2d3   : > { %1367 = vst [vmem:[#allocation3 + $0xf8] sm:$0x7f] %v1363_v35 }
 0x2d5   : > { %v1554_v61 = vpop.f32.mrf.mxu3 }
 0x2d6   : > { %v1555_v8 = vadd.f32 %v1554_v61, %v1516_v24 }
 0x2d7   : > { %v1592_v63 = vpop.f32.mrf.mxu0 }
 0x2d8   : > { %v1528_v56 = vpop.f32.mrf.mxu1  ;;  %v1593_v14 = vadd.f32 %v1592_v63, %v1555_v8 }
 0x2d9   : > { %v1403_v57 = vld [vmem:[#allocation3 + $0x100] sm:$0xff] }
 0x2da   : > { %v1402_v7 = vld [vmem:[#allocation3 + $0xf8] sm:$0xff]  ;;  %1609 = vmatmul.f32.gmra.mxu0 %v1403_v57 }
 0x2db   : > { %1571 = vmatmul.f32.gmra.mxu3 %v1402_v7 }
 0x2e0   : > { %v3369_v23 = vpop.f32.mrf.mxu1 }
 0x2e1   : > { %v1595_v31 = vpop.f32.mrf.mxu0 }
 0x2e6   : > { %v1630_v10 = vpop.f32.mrf.mxu2 }
 0x2e7   : > { %v1631_v11 = vadd.f32 %v1630_v10, %v1593_v14 }
 0x2ec   : > { %v1598_v5 = vpop.f32.mrf.mxu0 }
 0x2ee   : > { %v1557_v13 = vpop.f32.mrf.mxu3 }
 0x2ef   : > { %v1558_v9 = vadd.f32 %v1557_v13, %v1519_v44 }
 0x2f0   : > { %v3371_v28 = vpop.f32.mrf.mxu1 }
 0x2f1   : > { %v1596_v22 = vadd.f32 %v1595_v31, %v1558_v9 }
 0x2f4   : > { %v1601_v54 = vpop.f32.mrf.mxu0 }
 0x2f7   : > { %v1560_v20 = vpop.f32.mrf.mxu3 }
 0x2f8   : > { %v1668_v6 = vpop.f32.mrf.mxu1  ;;  %v1561_v15 = vadd.f32 %v1560_v20, %v1522_v1 }
 0x2f9   : > { %v1669_v16 = vadd.f32 %v1668_v6, %v1631_v11 }
 0x2fa   : > { %v1599_v38 = vadd.f32 %v1598_v5, %v1561_v15 }
 0x2fb   : > { %v1693_v19 = vmul.f32 %v3376_v12, %v1669_v16 }
 0x2fc   : > { %v1604_v32 = vpop.f32.mrf.mxu0 }
 0x2fd   : > { %v3385_v26 = vadd.f32 %v3381_v17, %v1693_v19 }
 0x2fe   : > { %v1633_v27 = vpop.f32.mrf.mxu2 }
 0x2ff   : > { %v1634_v29 = vadd.f32 %v1633_v27, %v1596_v22  ;;  %v1711_v30 = vmax.f32 %v3385_v26, 0.0  ;;  %v1563_v34 = vpop.f32.mrf.mxu3 }
 0x300   : > { %v1671_v0 = vpop.f32.mrf.mxu1  ;;  %v1564_v51 = vadd.f32 %v1563_v34, %v1525_v45 }
 0x301   : > { %v1672_v37 = vadd.f32 %v1671_v0, %v1634_v29  ;;  %1725 = vrot.lane.b32.xlu1 %v1711_v30, %s3816_s0 }
 0x302   : > { %v1602_v58 = vadd.f32 %v1601_v54, %v1564_v51 }
 0x303   : > { %v1694_v33 = vmul.f32 %v3376_v12, %v1672_v37 }
 0x305   : > { %v1705_v39 = vadd.f32 %v3381_v17, %v1694_v33 }
 0x306   : > { %v1636_v42 = vpop.f32.mrf.mxu2 }
 0x307   : > { %v1637_v47 = vadd.f32 %v1636_v42, %v1599_v38  ;;  %v1712_v48 = vmax.f32 %v1705_v39, 0.0  ;;  %v1566_v21 = vpop.f32.mrf.mxu3 }
 0x308   : > { %v1674_v50 = vpop.f32.mrf.mxu1  ;;  %v1567_v41 = vadd.f32 %v1566_v21, %v1528_v56 }
 0x309   : > { %v1675_v52 = vadd.f32 %v1674_v50, %v1637_v47  ;;  %1727 = vrot.lane.b32.xlu2 %v1712_v48, %s3816_s0 }
 0x30a   : > { %v1605_v36 = vadd.f32 %v1604_v32, %v1567_v41  ;;  %v1607_v56 = vpop.f32.mrf.mxu0  ;;  %v1952_v41 = vld [vmem:[%s3784_s8 + $0xf8] sm:$0xff]  ;;  %v1951_v32 = vld [vmem:[%s3784_s8 + $0xf0] sm:$0xff] }
 0x30b   : > { %v1695_v55 = vmul.f32 %v3376_v12, %v1675_v52  ;;  %2020 = vmatpush.msra.mxu0 %v1952_v41  ;;  %2283 = vmatpush.msrb.mxu1 %v1952_v41 }
 0x30d   : > { %v1706_v18 = vadd.f32 %v3381_v17, %v1695_v55  ;;  %2021 = vmatpush.msra.mxu0 %v1951_v32  ;;  %2284 = vmatpush.msrb.mxu1 %v1951_v32 }
 0x30e   : > { %v1639_v24 = vpop.f32.mrf.mxu2 }
 0x30f   : > { %v1640_v25 = vadd.f32 %v1639_v24, %v1602_v58  ;;  %v1713_v60 = vmax.f32 %v1706_v18, 0.0  ;;  %v1569_v43 = vpop.f32.mrf.mxu3  ;;  %v3469_v24 = vld [vmem:[%s3784_s8 + $0x138] sm:$0xff] }
 0x310   : > { %v1677_v59 = vpop.f32.mrf.mxu1  ;;  %v1570_v46 = vadd.f32 %v1569_v43, %v3369_v23  ;;  %2066 = vmatpush.msra.mxu2 %v3469_v24  ;;  %v1931_v43 = vld [vmem:[%s3784_s8 + $0x50] sm:$0xff] }
 0x311   : > { %v1678_v44 = vadd.f32 %v1677_v59, %v1640_v25  ;;  %1729 = vrot.lane.b32.xlu0 %v1713_v60, %s3816_s0  ;;  %v3475_v25 = vld [vmem:[%s3784_s8 + $0x130] sm:$0xff]  ;;  %v1936_v59 = vld [vmem:[%s3784_s8 + $0x78] sm:$0xff] }
 0x312   : > { %v1608_v7 = vadd.f32 %v1607_v56, %v1570_v46  ;;  %2067 = vmatpush.msra.mxu2 %v3475_v25  ;;  %1982 = vmatpush.msra.mxu3 %v1936_v59  ;;  %v1947_v46 = vld [vmem:[%s3784_s8 + $0xd0] sm:$0xff]  ;;  %v1930_v56 = vld [vmem:[%s3784_s8 + $0x48] sm:$0xff] }
 0x313   : > { %v1696_v62 = vmul.f32 %v3376_v12, %v1678_v44  ;;  %v3492_v44 = vld [vmem:[%s3784_s8 + $0x120] sm:$0xff] }
 0x315   : > { %v1707_v1 = vadd.f32 %v3381_v17, %v1696_v62  ;;  %v1935_v62 = vld [vmem:[%s3784_s8 + $0x70] sm:$0xff] }
 0x316   : > { %v1642_v2 = vpop.f32.mrf.mxu2  ;;  %1983 = vmatpush.msra.mxu3 %v1935_v62 }
 0x317   : > { %v1643_v3 = vadd.f32 %v1642_v2, %v1605_v36  ;;  %v1714_v45 = vmax.f32 %v1707_v1, 0.0  ;;  %v3504_v36 = vld [vmem:[%s3784_s8 + $0x118] sm:$0xff]  ;;  %v3510_v1 = vld [vmem:[%s3784_s8 + $0x110] sm:$0xff]  ;;  %v1934_v2 = vld [vmem:[%s3784_s8 + $0x68] sm:$0xff] }
 0x318   : > { %v1680_v49 = vpop.f32.mrf.mxu1  ;;  %1984 = vmatpush.msra.mxu3 %v1934_v2 }
 0x319   : > { %v1681_v4 = vadd.f32 %v1680_v49, %v1643_v3  ;;  %1731 = vrot.lane.b32.xlu1 %v1714_v45, %s3816_s0  ;;  %v1950_v3 = vld [vmem:[%s3784_s8 + $0xe8] sm:$0xff]  ;;  %v1949_v49 = vld [vmem:[%s3784_s8 + $0xe0] sm:$0xff] }
 0x31a   : > { %2022 = vmatpush.msra.mxu0 %v1950_v3  ;;  %2285 = vmatpush.msrb.mxu1 %v1950_v3 }
 0x31b   : > { %v1697_v53 = vmul.f32 %v3376_v12, %v1681_v4  ;;  %v3528_v4 = vld [vmem:[%s3784_s8 + $0x108] sm:$0xff] }
 0x31c   : > { %2023 = vmatpush.msra.mxu0 %v1949_v49  ;;  %2286 = vmatpush.msrb.mxu1 %v1949_v49  ;;  %v1886_v49 = vld [vmem:[%s3783_s7 + $0x38] sm:$0xff] }
 0x31d   : > { %v1708_v35 = vadd.f32 %v3381_v17, %v1697_v53  ;;  %v1932_v53 = vld [vmem:[%s3784_s8 + $0x58] sm:$0xff] }
 0x31f   : > { %v1715_v40 = vmax.f32 %v1708_v35, 0.0  ;;  %v1948_v35 = vld [vmem:[%s3784_s8 + $0xd8] sm:$0xff] }
 0x320   : > { %v1683_v63 = vpop.f32.mrf.mxu1  ;;  %2024 = vmatpush.msra.mxu0 %v1948_v35  ;;  %2287 = vmatpush.msrb.mxu1 %v1948_v35 }
 0x321   : > { %1733 = vrot.lane.b32.xlu2 %v1715_v40, %s3816_s0 }
 0x322   : > { %2025 = vmatpush.msra.mxu0 %v1947_v46  ;;  %2288 = vmatpush.msrb.mxu1 %v1947_v46 }
 0x328   : > { %v1686_v20 = vpop.f32.mrf.mxu1 }
 0x347   : > { %v1645_v57 = vpop.f32.mrf.mxu2 }
 0x348   : > { %v1646_v61 = vadd.f32 %v1645_v57, %v1608_v7  ;;  %v1946_v7 = vld [vmem:[%s3784_s8 + $0xc8] sm:$0xff]  ;;  %v1929_v57 = vld [vmem:[%s3784_s8 + $0x40] sm:$0xff] }
 0x349   : > { %2026 = vmatpush.msra.mxu0 %v1946_v7  ;;  %2289 = vmatpush.msrb.mxu1 %v1946_v7 }
 0x34a   : > { %v1684_v8 = vadd.f32 %v1683_v63, %v1646_v61  ;;  %v1945_v61 = vld [vmem:[%s3784_s8 + $0xc0] sm:$0xff]  ;;  %v1928_v63 = vld [vmem:[%s3784_s8 + $0x38] sm:$0xff] }
 0x34b   : > { %2027 = vmatpush.msra.mxu0 %v1945_v61  ;;  %2290 = vmatpush.msrb.mxu1 %v1945_v61  ;;  %v1888_v61 = vld [vmem:[%s3783_s7 + $0x48] sm:$0xff] }
 0x34c   : > { %v1698_v10 = vmul.f32 %v3376_v12, %v1684_v8  ;;  %v1944_v8 = vld [vmem:[%s3784_s8 + $0xb8] sm:$0xff] }
 0x34d   : > { %2028 = vmatpush.msra.mxu0 %v1944_v8  ;;  %2291 = vmatpush.msrb.mxu1 %v1944_v8 }
 0x34e   : > { %v1709_v13 = vadd.f32 %v3381_v17, %v1698_v10  ;;  %v1927_v10 = vld [vmem:[%s3784_s8 + $0x30] sm:$0xff] }
 0x34f   : > { %v1648_v16 = vpop.f32.mrf.mxu2 }
 0x350   : > { %v1716_v14 = vmax.f32 %v1709_v13, 0.0  ;;  %v1943_v13 = vld [vmem:[%s3784_s8 + $0xb0] sm:$0xff] }
 0x351   : > { %2029 = vmatpush.msra.mxu0 %v1943_v13  ;;  %2292 = vmatpush.msrb.mxu1 %v1943_v13 }
 0x352   : > { %1735 = vrot.lane.b32.xlu0 %v1716_v14, %s3816_s0 }
 0x357   : > { %v1610_v9 = vpop.f32.mrf.mxu0 }
 0x35e   : > { %v1572_v31 = vpop.f32.mrf.mxu3 }
 0x35f   : > { %v1573_v11 = vadd.f32 %v1572_v31, %v3371_v28  ;;  %v1942_v31 = vld [vmem:[%s3784_s8 + $0xa8] sm:$0xff] }
 0x360   : > { %2030 = vmatpush.msra.mxu0 %v1942_v31  ;;  %2293 = vmatpush.msrb.mxu1 %v1942_v31 }
 0x361   : > { %v1611_v19 = vadd.f32 %v1610_v9, %v1573_v11  ;;  %v1925_v11 = vld [vmem:[%s3784_s8 + $0x20] sm:$0xff]  ;;  %v1924_v9 = vld [vmem:[%s3784_s8 + $0x18] sm:$0xff] }
 0x363   : > { %v1728_v6 = vpop.permute.xlu2 %1727  ;;  %v1649_v22 = vadd.f32 %v1648_v16, %v1611_v19  ;;  %v1940_v16 = vld [vmem:[%s3784_s8 + $0x98] sm:$0xff]  ;;  %v1939_v19 = vld [vmem:[%s3784_s8 + $0x90] sm:$0xff] }
 0x364   : > { %v1747_v23 = vmax.f32 %v1712_v48, %v1728_v6  ;;  %v1941_v6 = vld [vmem:[%s3784_s8 + $0xa0] sm:$0xff] }
 0x365   : > { %v1687_v27 = vadd.f32 %v1686_v20, %v1649_v22  ;;  %2031 = vmatpush.msra.mxu0 %v1941_v6  ;;  %2294 = vmatpush.msrb.mxu1 %v1941_v6 }
 0x366   : > { %1762 = vrot.lane.b32.xlu0 %v1747_v23, %s3814_s12 }
 0x367   : > { %v1699_v29 = vmul.f32 %v3376_v12, %v1687_v27  ;;  %2032 = vmatpush.msra.mxu0 %v1940_v16  ;;  %2295 = vmatpush.msrb.mxu1 %v1940_v16  ;;  %v1922_v27 = vld [vmem:[%s3784_s8 + $0x8] sm:$0xff]  ;;  %v1891_v16 = vld [vmem:[%s3783_s7 + $0x60] sm:$0xff] }
 0x369   : > { %v1710_v5 = vadd.f32 %v3381_v17, %v1699_v29  ;;  %2033 = vmatpush.msra.mxu0 %v1939_v19  ;;  %2296 = vmatpush.msrb.mxu1 %v1939_v19  ;;  %v1938_v29 = vld [vmem:[%s3784_s8 + $0x88] sm:$0xff] }
 0x36b   : > { %v1717_v0 = vmax.f32 %v1710_v5, 0.0  ;;  %v1921_v5 = vld [vmem:[%s3784_s8] sm:$0xff]  ;;  %2034 = vmatpush.msra.mxu0 %v1938_v29  ;;  %2297 = vmatpush.msrb.mxu1 %v1938_v29 }
 0x36d   : > { %1737 = vrot.lane.b32.xlu2 %v1717_v0, %s3816_s0 }
 0x373   : > { %v1726_v15 = vpop.permute.xlu1 %1725 }
 0x374   : > { %v1746_v28 = vmax.f32 %v1711_v30, %v1726_v15  ;;  %v1881_v15 = vld [vmem:[%s3783_s7 + $0x10] sm:$0xff] }
 0x376   : > { %1760 = vrot.lane.b32.xlu1 %v1746_v28, %s3814_s12 }
 0x37b   : > { %v1734_v37 = vpop.permute.xlu2 %1733 }
 0x37c   : > { %v1750_v33 = vmax.f32 %v1715_v40, %v1734_v37  ;;  %v3540_v40 = vld [vmem:[%s3784_s8 + $0x100] sm:$0xff] }
 0x37e   : > { %1768 = vrot.lane.b32.xlu0 %v1750_v33, %s3814_s12 }
 0x383   : > { %v1730_v34 = vpop.permute.xlu0 %1729 }
 0x384   : > { %v1748_v38 = vmax.f32 %v1713_v60, %v1730_v34  ;;  %v3480_v60 = vld [vmem:[%s3784_s8 + $0x128] sm:$0xff] }
 0x385   : > { %2068 = vmatpush.msra.mxu2 %v3480_v60 }
 0x386   : > { %1764 = vrot.lane.b32.xlu1 %v1748_v38, %s3814_s12 }
 0x387   : > { %2069 = vmatpush.msra.mxu2 %v3492_v44 }
 0x389   : > { %2070 = vmatpush.msra.mxu2 %v3504_v36 }
 0x38b   : > { %v1732_v12 = vpop.permute.xlu1 %1731  ;;  %2071 = vmatpush.msra.mxu2 %v3510_v1 }
 0x38c   : > { %v1749_v39 = vmax.f32 %v1714_v45, %v1732_v12  ;;  %v1933_v45 = vld [vmem:[%s3784_s8 + $0x60] sm:$0xff] }
 0x38d   : > { %1985 = vmatpush.msra.mxu3 %v1933_v45  ;;  %2072 = vmatpush.msra.mxu2 %v3528_v4  ;;  %v1879_v12 = vld [vmem:[%s3783_s7] sm:$0xff]  ;;  %v1885_v45 = vld [vmem:[%s3783_s7 + $0x30] sm:$0xff] }
 0x38e   : > { %1766 = vrot.lane.b32.xlu2 %v1749_v39, %s3814_s12 }
 0x38f   : > { %1986 = vmatpush.msra.mxu3 %v1932_v53  ;;  %2073 = vmatpush.msra.mxu2 %v3540_v40 }
 0x391   : > { %1987 = vmatpush.msra.mxu3 %v1931_v43 }
 0x393   : > { %1988 = vmatpush.msra.mxu3 %v1930_v56 }
 0x395   : > { %1989 = vmatpush.msra.mxu3 %v1929_v57 }
 0x397   : > { %1990 = vmatpush.msra.mxu3 %v1928_v63  ;;  %v1889_v63 = vld [vmem:[%s3783_s7 + $0x50] sm:$0xff] }
 0x399   : > { %1991 = vmatpush.msra.mxu3 %v1927_v10 }
 0x3c4   : > { %v1736_v17 = vpop.permute.xlu0 %1735 }
 0x3c5   : > { %v3418_v42 = vmax.f32 %v1716_v14, %v1736_v17  ;;  %v1926_v14 = vld [vmem:[%s3784_s8 + $0x28] sm:$0xff] }
 0x3c6   : > { %1992 = vmatpush.msra.mxu3 %v1926_v14 }
 0x3c7   : > { %1770 = vrot.lane.b32.xlu1 %v3418_v42, %s3814_s12  ;;  %v1738_v47 = vpop.permute.xlu2 %1737 }
 0x3c8   : > { %v3430_v50 = vmax.f32 %v1717_v0, %v1738_v47  ;;  %1993 = vmatpush.msra.mxu3 %v1925_v11  ;;  %v1937_v0 = vld [vmem:[%s3784_s8 + $0x80] sm:$0xff] }
 0x3c9   : > { %2035 = vmatpush.msra.mxu0 %v1937_v0  ;;  %2298 = vmatpush.msrb.mxu1 %v1937_v0 }
 0x3ca   : > { %1994 = vmatpush.msra.mxu3 %v1924_v9 }
 0x3d8   : > { %v1763_v48 = vpop.permute.xlu0 %1762 }
 0x3d9   : > { %v3432_v51 = vmax.f32 %v1747_v23, %v1763_v48  ;;  %v1923_v23 = vld [vmem:[%s3784_s8 + $0x10] sm:$0xff] }
 0x3da   : > { %1995 = vmatpush.msra.mxu3 %v1923_v23  ;;  %v1892_v23 = vld [vmem:[%s3783_s7 + $0x68] sm:$0xff] }
 0x3dc   : > { %1996 = vmatpush.msra.mxu3 %v1922_v27 }
 0x3de   : > { %1997 = vmatpush.msra.mxu3 %v1921_v5 }
 0x3e0   : > { %2299 = vmatpush.msrb.mxu3 %v3469_v24 }
 0x3e2   : > { %2300 = vmatpush.msrb.mxu3 %v3475_v25  ;;  %v1882_v25 = vld [vmem:[%s3783_s7 + $0x18] sm:$0xff] }
 0x3e4   : > { %2301 = vmatpush.msrb.mxu3 %v3480_v60  ;;  %v1883_v60 = vld [vmem:[%s3783_s7 + $0x20] sm:$0xff] }
 0x3e6   : > { %2302 = vmatpush.msrb.mxu3 %v3492_v44 }
 0x3e8   : > { %v1761_v26 = vpop.permute.xlu1 %1760  ;;  %v1767_v55 = vpop.permute.xlu2 %1766  ;;  %2303 = vmatpush.msrb.mxu3 %v3504_v36 }
 0x3e9   : > { %v3422_v30 = vmax.f32 %v1746_v28, %v1761_v26  ;;  %v3448_v58 = vmax.f32 %v1749_v39, %v1767_v55  ;;  %v1880_v39 = vld [vmem:[%s3783_s7 + $0x8] sm:$0xff] }
 0x3ea   : > { %2304 = vmatpush.msrb.mxu3 %v3510_v1 }
 0x3eb   : > { %1816 = vrot.lane.b32.xlu0 %v3422_v30, %s3814_s12  ;;  %1795 = vrot.lane.b32.xlu2 %v3422_v30, %s3819_s24 }
 0x3ec   : > { %1837 = vrot.lane.b32.xlu1 %v3422_v30, %s3816_s0  ;;  %2305 = vmatpush.msrb.mxu3 %v3528_v4 }
 0x3ee   : > { %2306 = vmatpush.msrb.mxu3 %v3540_v40 }
 0x3f0   : > { %v1769_v18 = vpop.permute.xlu0 %1768 }
 0x3f1   : > { %v3456_v21 = vmax.f32 %v1750_v33, %v1769_v18 }
 0x3f3   : > { %1772 = vrot.lane.b32.xlu2 %v3430_v50, %s3814_s12  ;;  %1797 = vrot.lane.b32.xlu0 %v3432_v51, %s3819_s24 }
 0x3f4   : > { %1818 = vrot.lane.b32.xlu1 %v3432_v51, %s3814_s12 }
 0x3f8   : > { %v1765_v52 = vpop.permute.xlu1 %1764 }
 0x3f9   : > { %v3440_v54 = vmax.f32 %v1748_v38, %v1765_v52  ;;  %v1884_v52 = vld [vmem:[%s3783_s7 + $0x28] sm:$0xff] }
 0x3fb   : > { %1839 = vrot.lane.b32.xlu2 %v3432_v51, %s3816_s0  ;;  %1799 = vrot.lane.b32.xlu0 %v3440_v54, %s3819_s24 }
 0x3fc   : > { %1820 = vrot.lane.b32.xlu1 %v3440_v54, %s3814_s12 }
 0x403   : > { %1841 = vrot.lane.b32.xlu2 %v3440_v54, %s3816_s0  ;;  %1801 = vrot.lane.b32.xlu0 %v3448_v58, %s3819_s24 }
 0x404   : > { %1822 = vrot.lane.b32.xlu1 %v3448_v58, %s3814_s12 }
 0x40b   : > { %1843 = vrot.lane.b32.xlu2 %v3448_v58, %s3816_s0  ;;  %1803 = vrot.lane.b32.xlu0 %v3456_v21, %s3819_s24 }
 0x40c   : > { %1824 = vrot.lane.b32.xlu1 %v3456_v21, %s3814_s12 }
 0x413   : > { %1845 = vrot.lane.b32.xlu2 %v3456_v21, %s3816_s0 }
 0x439   : > { %v1771_v20 = vpop.permute.xlu1 %1770 }
 0x43a   : > { %v3599_v22 = vmax.f32 %v3418_v42, %v1771_v20 }
 0x43c   : > { %1847 = vrot.lane.b32.xlu2 %v3599_v22, %s3816_s0  ;;  %1826 = vrot.lane.b32.xlu1 %v3599_v22, %s3814_s12 }
 0x43d   : > { %1805 = vrot.lane.b32.xlu0 %v3599_v22, %s3819_s24 }
 0x445   : > { %v1796_v28 = vpop.permute.xlu2 %1795 }
 0x446   : > { %v1858_v37 = vsel %vm467_vm2, %v3422_v30, %v1796_v28 }
 0x447   : > { %v1902_v33 = vmul.f32 %v1881_v15, %v1858_v37  ;;  %v1896_v15 = vld [vmem:[%s3783_s7 + $0x88] sm:$0xff] }
 0x449   : > { %2274 = vmatmul.msk.f32.vlgmr.msra.gmra.mxu2 %vm376_vm1, %v1902_v33  ;;  %v1894_v33 = vld [vmem:[%s3783_s7 + $0x78] sm:$0xff] }
 0x44d   : > { %v1773_v34 = vpop.permute.xlu2 %1772 }
 0x44e   : > { %v3631_v38 = vmax.f32 %v3430_v50, %v1773_v34  ;;  %v1895_v34 = vld [vmem:[%s3783_s7 + $0x80] sm:$0xff] }
 0x450   : > { %1849 = vrot.lane.b32.xlu2 %v3631_v38, %s3816_s0  ;;  %1828 = vrot.lane.b32.xlu1 %v3631_v38, %s3814_s12  ;;  %s2377_s12 = scalar_lea.hbm %s3786_s10, 2 }
 0x451   : > { %1807 = vrot.lane.b32.xlu0 %v3631_v38, %s3819_s24  ;;  %p2379_p1 = scmp.lt.s32.totalorder %s2377_s12, %s2373_s27 }
 0x453   : > { %p2380_p2 = por %p2379_p1, %p2378_p0 }
 0x455   : > { %v1840_v50 = vpop.permute.xlu2 %1839  ;;  %p2381_p3 = pnand %p2380_p2, %p2376_p13 }
 0x45d   : > { %v1817_v17 = vpop.permute.xlu0 %1816  ;;  %v1842_v36 = vpop.permute.xlu2 %1841 }
 0x45e   : > { %v1838_v42 = vpop.permute.xlu1 %1837  ;;  %v1865_v26 = vsel %vm376_vm1, %v1858_v37, %v1817_v17 }
 0x45f   : > { %v1872_v30 = vsel %vm474_vm5, %v1865_v26, %v1838_v42 }
 0x460   : > { %v1900_v47 = vmul.f32 %v1879_v12, %v1872_v30  ;;  %v1901_v48 = vmul.f32 %v1880_v39, %v1872_v30 }
 0x462   : > { %1998 = vmatmul.f32.vlgmr.msra.gmra.mxu3 %v1900_v47  ;;  %2036 = vmatmul.f32.vlgmr.msra.gmra.mxu0 %v1901_v48 }
 0x465   : > { %v1798_v55 = vpop.permute.xlu0 %1797  ;;  %v1844_v46 = vpop.permute.xlu2 %1843 }
 0x466   : > { %v1819_v18 = vpop.permute.xlu1 %1818  ;;  %v1859_v24 = vsel %vm467_vm2, %v3432_v51, %v1798_v55  ;;  %v1887_v51 = vld [vmem:[%s3783_s7 + $0x40] sm:$0xff] }
 0x467   : > { %v1866_v59 = vsel %vm376_vm1, %v1859_v24, %v1819_v18  ;;  %v1905_v41 = vmul.f32 %v1884_v52, %v1859_v24  ;;  %v1898_v52 = vld [vmem:[%s3783_s7 + $0x98] sm:$0xff] }
 0x468   : > { %v1873_v44 = vsel %vm474_vm5, %v1866_v59, %v1840_v50  ;;  %v1897_v50 = vld [vmem:[%s3783_s7 + $0x90] sm:$0xff] }
 0x469   : > { %2275 = vmatmul.msk.f32.gmra.mxu2 %vm376_vm1, %v1905_v41  ;;  %v1903_v62 = vmul.f32 %v1882_v25, %v1873_v44  ;;  %v1904_v32 = vmul.f32 %v1883_v60, %v1873_v44 }
 0x46b   : > { %2001 = vmatmul.f32.gmra.mxu3 %v1903_v62  ;;  %2039 = vmatmul.f32.gmra.mxu0 %v1904_v32 }
 0x46d   : > { %v1800_v1 = vpop.permute.xlu0 %1799  ;;  %v1846_v19 = vpop.permute.xlu2 %1845 }
 0x46e   : > { %v1821_v2 = vpop.permute.xlu1 %1820  ;;  %v1860_v3 = vsel %vm467_vm2, %v3440_v54, %v1800_v1  ;;  %v1890_v54 = vld [vmem:[%s3783_s7 + $0x58] sm:$0xff] }
 0x46f   : > { %v1867_v4 = vsel %vm376_vm1, %v1860_v3, %v1821_v2  ;;  %v1908_v53 = vmul.f32 %v1887_v51, %v1860_v3 }
 0x470   : > { %v1874_v35 = vsel %vm474_vm5, %v1867_v4, %v1842_v36 }
 0x471   : > { %2276 = vmatmul.msk.f32.gmra.mxu2 %vm376_vm1, %v1908_v53  ;;  %v1906_v40 = vmul.f32 %v1885_v45, %v1874_v35  ;;  %v1907_v43 = vmul.f32 %v1886_v49, %v1874_v35 }
 0x473   : > { %2004 = vmatmul.f32.gmra.mxu3 %v1906_v40  ;;  %2042 = vmatmul.f32.gmra.mxu0 %v1907_v43 }
 0x475   : > { %v1802_v56 = vpop.permute.xlu0 %1801 }
 0x476   : > { %v1823_v7 = vpop.permute.xlu1 %1822  ;;  %v1861_v57 = vsel %vm467_vm2, %v3448_v58, %v1802_v56  ;;  %v1893_v58 = vld [vmem:[%s3783_s7 + $0x70] sm:$0xff] }
 0x477   : > { %v1868_v8 = vsel %vm376_vm1, %v1861_v57, %v1823_v7  ;;  %v1911_v10 = vmul.f32 %v1890_v54, %v1861_v57 }
 0x478   : > { %v1875_v13 = vsel %vm474_vm5, %v1868_v8, %v1844_v46 }
 0x479   : > { %2277 = vmatmul.msk.f32.gmra.mxu2 %vm376_vm1, %v1911_v10  ;;  %v1909_v14 = vmul.f32 %v1888_v61, %v1875_v13  ;;  %v1910_v31 = vmul.f32 %v1889_v63, %v1875_v13 }
 0x47b   : > { %2007 = vmatmul.f32.gmra.mxu3 %v1909_v14  ;;  %2045 = vmatmul.f32.gmra.mxu0 %v1910_v31 }
 0x47d   : > { %v1804_v11 = vpop.permute.xlu0 %1803 }
 0x47e   : > { %v1825_v6 = vpop.permute.xlu1 %1824  ;;  %v1862_v9 = vsel %vm467_vm2, %v3456_v21, %v1804_v11 }
 0x47f   : > { %v1869_v20 = vsel %vm376_vm1, %v1862_v9, %v1825_v6  ;;  %v1914_v27 = vmul.f32 %v1893_v58, %v1862_v9 }
 0x480   : > { %v1876_v29 = vsel %vm474_vm5, %v1869_v20, %v1846_v19 }
 0x481   : > { %2278 = vmatmul.msk.f32.gmra.mxu2 %vm376_vm1, %v1914_v27  ;;  %v1912_v5 = vmul.f32 %v1891_v16, %v1876_v29  ;;  %v1913_v0 = vmul.f32 %v1892_v23, %v1876_v29 }
 0x483   : > { %2010 = vmatmul.f32.gmra.mxu3 %v1912_v5  ;;  %2048 = vmatmul.f32.gmra.mxu0 %v1913_v0 }
 0x496   : > { %v1848_v12 = vpop.permute.xlu2 %1847 }
 0x4aa   : > { %v1850_v55 = vpop.permute.xlu2 %1849 }
 0x4ae   : > { %v1827_v21 = vpop.permute.xlu1 %1826 }
 0x4af   : > { %v1806_v28 = vpop.permute.xlu0 %1805 }
 0x4b0   : > { %v1863_v37 = vsel %vm467_vm2, %v3599_v22, %v1806_v28 }
 0x4b1   : > { %v1870_v39 = vsel %vm376_vm1, %v1863_v37, %v1827_v21  ;;  %v1917_v17 = vmul.f32 %v1896_v15, %v1863_v37 }
 0x4b2   : > { %v1877_v42 = vsel %vm474_vm5, %v1870_v39, %v1848_v12 }
 0x4b3   : > { %2279 = vmatmul.msk.f32.gmra.mxu2 %vm376_vm1, %v1917_v17  ;;  %v1915_v26 = vmul.f32 %v1894_v33, %v1877_v42  ;;  %v1916_v30 = vmul.f32 %v1895_v34, %v1877_v42 }
 0x4b5   : > { %2013 = vmatmul.f32.gmra.mxu3 %v1915_v26  ;;  %2051 = vmatmul.f32.gmra.mxu0 %v1916_v30 }
 0x4c2   : > { %v1829_v22 = vpop.permute.xlu1 %1828 }
 0x4c3   : > { %v1808_v47 = vpop.permute.xlu0 %1807 }
 0x4c4   : > { %v1864_v48 = vsel %vm467_vm2, %v3631_v38, %v1808_v47  ;;  %v1899_v38 = vld [vmem:[%s3783_s7 + $0xa0] sm:$0xff] }
 0x4c5   : > { %v1871_v18 = vsel %vm376_vm1, %v1864_v48, %v1829_v22  ;;  %v1920_v59 = vmul.f32 %v1899_v38, %v1864_v48  ;;  %v2116_v47 = vld [vmem:[%s3785_s9] sm:$0x1] }
 0x4c6   : > { %v1878_v24 = vsel %vm474_vm5, %v1871_v18, %v1850_v55 }
 0x4c7   : > { %v1918_v25 = vmul.f32 %v1897_v50, %v1878_v24  ;;  %v1919_v60 = vmul.f32 %v1898_v52, %v1878_v24 }
 0x4c9   : > { %2016 = vmatmul.f32.gmra.mxu3 %v1918_v25  ;;  %2054 = vmatmul.f32.vlgmr.msrb.gmra.mxu1 %v1919_v60 }
 0x4cc   : > { %v2075_v32 = vpop.f32.mrf.mxu2 }
 0x4d1   : > { %2280 = vmatmul.msk.f32.vlgmr.msrb.gmra.mxu3 %vm376_vm1, %v1920_v59 }
 0x4df   : > { %v2037_v44 = vpop.f32.mrf.mxu0 }
 0x4e5   : > { %v1999_v41 = vpop.f32.mrf.mxu3 }
 0x4e6   : > { %v2038_v54 = vadd.f32 %v2037_v44, %v1999_v41 }
 0x4e8   : > { %v2040_v36 = vpop.f32.mrf.mxu0  ;;  %v2076_v61 = vadd.f32 %v2075_v32, %v2038_v54 }
 0x4ea   : > { %v2097_v11 = vsel %vm2096_vm10, %v2076_v61, 0.0 }
 0x4ec   : > { %v2078_v51 = vpop.f32.mrf.mxu2 }
 0x4ee   : > { %v2002_v62 = vpop.f32.mrf.mxu3 }
 0x4ef   : > { %v2041_v40 = vadd.f32 %v2040_v36, %v2002_v62 }
 0x4f0   : > { %v2043_v2 = vpop.f32.mrf.mxu0 }
 0x4f1   : > { %v2079_v7 = vadd.f32 %v2078_v51, %v2041_v40 }
 0x4f3   : > { %v2098_v13 = vsel %vm2096_vm10, %v2079_v7, 0.0 }
 0x4f4   : > { %v2081_v3 = vpop.f32.mrf.mxu2  ;;  %v2099_v16 = vadd.f32 %v2098_v13, %v2097_v11 }
 0x4f6   : > { %v2005_v1 = vpop.f32.mrf.mxu3 }
 0x4f7   : > { %v2044_v46 = vadd.f32 %v2043_v2, %v2005_v1 }
 0x4f8   : > { %v2046_v49 = vpop.f32.mrf.mxu0 }
 0x4f9   : > { %v2082_v63 = vadd.f32 %v2081_v3, %v2044_v46 }
 0x4fb   : > { %v2100_v6 = vsel %vm2096_vm10, %v2082_v63, 0.0 }
 0x4fc   : > { %v2084_v4 = vpop.f32.mrf.mxu2  ;;  %v2101_v27 = vadd.f32 %v2100_v6, %v2099_v16 }
 0x4fe   : > { %v2008_v45 = vpop.f32.mrf.mxu3 }
 0x4ff   : > { %v2047_v57 = vadd.f32 %v2046_v49, %v2008_v45 }
 0x500   : > { %v2049_v35 = vpop.f32.mrf.mxu0 }
 0x501   : > { %v2085_v14 = vadd.f32 %v2084_v4, %v2047_v57 }
 0x503   : > { %v2102_v19 = vsel %vm2096_vm10, %v2085_v14, 0.0 }
 0x504   : > { %v2087_v56 = vpop.f32.mrf.mxu2  ;;  %v2103_v5 = vadd.f32 %v2102_v19, %v2101_v27 }
 0x506   : > { %v2011_v53 = vpop.f32.mrf.mxu3 }
 0x507   : > { %v2050_v8 = vadd.f32 %v2049_v35, %v2011_v53 }
 0x509   : > { %v2088_v9 = vadd.f32 %v2087_v56, %v2050_v8 }
 0x50b   : > { %v2104_v29 = vsel %vm2096_vm10, %v2088_v9, 0.0 }
 0x50c   : > { %v2105_v28 = vadd.f32 %v2104_v29, %v2103_v5 }
 0x532   : > { %v2052_v10 = vpop.f32.mrf.mxu0 }
 0x536   : > { %v2090_v23 = vpop.f32.mrf.mxu2 }
 0x538   : > { %v2014_v43 = vpop.f32.mrf.mxu3 }
 0x539   : > { %v2053_v31 = vadd.f32 %v2052_v10, %v2014_v43 }
 0x53b   : > { %v2091_v20 = vadd.f32 %v2090_v23, %v2053_v31 }
 0x53d   : > { %v2106_v21 = vsel %vm2096_vm10, %v2091_v20, 0.0 }
 0x53e   : > { %v2107_v34 = vadd.f32 %v2106_v21, %v2105_v28 }
 0x546   : > { %v2055_v0 = vpop.f32.mrf.mxu1 }
 0x54c   : > { %v2017_v58 = vpop.f32.mrf.mxu3 }
 0x54d   : > { %v2056_v15 = vadd.f32 %v2055_v0, %v2017_v58 }
 0x554   : > { %v2093_v37 = vpop.f32.mrf.mxu3 }
 0x555   : > { %v2094_v33 = vadd.f32 %v2093_v37, %v2056_v15 }
 0x557   : > { %v2108_v12 = vsel %vm2096_vm10, %v2094_v33, 0.0 }
 0x558   : > { %v2109_v39 = vadd.f32 %v2108_v12, %v2107_v34 }
 0x55a   : > { %v2110_v17 = vrot.slane %v2109_v39, 4 }
 0x55c   : > { %v2111_v42 = vadd.f32 %v2110_v17, %v2109_v39 }
 0x55e   : > { %v2112_v26 = vrot.slane %v2111_v42, 2 }
 0x560   : > { %v2113_v30 = vadd.f32 %v2112_v26, %v2111_v42 }
 0x562   : > { %v2114_v22 = vrot.slane %v2113_v30, 1 }
 0x564   : > { %v2115_v48 = vadd.f32 %v2114_v22, %v2113_v30 }
 0x566   : > { %v2117_v50 = vadd.f32 %v2116_v47, %v2115_v48 }
 0x568   : > { %2119 = vst.msk [vmem:[%s351_s25] sm:$0x1] %vm2118_vm11, %v2117_v50 }
 0x569   : > { %2384 = shalt.err (!%p2381_p3)
}
 0x56a   : > { %2308 = dma.vmem_to_hbm [thread:$0]  (%p2522_p5), %s2132_s28, 16, %s2134_s11, %s2121_s26  }
 0x56b PF: > { %p2314_p4 = scmp.ge.s32.totalorder %s2419_s16, 2  ;;  %s2145_s19 = sand.u32 1, %s2407_s13  }
 0x56c   : > { %s2146_s22 = scalar_lea.sflag [#allocation6], %s2145_s19 }
 0x56d   : > { %p2311_p7 = pnand %p2314_p4, %p2526_p6 }
 0x56f   : > { %p2312_p8 = pneg %p2311_p7 }
 0x571   : > { %2402 = dma.done.wait (%p2312_p8), %s2146_s22, 16  }
 0x572   : > { %2404 = vsyncadd (%p2312_p8), %s2146_s22, 4294967280  ;;  %s3821_s16 = sld [smem:[#allocation9_spill]]  ;;  %s3824_s13 = smov %s2411_s14 }
 0x573   : > { %s3822_s20 = sld [smem:[#allocation8_spill]] }
 0x574   : > { %s3823_s15 = sld [smem:[#allocation10_spill]] }
 0x578   : > { %p20_p9 = scmp.ge.s32.totalorder %s3821_s16, 4  }
 0x579   : > { %s3825_s14 = smov %s3822_s20 }
 0x57a   :  { %22 = sbr.rel (!%p20_p9) target bundleno = 5 (0x5), region = 111 }
 0x57f   :  { %2151 = vsyncpa [#allocation6], 1 }
 0x580   :  { %2153 = vsyncpa [#allocation6 + $0x1], 1 }

</bundles_post_ra>
